<compile_context>
chip_gen: v5e
topology: v5e:2x2
jax: 0.10.0
libtpu: 0.0.40
codegen_flags: <defaults>
</compile_context>

<pallas_src>
import jax
import jax.numpy as jnp
from jax.experimental import pallas as pl
from jax.experimental.pallas import tpu as pltpu

LANE = 128
SUBLANE_BF16 = 16  # one bf16 vreg holds 16 sublanes


def _round_up(n, m):
    return ((n + m - 1) // m) * m


def disc_mlp_kernel(x_ref, w1_ref, b1_ref, w2_ref, b2_ref, w3_ref, b3_ref, o_ref):
    """Fused 3-layer MLP on one batch tile.

    x_ref:  (tb, F)   f32 (cast to bf16 in-kernel)
    w*_ref: bf16 weights, [in, out] layout (y = x @ W + b == PyTorch x @ W.T + b)
    b*_ref: f32 biases, shape (1, out)
    o_ref:  (tb, O_pad) bf16 (f32 accumulation, cast at the store)
    """
    x = x_ref[...].astype(jnp.bfloat16)
    # Layer 1: Linear + ReLU  (Dropout = identity in eval mode)
    h1 = jnp.dot(x, w1_ref[...], preferred_element_type=jnp.float32) + b1_ref[...]
    h1 = jnp.maximum(h1, 0.0).astype(jnp.bfloat16)
    # Layer 2: Linear + ReLU  (Dropout = identity in eval mode)
    h2 = jnp.dot(h1, w2_ref[...], preferred_element_type=jnp.float32) + b2_ref[...]
    h2 = jnp.maximum(h2, 0.0).astype(jnp.bfloat16)
    # Layer 3: Linear (output padded to a lane-dense width)
    out = jnp.dot(h2, w3_ref[...], preferred_element_type=jnp.float32) + b3_ref[...]
    o_ref[...] = out.astype(o_ref.dtype)


def _choose_batch_tiling(B, tile_b):
    """Pick (tile, padded_batch):
      * tile is a multiple of 16 rows (full bf16 sublane packing),
      * ragged batches waste < 16 rows per tile (no round-up-to-full-tile blowup),
      * batches >= 32 rows always get >= 2 grid tiles so the 'parallel' grid
        axis can shard across the two TensorCores on v7x (no-op on v5e/v6e).
    """
    b16 = _round_up(max(B, 1), SUBLANE_BF16)
    n_tiles = max(1, -(-b16 // tile_b))
    if n_tiles == 1 and b16 >= 2 * SUBLANE_BF16:
        n_tiles = 2
    tb = _round_up(-(-b16 // n_tiles), SUBLANE_BF16)
    return tb, n_tiles * tb


def discriminator_forward(x, kparams, *, out_features, tile_b=512):
    """x: [B, F] float32. kparams from prepare_params(). Returns [B, out_features] f32."""
    w1, b1, w2, b2, w3, b3 = kparams
    B, F = x.shape
    H = w1.shape[1]
    O_pad = w3.shape[1]

    tb, B_pad = _choose_batch_tiling(B, tile_b)
    if B_pad != B:
        x = jnp.pad(x, ((0, B_pad - B), (0, 0)))

    const = lambda i: (0, 0)
    resident = pl.Buffered(1)  # constant index_map -> single-buffer the weights

    out_padded = pl.pallas_call(
        disc_mlp_kernel,
        out_shape=jax.ShapeDtypeStruct((B_pad, O_pad), jnp.bfloat16),
        grid_spec=pltpu.PrefetchScalarGridSpec(
            num_scalar_prefetch=0,
            grid=(B_pad // tb,),
            in_specs=[
                pl.BlockSpec((tb, F), lambda i: (i, 0)),                       # x tile (f32)
                pl.BlockSpec((F, H), const, pipeline_mode=resident),           # W1 bf16
                pl.BlockSpec((1, H), const, pipeline_mode=resident),           # b1 f32
                pl.BlockSpec((H, H), const, pipeline_mode=resident),           # W2 bf16
                pl.BlockSpec((1, H), const, pipeline_mode=resident),           # b2 f32
                pl.BlockSpec((H, O_pad), const, pipeline_mode=resident),       # W3 bf16 (padded)
                pl.BlockSpec((1, O_pad), const, pipeline_mode=resident),       # b3 f32 (padded)
            ],
            out_specs=pl.BlockSpec((tb, O_pad), lambda i: (i, 0)),
        ),
        compiler_params=pltpu.CompilerParams(
            dimension_semantics=("parallel",),      # batch axis shards across TCs
            vmem_limit_bytes=32 * 1024 * 1024,      # headroom for tile_b sweeps
        ),
    )(x, w1, b1, w2, b2, w3, b3)

    # Strip batch padding + lane padding of the final layer; return f32 logits.
    return out_padded[:B, :out_features].astype(jnp.float32)


def init_params(key, feature_size, hidden, output_size):
    """Deterministic init mimicking PyTorch nn.Linear default (uniform +/- 1/sqrt(fan_in))."""
    ks = jax.random.split(key, 6)

    def linear(kw, kb, fan_in, fan_out):
        bound = 1.0 / jnp.sqrt(fan_in)
        w = jax.random.uniform(kw, (fan_in, fan_out), jnp.float32, -bound, bound)
        b = jax.random.uniform(kb, (1, fan_out), jnp.float32, -bound, bound)
        return w, b

    w1, b1 = linear(ks[0], ks[1], feature_size, hidden)
    w2, b2 = linear(ks[2], ks[3], hidden, hidden)
    w3, b3 = linear(ks[4], ks[5], hidden, output_size)
    return (w1, b1, w2, b2, w3, b3)


def prepare_params(params):
    """Cast weights to bf16 (MXU-native) and zero-pad the last layer's output
    dimension up to a multiple of 128 for lane-dense stores / full MXU columns."""
    w1, b1, w2, b2, w3, b3 = params
    O = w3.shape[1]
    O_pad = _round_up(O, LANE)
    if O_pad != O:
        w3 = jnp.pad(w3, ((0, 0), (0, O_pad - O)))
        b3 = jnp.pad(b3, ((0, 0), (0, O_pad - O)))
    return (w1.astype(jnp.bfloat16), b1,
            w2.astype(jnp.bfloat16), b2,
            w3.astype(jnp.bfloat16), b3)


def reference_forward(x, kparams, out_features):
    """Pure-JAX reference with the same bf16-quantized weights/activations and
    the same bf16 output rounding (f32 accumulation), so the only divergence
    vs the kernel is summation order."""
    w1, b1, w2, b2, w3, b3 = kparams
    f32 = jnp.float32
    xf = x.astype(jnp.bfloat16).astype(f32)
    h1 = jnp.maximum(xf @ w1.astype(f32) + b1, 0.0).astype(jnp.bfloat16).astype(f32)
    h2 = jnp.maximum(h1 @ w2.astype(f32) + b2, 0.0).astype(jnp.bfloat16).astype(f32)
    out = (h2 @ w3.astype(f32) + b3).astype(jnp.bfloat16).astype(f32)
    return out[:, :out_features]


if __name__ == "__main__":
    # Module hyperparameters (small, consistent with the forward pass):
    feature_size = 32
    dropout_ps = 0.5          # inference-mode identity
    n_domains = 3
    n_classes = 4
    output_size = n_domains * n_classes   # 12
    hidden = 1024
    batch = 8

    key = jax.random.PRNGKey(0)
    k_x, k_p = jax.random.split(key)
    x = jax.random.normal(k_x, (batch, feature_size), jnp.float32)
    params = init_params(k_p, feature_size, hidden, output_size)
    kparams = prepare_params(params)

    out = discriminator_forward(x, kparams, out_features=output_size)
    out = jax.block_until_ready(out)

    ref = reference_forward(x, kparams, output_size)
    assert out.shape == (batch, output_size)
    assert jnp.allclose(out, ref, atol=2e-2, rtol=2e-2), float(jnp.max(jnp.abs(out - ref)))

    print("KERNEL_OK")
</pallas_src>

<mosaic_0001>
module attributes {stable_mosaic.version = 11 : i64} {
  func.func @disc_mlp_kernel(%arg0: i32, %arg1: memref<16x32xf32, #tpu.memory_space<vmem>>, %arg2: memref<32x1024xbf16, #tpu.memory_space<vmem>>, %arg3: memref<1x1024xf32, #tpu.memory_space<vmem>>, %arg4: memref<1024x1024xbf16, #tpu.memory_space<vmem>>, %arg5: memref<1x1024xf32, #tpu.memory_space<vmem>>, %arg6: memref<1024x128xbf16, #tpu.memory_space<vmem>>, %arg7: memref<1x128xf32, #tpu.memory_space<vmem>>, %arg8: memref<16x128xbf16, #tpu.memory_space<vmem>>) attributes {dimension_semantics = [#tpu.dimension_semantics<parallel>], iteration_bounds = array<i64: 1>, scalar_prefetch = 0 : i64, scratch_operands = 0 : i64, tpu.core_type = #tpu.core_type<tc>, window_params = [{transform_indices = @transform_0, window_bounds = array<i64: 16, 32>}, {pipeline_mode = #tpu.pipeline_mode<synchronous>, transform_indices = @transform_1, window_bounds = array<i64: 32, 1024>}, {pipeline_mode = #tpu.pipeline_mode<synchronous>, transform_indices = @transform_2, window_bounds = array<i64: 1, 1024>}, {pipeline_mode = #tpu.pipeline_mode<synchronous>, transform_indices = @transform_3, window_bounds = array<i64: 1024, 1024>}, {pipeline_mode = #tpu.pipeline_mode<synchronous>, transform_indices = @transform_4, window_bounds = array<i64: 1, 1024>}, {pipeline_mode = #tpu.pipeline_mode<synchronous>, transform_indices = @transform_5, window_bounds = array<i64: 1024, 128>}, {pipeline_mode = #tpu.pipeline_mode<synchronous>, transform_indices = @transform_6, window_bounds = array<i64: 1, 128>}, {transform_indices = @transform_7, window_bounds = array<i64: 16, 128>}]} {
    %c0 = arith.constant 0 : index
    %c0_0 = arith.constant 0 : index
    %0 = vector.load %arg1[%c0, %c0_0] : memref<16x32xf32, #tpu.memory_space<vmem>>, vector<16x32xf32>
    %1 = arith.truncf %0 : vector<16x32xf32> to vector<16x32xbf16>
    %c0_1 = arith.constant 0 : index
    %c0_2 = arith.constant 0 : index
    %2 = vector.load %arg2[%c0_1, %c0_2] : memref<32x1024xbf16, #tpu.memory_space<vmem>>, vector<32x1024xbf16>
    %cst = arith.constant dense<0.000000e+00> : vector<16x1024xf32>
    %3 = tpu.matmul %1, %2, %cst {dimension_numbers = #tpu.dot_dimension_numbers<[1], [0], [0], [1], [0, 0, 1, 1], [], []>} : vector<16x32xbf16>, vector<32x1024xbf16>, vector<16x1024xf32> -> vector<16x1024xf32>
    %c0_3 = arith.constant 0 : index
    %c0_4 = arith.constant 0 : index
    %4 = vector.load %arg3[%c0_3, %c0_4] : memref<1x1024xf32, #tpu.memory_space<vmem>>, vector<1x1024xf32>
    %5 = vector.broadcast %4 : vector<1x1024xf32> to vector<16x1024xf32>
    %6 = arith.addf %3, %5 : vector<16x1024xf32>
    %cst_5 = arith.constant 0.000000e+00 : f32
    %7 = vector.broadcast %cst_5 : f32 to vector<16x1024xf32>
    %8 = arith.maximumf %6, %7 : vector<16x1024xf32>
    %9 = arith.truncf %8 : vector<16x1024xf32> to vector<16x1024xbf16>
    %c0_6 = arith.constant 0 : index
    %c0_7 = arith.constant 0 : index
    %10 = vector.load %arg4[%c0_6, %c0_7] : memref<1024x1024xbf16, #tpu.memory_space<vmem>>, vector<1024x1024xbf16>
    %cst_8 = arith.constant dense<0.000000e+00> : vector<16x1024xf32>
    %11 = tpu.matmul %9, %10, %cst_8 {dimension_numbers = #tpu.dot_dimension_numbers<[1], [0], [0], [1], [0, 0, 1, 1], [], []>} : vector<16x1024xbf16>, vector<1024x1024xbf16>, vector<16x1024xf32> -> vector<16x1024xf32>
    %c0_9 = arith.constant 0 : index
    %c0_10 = arith.constant 0 : index
    %12 = vector.load %arg5[%c0_9, %c0_10] : memref<1x1024xf32, #tpu.memory_space<vmem>>, vector<1x1024xf32>
    %13 = vector.broadcast %12 : vector<1x1024xf32> to vector<16x1024xf32>
    %14 = arith.addf %11, %13 : vector<16x1024xf32>
    %cst_11 = arith.constant 0.000000e+00 : f32
    %15 = vector.broadcast %cst_11 : f32 to vector<16x1024xf32>
    %16 = arith.maximumf %14, %15 : vector<16x1024xf32>
    %17 = arith.truncf %16 : vector<16x1024xf32> to vector<16x1024xbf16>
    %c0_12 = arith.constant 0 : index
    %c0_13 = arith.constant 0 : index
    %18 = vector.load %arg6[%c0_12, %c0_13] : memref<1024x128xbf16, #tpu.memory_space<vmem>>, vector<1024x128xbf16>
    %cst_14 = arith.constant dense<0.000000e+00> : vector<16x128xf32>
    %19 = tpu.matmul %17, %18, %cst_14 {dimension_numbers = #tpu.dot_dimension_numbers<[1], [0], [0], [1], [0, 0, 1, 1], [], []>} : vector<16x1024xbf16>, vector<1024x128xbf16>, vector<16x128xf32> -> vector<16x128xf32>
    %c0_15 = arith.constant 0 : index
    %c0_16 = arith.constant 0 : index
    %20 = vector.load %arg7[%c0_15, %c0_16] : memref<1x128xf32, #tpu.memory_space<vmem>>, vector<1x128xf32>
    %21 = vector.broadcast %20 : vector<1x128xf32> to vector<16x128xf32>
    %22 = arith.addf %19, %21 : vector<16x128xf32>
    %23 = arith.truncf %22 : vector<16x128xf32> to vector<16x128xbf16>
    %c0_17 = arith.constant 0 : index
    %c0_18 = arith.constant 0 : index
    %24 = vector.load %arg8[%c0_17, %c0_18] : memref<16x128xbf16, #tpu.memory_space<vmem>>, vector<16x128xbf16>
    tpu.vector_store %arg8[%c0_17, %c0_18], %23 {strides = array<i32>} : memref<16x128xbf16, #tpu.memory_space<vmem>>, vector<16x128xbf16>,
    return
  }
  func.func @transform_0(%arg0: i32) -> (i32, i32) {
    %c0_i32 = arith.constant 0 : i32
    %c0_i32_0 = arith.constant 0 : i32
    return %arg0, %c0_i32 : i32, i32
  }
  func.func @transform_1(%arg0: i32) -> (i32, i32) {
    %c0_i32 = arith.constant 0 : i32
    %c0_i32_0 = arith.constant 0 : i32
    %c0_i32_1 = arith.constant 0 : i32
    return %c0_i32, %c0_i32_0 : i32, i32
  }
  func.func @transform_2(%arg0: i32) -> (i32, i32) {
    %c0_i32 = arith.constant 0 : i32
    %c0_i32_0 = arith.constant 0 : i32
    %c0_i32_1 = arith.constant 0 : i32
    return %c0_i32, %c0_i32_0 : i32, i32
  }
  func.func @transform_3(%arg0: i32) -> (i32, i32) {
    %c0_i32 = arith.constant 0 : i32
    %c0_i32_0 = arith.constant 0 : i32
    %c0_i32_1 = arith.constant 0 : i32
    return %c0_i32, %c0_i32_0 : i32, i32
  }
  func.func @transform_4(%arg0: i32) -> (i32, i32) {
    %c0_i32 = arith.constant 0 : i32
    %c0_i32_0 = arith.constant 0 : i32
    %c0_i32_1 = arith.constant 0 : i32
    return %c0_i32, %c0_i32_0 : i32, i32
  }
  func.func @transform_5(%arg0: i32) -> (i32, i32) {
    %c0_i32 = arith.constant 0 : i32
    %c0_i32_0 = arith.constant 0 : i32
    %c0_i32_1 = arith.constant 0 : i32
    return %c0_i32, %c0_i32_0 : i32, i32
  }
  func.func @transform_6(%arg0: i32) -> (i32, i32) {
    %c0_i32 = arith.constant 0 : i32
    %c0_i32_0 = arith.constant 0 : i32
    %c0_i32_1 = arith.constant 0 : i32
    return %c0_i32, %c0_i32_0 : i32, i32
  }
  func.func @transform_7(%arg0: i32) -> (i32, i32) {
    %c0_i32 = arith.constant 0 : i32
    %c0_i32_0 = arith.constant 0 : i32
    return %arg0, %c0_i32 : i32, i32
  }
}

</mosaic_0001>

<bundles_post_ra>
// kernel: tpu_custom_call.1
= control target key start
LH: loop header
LB: loop body
LE: loop exit
PB: predicated region body
PF: predicated region fallthrough
CT: control target
= control target key end

     0   :  { %12 = vsyncpa [#allocation3], 0  ;;  %s8657_s0 = inlined_call_operand.hbm [shape: f32[16,32], index: 0, kind: input, shape index: {}]   ;;  %s8658_s1 = inlined_call_operand.hbm [shape: bf16[32,1024], index: 1, kind: input, shape index: {}]   ;;  %s8659_s2 = inlined_call_operand.hbm [shape: f32[1,1024], index: 2, kind: input, shape index: {}]   ;;  %s8660_s3 = inlined_call_operand.hbm [shape: bf16[1024,1024], index: 3, kind: input, shape index: {}]   ;;  %s8661_s4 = inlined_call_operand.hbm [shape: f32[1,1024], index: 4, kind: input, shape index: {}]   ;;  %s8662_s5 = inlined_call_operand.hbm [shape: bf16[1024,128], index: 5, kind: input, shape index: {}]   ;;  %s8663_s6 = inlined_call_operand.hbm [shape: f32[1,128], index: 6, kind: input, shape index: {}]   ;;  %s8664_s7 = inlined_call_operand.hbm [shape: bf16[16,128], index: 7, kind: output, shape index: {}]  }
   0x1   :  { %13 = vsyncpa [#allocation6], 0 }
   0x2   :  { %14 = vsyncpa [#allocation9], 0 }
   0x3   :  { %15 = vsyncpa [#allocation12], 0  ;;  %s34_s26 = sshll.u32 %s8658_s1, 4  ;;  %s35_s26 = int_to_ptr.hbm [resolvable:$true] %s34_s26 }
   0x4   :  { %16 = vsyncpa [#allocation4], 0  ;;  %s8243_s27 = smov [#allocation5]   ;;  %s58_s8 = sshll.u32 %s8660_s3, 4  ;;  %s59_s8 = int_to_ptr.hbm [resolvable:$true] %s58_s8 }
   0x5   :  { %s36_s28 = sshll.u32 %s8243_s27, 4  ;;  %s8244_s9 = smov 512   ;;  %s37_s28 = int_to_ptr.vmem [resolvable:$true] %s36_s28 }
   0x6   :  { %s8245_s10 = smov 32   ;;  %s8246_s11 = smov [#allocation8]  }
   0x7   :  { %42 = dma.hbm_to_vmem [thread:$0]  %s35_s26, 2048, %s37_s28, [#allocation6], %s8244_s9, %s8244_s9, %s8245_s10  }
   0x8   :  { %s60_s12 = sshll.u32 %s8246_s11, 4  ;;  %s82_s15 = sshll.u32 %s8662_s5, 4  ;;  %s61_s12 = int_to_ptr.vmem [resolvable:$true] %s60_s12  ;;  %s83_s15 = int_to_ptr.hbm [resolvable:$true] %s82_s15 }
   0x9   :  { %66 = dma.hbm_to_vmem [thread:$0]  %s59_s8, 65536, %s61_s12, [#allocation9], %s8244_s9, %s8244_s9, %s8245_s10  }
   0xa   :  { %s8247_s1 = smov [#allocation11]   ;;  %s21_s3 = sshll.u32 %s8657_s0, 4  ;;  %s22_s3 = int_to_ptr.hbm [resolvable:$true] %s21_s3 }
   0xb   :  { %s84_s16 = sshll.u32 %s8247_s1, 4  ;;  %s8248_s19 = smov 64   ;;  %s85_s16 = int_to_ptr.vmem [resolvable:$true] %s84_s16 }
   0xc   :  { %s8249_s20 = smov 4   ;;  %s8250_s21 = smov [#allocation2]  }
   0xd   :  { %90 = dma.hbm_to_vmem [thread:$0]  %s83_s15, 8192, %s85_s16, [#allocation12], %s8248_s19, %s8248_s19, %s8249_s20  }
   0xe   :  { %s23_s22 = sshll.u32 %s8250_s21, 4  ;;  %s8251_s5 = smov 128   ;;  %s24_s22 = int_to_ptr.vmem [resolvable:$true] %s23_s22 }
   0xf   :  { %s8252_s23 = smov 8   ;;  %s48_s26 = sshll.u32 %s8659_s2, 4  ;;  %s49_s26 = int_to_ptr.hbm [resolvable:$true] %s48_s26 }
  0x10   :  { %29 = dma.hbm_to_vmem [thread:$0]  %s22_s3, 256, %s24_s22, [#allocation3], %s8251_s5, %s8251_s5, %s8252_s23  }
  0x11   :  { %s8253_s27 = smov [#allocation7]   ;;  %s72_s30 = sshll.u32 %s8661_s4, 4  ;;  %s73_s30 = int_to_ptr.hbm [resolvable:$true] %s72_s30 }
  0x12   :  { %s50_s0 = sshll.u32 %s8253_s27, 4  ;;  %s8254_s8 = smov [#allocation10]   ;;  %s51_s0 = int_to_ptr.vmem [resolvable:$true] %s50_s0 }
  0x13   :  { %53 = dma.hbm_to_vmem [thread:$0]  %s49_s26, 128, %s51_s0, [#allocation6]  }
  0x14   :  { %s74_s9 = sshll.u32 %s8254_s8, 4  ;;  %s96_s12 = sshll.u32 %s8663_s6, 4  ;;  %s75_s9 = int_to_ptr.vmem [resolvable:$true] %s74_s9  ;;  %s97_s12 = int_to_ptr.hbm [resolvable:$true] %s96_s12 }
  0x15   :  { %77 = dma.hbm_to_vmem [thread:$0]  %s73_s30, 128, %s75_s9, [#allocation9]  }
  0x16   :  { %s8255_s2 = smov [#allocation13]  }
  0x17   :  { %s98_s13 = sshll.u32 %s8255_s2, 4  ;;  %s99_s13 = int_to_ptr.vmem [resolvable:$true] %s98_s13 }
  0x18   :  { %101 = dma.hbm_to_vmem [thread:$0]  %s97_s12, 16, %s99_s13, [#allocation12]  }
  0x19   :  { %8233 = dma.done.wait [#allocation3], 256  }
  0x1a   :  { %8234 = vsyncadd [#allocation3], 4294967040 }
  0x1b   :  { %8235 = dma.done.wait [#allocation6], 2176  }
  0x1c   :  { %8236 = vsyncadd [#allocation6], 4294965120 }
  0x1d   :  { %8237 = dma.done.wait [#allocation9], 65664  }
  0x1e   :  { %8238 = vsyncadd [#allocation9], 4294901632 }
  0x1f   :  { %8239 = dma.done.wait [#allocation12], 8208  }
  0x20   :  { %8240 = vsyncadd [#allocation12], 4294959088  ;;  %v5086_v0 = vld [vmem:[#allocation5 + $0x40] sm:$0xf]  ;;  %v7436_v2 = vld [vmem:[#allocation5 + $0x44] sm:$0xf] }
  0x21   :  { %v7440_v1 = vld [vmem:[#allocation5 + $0x5c] sm:$0xf0]  ;;  %v5088_v4 = vld [vmem:[#allocation5 + $0x60] sm:$0xf0]  ;;  %v5094_v5 = vld [vmem:[#allocation5 + $0x48] sm:$0xf] }
  0x22   :  { %v5087_v3 = vor.u32 %v7440_v1, %v5086_v0  ;;  %v7441_v6 = vld [vmem:[#allocation5 + $0x64] sm:$0xf0]  ;;  %v5091_v7 = vor.u32 %v7436_v2, %v5088_v4  ;;  %v7437_v9 = vld [vmem:[#allocation5 + $0x4c] sm:$0xf]  ;;  %v5054_v11 = vld [vmem:[#allocation5] sm:$0xf] }
  0x23   :  { %v5095_v8 = vor.u32 %v7441_v6, %v5094_v5  ;;  %v5096_v10 = vld [vmem:[#allocation5 + $0x68] sm:$0xf0]  ;;  %v7432_v13 = vld [vmem:[#allocation5 + $0x1c] sm:$0xf0]  ;;  %v7428_v14 = vld [vmem:[#allocation5 + $0x4] sm:$0xf] }
  0x24   :  { %258 = vmatpush.bf16.msra.mxu0 %v5087_v3  ;;  %v5099_v12 = vor.u32 %v7437_v9, %v5096_v10  ;;  %v5056_v15 = vld [vmem:[#allocation5 + $0x20] sm:$0xf0]  ;;  %272 = vmatpush.bf16.msra.mxu1 %v5091_v7  ;;  %v5055_v16 = vor.u32 %v7432_v13, %v5054_v11  ;;  %v5062_v18 = vld [vmem:[#allocation5 + $0x8] sm:$0xf]  ;;  %v7429_v20 = vld [vmem:[#allocation5 + $0xc] sm:$0xf] }
  0x25   :  { %286 = vmatpush.bf16.msra.mxu2 %v5095_v8  ;;  %v5059_v17 = vor.u32 %v7428_v14, %v5056_v15  ;;  %v7433_v19 = vld [vmem:[#allocation5 + $0x24] sm:$0xf0]  ;;  %v5064_v22 = vld [vmem:[#allocation5 + $0x28] sm:$0xf0]  ;;  %v131_v23 = vld [vmem:[#allocation2] sm:$0xff]  ;;  %vm248_vm0 = vcmask 261120  }
  0x26   :  { %300 = vmatpush.bf16.msra.mxu3 %v5099_v12  ;;  %v5063_v21 = vor.u32 %v7433_v19, %v5062_v18  ;;  %v132_v24 = vld [vmem:[#allocation2 + $0x8] sm:$0xff]  ;;  %v5067_v25 = vor.u32 %v7429_v20, %v5064_v22  ;;  %v5102_v27 = vld [vmem:[#allocation5 + $0x50] sm:$0xf]  ;;  %v7438_v29 = vld [vmem:[#allocation5 + $0x54] sm:$0xf]  ;;  %s8256_s4 = smov [#allocation14]  }
  0x27   :  { %v8321_v26 = vpack.c.bf16 %v132_v24, %v131_v23  ;;  %v7442_v28 = vld [vmem:[#allocation5 + $0x6c] sm:$0xf0]  ;;  %v5104_v31 = vld [vmem:[#allocation5 + $0x70] sm:$0xf0]  ;;  %v5110_v32 = vld [vmem:[#allocation5 + $0x58] sm:$0xf] }
  0x28   :  { %259 = vmatpush.bf16.msra.mxu0 %v5055_v16  ;;  %v5103_v30 = vor.u32 %v7442_v28, %v5102_v27  ;;  %v7443_v33 = vld [vmem:[#allocation5 + $0x74] sm:$0xf0]  ;;  %273 = vmatpush.bf16.msra.mxu1 %v5059_v17  ;;  %v5107_v34 = vor.u32 %v7438_v29, %v5104_v31  ;;  %v7439_v36 = vld [vmem:[#allocation5 + $0x5c] sm:$0xf]  ;;  %v5070_v38 = vld [vmem:[#allocation5 + $0x10] sm:$0xf] }
  0x29   :  { %287 = vmatpush.bf16.msra.mxu2 %v5063_v21  ;;  %v5111_v35 = vor.u32 %v7443_v33, %v5110_v32  ;;  %v5112_v37 = vld [vmem:[#allocation5 + $0x78] sm:$0xf0]  ;;  %v7434_v40 = vld [vmem:[#allocation5 + $0x2c] sm:$0xf0]  ;;  %v7430_v41 = vld [vmem:[#allocation5 + $0x14] sm:$0xf] }
  0x2a   :  { %301 = vmatpush.bf16.msra.mxu3 %v5067_v25  ;;  %v5115_v39 = vor.u32 %v7439_v36, %v5112_v37  ;;  %v5072_v42 = vld [vmem:[#allocation5 + $0x30] sm:$0xf0]  ;;  %v5071_v43 = vor.u32 %v7434_v40, %v5070_v38  ;;  %v5078_v45 = vld [vmem:[#allocation5 + $0x18] sm:$0xf]  ;;  %v7431_v47 = vld [vmem:[#allocation5 + $0x1c] sm:$0xf] }
  0x2b   :  { %5116 = vmatmul.msk.bf16.vlgmr.msra.gmra.mxu0 %vm248_vm0, %v8321_v26  ;;  %v5075_v44 = vor.u32 %v7430_v41, %v5072_v42  ;;  %v7435_v46 = vld [vmem:[#allocation5 + $0x34] sm:$0xf0]  ;;  %5117 = vmatmul.msk.bf16.vlgmr.msra.gmra.mxu1 %vm248_vm0, %v8321_v26  ;;  %v5080_v48 = vld [vmem:[#allocation5 + $0x38] sm:$0xf0]  ;;  %v5350_v49 = vld [vmem:[#allocation8 + $0x1c0] sm:$0xf] }
  0x2c   :  { %314 = vmatpush.bf16.msrb.mxu0 %v5103_v30  ;;  %328 = vmatpush.bf16.msrb.mxu1 %v5107_v34  ;;  %v7504_v50 = vld [vmem:[#allocation8 + $0x1dc] sm:$0xf0]  ;;  %v5079_v51 = vor.u32 %v7435_v46, %v5078_v45  ;;  %v5083_v56 = vor.u32 %v7431_v47, %v5080_v48  ;;  %s5034_s6 = sshll.u32 %s8256_s4, 4  ;;  %s5036_s1 = sshll.u32 %s8664_s7, 4  ;;  %s5035_s6 = int_to_ptr.vmem [resolvable:$true] %s5034_s6  ;;  %s5037_s1 = int_to_ptr.hbm [resolvable:$true] %s5036_s1 }
  0x2d   :  { %5118 = vmatmul.msk.bf16.vlgmr.msra.gmra.mxu2 %vm248_vm0, %v8321_v26  ;;  %5119 = vmatmul.msk.bf16.vlgmr.msra.gmra.mxu3 %vm248_vm0, %v8321_v26  ;;  %v5351_v52 = vor.u32 %v7504_v50, %v5350_v49  ;;  %v5606_v53 = vld [vmem:[#allocation8 + $0x3c0] sm:$0xf] }
  0x2e   :  { %342 = vmatpush.bf16.msrb.mxu2 %v5111_v35  ;;  %v7568_v54 = vld [vmem:[#allocation8 + $0x3dc] sm:$0xf0]  ;;  %356 = vmatpush.bf16.msrb.mxu3 %v5115_v39 }
  0x2f   :  { %v5318_v55 = vld [vmem:[#allocation8 + $0x180] sm:$0xf]  ;;  %v5607_v57 = vor.u32 %v7568_v54, %v5606_v53 }
  0x30   :  { %315 = vmatpush.bf16.msrb.mxu0 %v5071_v43  ;;  %v7496_v58 = vld [vmem:[#allocation8 + $0x19c] sm:$0xf0]  ;;  %329 = vmatpush.bf16.msrb.mxu1 %v5075_v44 }
  0x31   :  { %v5574_v59 = vld [vmem:[#allocation8 + $0x380] sm:$0xf]  ;;  %v5319_v61 = vor.u32 %v7496_v58, %v5318_v55 }
  0x32   :  { %v7560_v60 = vld [vmem:[#allocation8 + $0x39c] sm:$0xf0]  ;;  %343 = vmatpush.bf16.msrb.mxu2 %v5079_v51  ;;  %357 = vmatpush.bf16.msrb.mxu3 %v5083_v56 }
  0x33   :  { %v5862_v62 = vld [vmem:[#allocation8 + $0x5c0] sm:$0xf]  ;;  %v5575_v1 = vor.u32 %v7560_v60, %v5574_v59 }
  0x34   :  { %3478 = vmatpush.bf16.msra.mxu0 %v5351_v52  ;;  %v7632_v63 = vld [vmem:[#allocation8 + $0x5dc] sm:$0xf0]  ;;  %3492 = vmatpush.bf16.msra.mxu1 %v5607_v57 }
  0x35   :  { %v6118_v0 = vld [vmem:[#allocation8 + $0x7c0] sm:$0xf]  ;;  %v5863_v2 = vor.u32 %v7632_v63, %v5862_v62 }
  0x36   :  { %v7696_v3 = vld [vmem:[#allocation8 + $0x7dc] sm:$0xf0] }
  0x37   :  { %v5286_v4 = vld [vmem:[#allocation8 + $0x140] sm:$0xf]  ;;  %v6119_v6 = vor.u32 %v7696_v3, %v6118_v0  ;;  %3506 = vmatpush.bf16.msra.mxu2 %v5863_v2 }
  0x38   :  { %v7488_v5 = vld [vmem:[#allocation8 + $0x15c] sm:$0xf0]  ;;  %3479 = vmatpush.bf16.msra.mxu0 %v5319_v61  ;;  %3493 = vmatpush.bf16.msra.mxu1 %v5575_v1 }
  0x39   :  { %v5542_v7 = vld [vmem:[#allocation8 + $0x340] sm:$0xf]  ;;  %3520 = vmatpush.bf16.msra.mxu3 %v6119_v6  ;;  %v5287_v13 = vor.u32 %v7488_v5, %v5286_v4 }
  0x3a   :  { %v7552_v8 = vld [vmem:[#allocation8 + $0x35c] sm:$0xf0] }
  0x3b   :  { %v5830_v9 = vld [vmem:[#allocation8 + $0x580] sm:$0xf]  ;;  %v5543_v16 = vor.u32 %v7552_v8, %v5542_v7  ;;  %5120 = vmatmul.msk.bf16.vlgmr.msrb.gmra.mxu0 %vm248_vm0, %v8321_v26  ;;  %5121 = vmatmul.msk.bf16.vlgmr.msrb.gmra.mxu1 %vm248_vm0, %v8321_v26 }
  0x3c   :  { %v7624_v10 = vld [vmem:[#allocation8 + $0x59c] sm:$0xf0]  ;;  %3480 = vmatpush.bf16.msra.mxu0 %v5287_v13 }
  0x3d   :  { %v6086_v11 = vld [vmem:[#allocation8 + $0x780] sm:$0xf]  ;;  %v5831_v14 = vor.u32 %v7624_v10, %v5830_v9  ;;  %3494 = vmatpush.bf16.msra.mxu1 %v5543_v16  ;;  %5122 = vmatmul.msk.bf16.vlgmr.msrb.gmra.mxu2 %vm248_vm0, %v8321_v26 }
  0x3e   :  { %v7688_v12 = vld [vmem:[#allocation8 + $0x79c] sm:$0xf0]  ;;  %5123 = vmatmul.msk.bf16.vlgmr.msrb.gmra.mxu3 %vm248_vm0, %v8321_v26 }
  0x3f   :  { %v6087_v15 = vor.u32 %v7688_v12, %v6086_v11  ;;  %v5798_v17 = vld [vmem:[#allocation8 + $0x540] sm:$0xf]  ;;  %3507 = vmatpush.bf16.msra.mxu2 %v5831_v14 }
  0x40   :  { %v7616_v18 = vld [vmem:[#allocation8 + $0x55c] sm:$0xf0] }
  0x41   :  { %v6054_v19 = vld [vmem:[#allocation8 + $0x740] sm:$0xf]  ;;  %v5799_v24 = vor.u32 %v7616_v18, %v5798_v17  ;;  %3521 = vmatpush.bf16.msra.mxu3 %v6087_v15 }
  0x42   :  { %v7680_v20 = vld [vmem:[#allocation8 + $0x75c] sm:$0xf0] }
  0x43   :  { %v5254_v21 = vld [vmem:[#allocation8 + $0x100] sm:$0xf]  ;;  %v6055_v27 = vor.u32 %v7680_v20, %v6054_v19  ;;  %3508 = vmatpush.bf16.msra.mxu2 %v5799_v24 }
  0x44   :  { %v7480_v22 = vld [vmem:[#allocation8 + $0x11c] sm:$0xf0] }
  0x45   :  { %v5510_v23 = vld [vmem:[#allocation8 + $0x300] sm:$0xf]  ;;  %v5255_v32 = vor.u32 %v7480_v22, %v5254_v21  ;;  %3522 = vmatpush.bf16.msra.mxu3 %v6055_v27 }
  0x46   :  { %v7544_v25 = vld [vmem:[#allocation8 + $0x31c] sm:$0xf0] }
  0x47   :  { %v5766_v28 = vld [vmem:[#allocation8 + $0x500] sm:$0xf]  ;;  %v5511_v33 = vor.u32 %v7544_v25, %v5510_v23  ;;  %3481 = vmatpush.bf16.msra.mxu0 %v5255_v32 }
  0x48   :  { %v7608_v29 = vld [vmem:[#allocation8 + $0x51c] sm:$0xf0] }
  0x49   :  { %v6022_v30 = vld [vmem:[#allocation8 + $0x700] sm:$0xf]  ;;  %v5767_v37 = vor.u32 %v7608_v29, %v5766_v28  ;;  %3495 = vmatpush.bf16.msra.mxu1 %v5511_v33 }
  0x4a   :  { %v7672_v31 = vld [vmem:[#allocation8 + $0x71c] sm:$0xf0] }
  0x4b   :  { %v5222_v34 = vld [vmem:[#allocation8 + $0xc0] sm:$0xf]  ;;  %v6023_v39 = vor.u32 %v7672_v31, %v6022_v30  ;;  %3509 = vmatpush.bf16.msra.mxu2 %v5767_v37 }
  0x4c   :  { %v7472_v35 = vld [vmem:[#allocation8 + $0xdc] sm:$0xf0] }
  0x4d   :  { %v5478_v36 = vld [vmem:[#allocation8 + $0x2c0] sm:$0xf]  ;;  %v5223_v44 = vor.u32 %v7472_v35, %v5222_v34  ;;  %3523 = vmatpush.bf16.msra.mxu3 %v6023_v39 }
  0x4e   :  { %v7536_v38 = vld [vmem:[#allocation8 + $0x2dc] sm:$0xf0] }
  0x4f   :  { %v5734_v40 = vld [vmem:[#allocation8 + $0x4c0] sm:$0xf]  ;;  %v5479_v45 = vor.u32 %v7536_v38, %v5478_v36  ;;  %3482 = vmatpush.bf16.msra.mxu0 %v5223_v44 }
  0x50   :  { %v7600_v41 = vld [vmem:[#allocation8 + $0x4dc] sm:$0xf0] }
  0x51   :  { %v5990_v42 = vld [vmem:[#allocation8 + $0x6c0] sm:$0xf]  ;;  %v5735_v49 = vor.u32 %v7600_v41, %v5734_v40  ;;  %3496 = vmatpush.bf16.msra.mxu1 %v5479_v45 }
  0x52   :  { %v7664_v43 = vld [vmem:[#allocation8 + $0x6dc] sm:$0xf0] }
  0x53   :  { %v5190_v46 = vld [vmem:[#allocation8 + $0x80] sm:$0xf]  ;;  %v5991_v51 = vor.u32 %v7664_v43, %v5990_v42  ;;  %3510 = vmatpush.bf16.msra.mxu2 %v5735_v49 }
  0x54   :  { %v7464_v47 = vld [vmem:[#allocation8 + $0x9c] sm:$0xf0] }
  0x55   :  { %v5446_v48 = vld [vmem:[#allocation8 + $0x280] sm:$0xf]  ;;  %v5191_v56 = vor.u32 %v7464_v47, %v5190_v46  ;;  %3524 = vmatpush.bf16.msra.mxu3 %v5991_v51 }
  0x56   :  { %v7528_v50 = vld [vmem:[#allocation8 + $0x29c] sm:$0xf0] }
  0x57   :  { %v5702_v52 = vld [vmem:[#allocation8 + $0x480] sm:$0xf]  ;;  %v5447_v26 = vor.u32 %v7528_v50, %v5446_v48  ;;  %3483 = vmatpush.bf16.msra.mxu0 %v5191_v56 }
  0x58   :  { %v7592_v53 = vld [vmem:[#allocation8 + $0x49c] sm:$0xf0] }
  0x59   :  { %v5958_v54 = vld [vmem:[#allocation8 + $0x680] sm:$0xf]  ;;  %v5703_v60 = vor.u32 %v7592_v53, %v5702_v52  ;;  %3497 = vmatpush.bf16.msra.mxu1 %v5447_v26 }
  0x5a   :  { %v7656_v55 = vld [vmem:[#allocation8 + $0x69c] sm:$0xf0] }
  0x5b   :  { %v5158_v57 = vld [vmem:[#allocation8 + $0x40] sm:$0xf]  ;;  %v5959_v62 = vor.u32 %v7656_v55, %v5958_v54  ;;  %3511 = vmatpush.bf16.msra.mxu2 %v5703_v60 }
  0x5c   :  { %v7456_v58 = vld [vmem:[#allocation8 + $0x5c] sm:$0xf0] }
  0x5d   :  { %v5414_v59 = vld [vmem:[#allocation8 + $0x240] sm:$0xf]  ;;  %v5159_v3 = vor.u32 %v7456_v58, %v5158_v57  ;;  %3525 = vmatpush.bf16.msra.mxu3 %v5959_v62 }
  0x5e   :  { %v7520_v61 = vld [vmem:[#allocation8 + $0x25c] sm:$0xf0] }
  0x5f   :  { %v5670_v63 = vld [vmem:[#allocation8 + $0x440] sm:$0xf]  ;;  %v5415_v6 = vor.u32 %v7520_v61, %v5414_v59  ;;  %3484 = vmatpush.bf16.msra.mxu0 %v5159_v3 }
  0x60   :  { %v7584_v0 = vld [vmem:[#allocation8 + $0x45c] sm:$0xf0] }
  0x61   :  { %v5926_v1 = vld [vmem:[#allocation8 + $0x640] sm:$0xf]  ;;  %v5671_v10 = vor.u32 %v7584_v0, %v5670_v63  ;;  %3498 = vmatpush.bf16.msra.mxu1 %v5415_v6 }
  0x62   :  { %v7648_v2 = vld [vmem:[#allocation8 + $0x65c] sm:$0xf0] }
  0x63   :  { %v5126_v4 = vld [vmem:[#allocation8] sm:$0xf]  ;;  %v5927_v14 = vor.u32 %v7648_v2, %v5926_v1  ;;  %3512 = vmatpush.bf16.msra.mxu2 %v5671_v10 }
  0x64   :  { %v7448_v5 = vld [vmem:[#allocation8 + $0x1c] sm:$0xf0] }
  0x65   :  { %v5382_v7 = vld [vmem:[#allocation8 + $0x200] sm:$0xf]  ;;  %v5127_v18 = vor.u32 %v7448_v5, %v5126_v4  ;;  %3526 = vmatpush.bf16.msra.mxu3 %v5927_v14 }
  0x66   :  { %v7512_v8 = vld [vmem:[#allocation8 + $0x21c] sm:$0xf0] }
  0x67   :  { %v6374_v9 = vld [vmem:[#allocation8 + $0x9c0] sm:$0xf]  ;;  %v5383_v22 = vor.u32 %v7512_v8, %v5382_v7  ;;  %3485 = vmatpush.bf16.msra.mxu0 %v5127_v18 }
  0x68   :  { %v7760_v11 = vld [vmem:[#allocation8 + $0x9dc] sm:$0xf0] }
  0x69   :  { %v6630_v12 = vld [vmem:[#allocation8 + $0xbc0] sm:$0xf]  ;;  %v6375_v23 = vor.u32 %v7760_v11, %v6374_v9  ;;  %3499 = vmatpush.bf16.msra.mxu1 %v5383_v22 }
  0x6a   :  { %v7824_v13 = vld [vmem:[#allocation8 + $0xbdc] sm:$0xf0] }
  0x6b   :  { %v5638_v15 = vld [vmem:[#allocation8 + $0x400] sm:$0xf]  ;;  %v6631_v27 = vor.u32 %v7824_v13, %v6630_v12  ;;  %3534 = vmatpush.bf16.msrb.mxu0 %v6375_v23 }
  0x6c   :  { %v7576_v16 = vld [vmem:[#allocation8 + $0x41c] sm:$0xf0] }
  0x6d   :  { %v5894_v17 = vld [vmem:[#allocation8 + $0x600] sm:$0xf]  ;;  %v5639_v30 = vor.u32 %v7576_v16, %v5638_v15  ;;  %3548 = vmatpush.bf16.msrb.mxu1 %v6631_v27 }
  0x6e   :  { %v7640_v19 = vld [vmem:[#allocation8 + $0x61c] sm:$0xf0] }
  0x6f   :  { %v6886_v20 = vld [vmem:[#allocation8 + $0xdc0] sm:$0xf]  ;;  %v5895_v33 = vor.u32 %v7640_v19, %v5894_v17  ;;  %3513 = vmatpush.bf16.msra.mxu2 %v5639_v30 }
  0x70   :  { %v7888_v21 = vld [vmem:[#allocation8 + $0xddc] sm:$0xf0] }
  0x71   :  { %v7142_v24 = vld [vmem:[#allocation8 + $0xfc0] sm:$0xf]  ;;  %v6887_v34 = vor.u32 %v7888_v21, %v6886_v20  ;;  %3527 = vmatpush.bf16.msra.mxu3 %v5895_v33 }
  0x72   :  { %v7952_v25 = vld [vmem:[#allocation8 + $0xfdc] sm:$0xf0] }
  0x73   :  { %v6342_v28 = vld [vmem:[#allocation8 + $0x980] sm:$0xf]  ;;  %v7143_v35 = vor.u32 %v7952_v25, %v7142_v24  ;;  %3562 = vmatpush.bf16.msrb.mxu2 %v6887_v34 }
  0x74   :  { %v7752_v29 = vld [vmem:[#allocation8 + $0x99c] sm:$0xf0] }
  0x75   :  { %v6598_v31 = vld [vmem:[#allocation8 + $0xb80] sm:$0xf]  ;;  %v6343_v38 = vor.u32 %v7752_v29, %v6342_v28  ;;  %3576 = vmatpush.bf16.msrb.mxu3 %v7143_v35 }
  0x76   :  { %v7816_v32 = vld [vmem:[#allocation8 + $0xb9c] sm:$0xf0] }
  0x77   :  { %v6854_v36 = vld [vmem:[#allocation8 + $0xd80] sm:$0xf]  ;;  %v6599_v41 = vor.u32 %v7816_v32, %v6598_v31  ;;  %3535 = vmatpush.bf16.msrb.mxu0 %v6343_v38 }
  0x78   :  { %v7880_v37 = vld [vmem:[#allocation8 + $0xd9c] sm:$0xf0] }
  0x79   :  { %v7110_v39 = vld [vmem:[#allocation8 + $0xf80] sm:$0xf]  ;;  %v6855_v46 = vor.u32 %v7880_v37, %v6854_v36  ;;  %3549 = vmatpush.bf16.msrb.mxu1 %v6599_v41 }
  0x7a   :  { %v7944_v40 = vld [vmem:[#allocation8 + $0xf9c] sm:$0xf0] }
  0x7b   :  { %v6310_v42 = vld [vmem:[#allocation8 + $0x940] sm:$0xf]  ;;  %v7111_v47 = vor.u32 %v7944_v40, %v7110_v39  ;;  %3563 = vmatpush.bf16.msrb.mxu2 %v6855_v46 }
  0x7c   :  { %v7744_v43 = vld [vmem:[#allocation8 + $0x95c] sm:$0xf0] }
  0x7d   :  { %v6566_v44 = vld [vmem:[#allocation8 + $0xb40] sm:$0xf]  ;;  %v6311_v48 = vor.u32 %v7744_v43, %v6310_v42  ;;  %3577 = vmatpush.bf16.msrb.mxu3 %v7111_v47 }
  0x7e   :  { %v7808_v45 = vld [vmem:[#allocation8 + $0xb5c] sm:$0xf0] }
  0x7f   :  { %v6567_v49 = vor.u32 %v7808_v45, %v6566_v44  ;;  %v6278_v50 = vld [vmem:[#allocation8 + $0x900] sm:$0xf]  ;;  %3536 = vmatpush.bf16.msrb.mxu0 %v6311_v48 }
  0x80   :  { %v7736_v51 = vld [vmem:[#allocation8 + $0x91c] sm:$0xf0] }
  0x81   :  { %v6534_v52 = vld [vmem:[#allocation8 + $0xb00] sm:$0xf]  ;;  %v6279_v54 = vor.u32 %v7736_v51, %v6278_v50  ;;  %3550 = vmatpush.bf16.msrb.mxu1 %v6567_v49 }
  0x82   :  { %v7800_v53 = vld [vmem:[#allocation8 + $0xb1c] sm:$0xf0] }
  0x83   :  { %v6535_v55 = vor.u32 %v7800_v53, %v6534_v52  ;;  %3537 = vmatpush.bf16.msrb.mxu0 %v6279_v54  ;;  %v6822_v56 = vld [vmem:[#allocation8 + $0xd40] sm:$0xf]  ;;  %v8339_v52 = vld [vmem:[#allocation7] sm:$0xff] }
  0x84   :  { %v7872_v26 = vld [vmem:[#allocation8 + $0xd5c] sm:$0xf0]  ;;  %v152_v54 = vperm.slane %v8339_v52, 0 }
  0x85   :  { %3551 = vmatpush.bf16.msrb.mxu1 %v6535_v55  ;;  %v7078_v57 = vld [vmem:[#allocation8 + $0xf40] sm:$0xf]  ;;  %v6823_v58 = vor.u32 %v7872_v26, %v6822_v56  ;;  %v153_v56 = vperm.slane %v8339_v52, 1 }
  0x86   :  { %v7936_v59 = vld [vmem:[#allocation8 + $0xf5c] sm:$0xf0] }
  0x87   :  { %v7079_v60 = vor.u32 %v7936_v59, %v7078_v57  ;;  %v6246_v61 = vld [vmem:[#allocation8 + $0x8c0] sm:$0xf]  ;;  %3564 = vmatpush.bf16.msrb.mxu2 %v6823_v58 }
  0x88   :  { %v7728_v62 = vld [vmem:[#allocation8 + $0x8dc] sm:$0xf0] }
  0x89   :  { %v6502_v63 = vld [vmem:[#allocation8 + $0xac0] sm:$0xf]  ;;  %v6247_v0 = vor.u32 %v7728_v62, %v6246_v61  ;;  %3578 = vmatpush.bf16.msrb.mxu3 %v7079_v60 }
  0x8a   :  { %v7792_v1 = vld [vmem:[#allocation8 + $0xadc] sm:$0xf0] }
  0x8b   :  { %v6503_v2 = vor.u32 %v7792_v1, %v6502_v63  ;;  %v6790_v3 = vld [vmem:[#allocation8 + $0xd00] sm:$0xf]  ;;  %3538 = vmatpush.bf16.msrb.mxu0 %v6247_v0  ;;  %v7500_v0 = vld [vmem:[#allocation8 + $0x1c4] sm:$0xf] }
  0x8c   :  { %v7864_v4 = vld [vmem:[#allocation8 + $0xd1c] sm:$0xf0]  ;;  %v5352_v1 = vld [vmem:[#allocation8 + $0x1e0] sm:$0xf0] }
  0x8d   :  { %v6791_v5 = vor.u32 %v7864_v4, %v6790_v3  ;;  %v7046_v6 = vld [vmem:[#allocation8 + $0xf00] sm:$0xf]  ;;  %3552 = vmatpush.bf16.msrb.mxu1 %v6503_v2  ;;  %v154_v3 = vperm.slane %v8339_v52, 2 }
  0x8e   :  { %v7928_v7 = vld [vmem:[#allocation8 + $0xf1c] sm:$0xf0] }
  0x8f   :  { %v7047_v8 = vor.u32 %v7928_v7, %v7046_v6  ;;  %v6214_v9 = vld [vmem:[#allocation8 + $0x880] sm:$0xf]  ;;  %3565 = vmatpush.bf16.msrb.mxu2 %v6791_v5  ;;  %v7564_v5 = vld [vmem:[#allocation8 + $0x3c4] sm:$0xf]  ;;  %v155_v7 = vperm.slane %v8339_v52, 3 }
  0x90   :  { %v7720_v10 = vld [vmem:[#allocation8 + $0x89c] sm:$0xf0]  ;;  %v5608_v6 = vld [vmem:[#allocation8 + $0x3e0] sm:$0xf0] }
  0x91   :  { %v6470_v11 = vld [vmem:[#allocation8 + $0xa80] sm:$0xf]  ;;  %v6215_v12 = vor.u32 %v7720_v10, %v6214_v9  ;;  %3579 = vmatpush.bf16.msrb.mxu3 %v7047_v8  ;;  %v5355_v10 = vor.u32 %v7500_v0, %v5352_v1 }
  0x92   :  { %v7784_v13 = vld [vmem:[#allocation8 + $0xa9c] sm:$0xf0] }
  0x93   :  { %v6471_v14 = vor.u32 %v7784_v13, %v6470_v11  ;;  %v6758_v15 = vld [vmem:[#allocation8 + $0xcc0] sm:$0xf]  ;;  %3539 = vmatpush.bf16.msrb.mxu0 %v6215_v12  ;;  %v5611_v12 = vor.u32 %v7564_v5, %v5608_v6  ;;  %v7492_v13 = vld [vmem:[#allocation8 + $0x184] sm:$0xf] }
  0x94   :  { %v7856_v16 = vld [vmem:[#allocation8 + $0xcdc] sm:$0xf0]  ;;  %v6056_v5 = vld [vmem:[#allocation8 + $0x760] sm:$0xf0] }
  0x95   :  { %v7014_v17 = vld [vmem:[#allocation8 + $0xec0] sm:$0xf]  ;;  %v6759_v18 = vor.u32 %v7856_v16, %v6758_v15  ;;  %3553 = vmatpush.bf16.msrb.mxu1 %v6471_v14  ;;  %v5320_v14 = vld [vmem:[#allocation8 + $0x1a0] sm:$0xf0] }
  0x96   :  { %v7920_v19 = vld [vmem:[#allocation8 + $0xedc] sm:$0xf0] }
  0x97   :  { %v7015_v20 = vor.u32 %v7920_v19, %v7014_v17  ;;  %v6182_v21 = vld [vmem:[#allocation8 + $0x840] sm:$0xf]  ;;  %3566 = vmatpush.bf16.msrb.mxu2 %v6759_v18  ;;  %v7556_v17 = vld [vmem:[#allocation8 + $0x384] sm:$0xf] }
  0x98   :  { %v7712_v22 = vld [vmem:[#allocation8 + $0x85c] sm:$0xf0]  ;;  %v5576_v18 = vld [vmem:[#allocation8 + $0x3a0] sm:$0xf0] }
  0x99   :  { %v6183_v23 = vor.u32 %v7712_v22, %v6182_v21  ;;  %v6438_v24 = vld [vmem:[#allocation8 + $0xa40] sm:$0xf]  ;;  %3580 = vmatpush.bf16.msrb.mxu3 %v7015_v20  ;;  %v7628_v21 = vld [vmem:[#allocation8 + $0x5c4] sm:$0xf] }
  0x9a   :  { %v7776_v25 = vld [vmem:[#allocation8 + $0xa5c] sm:$0xf0] }
  0x9b   :  { %v6439_v27 = vor.u32 %v7776_v25, %v6438_v24  ;;  %v6726_v28 = vld [vmem:[#allocation8 + $0xc80] sm:$0xf]  ;;  %3540 = vmatpush.bf16.msrb.mxu0 %v6183_v23  ;;  %v156_v24 = vperm.slane %v8339_v52, 4 }
  0x9c   :  { %v7848_v29 = vld [vmem:[#allocation8 + $0xc9c] sm:$0xf0] }
  0x9d   :  { %v6982_v30 = vld [vmem:[#allocation8 + $0xe80] sm:$0xf]  ;;  %v6727_v31 = vor.u32 %v7848_v29, %v6726_v28  ;;  %3554 = vmatpush.bf16.msrb.mxu1 %v6439_v27  ;;  %v157_v27 = vperm.slane %v8339_v52, 5  ;;  %v5323_v28 = vor.u32 %v7492_v13, %v5320_v14  ;;  %v5864_v29 = vld [vmem:[#allocation8 + $0x5e0] sm:$0xf0] }
  0x9e   :  { %v7912_v32 = vld [vmem:[#allocation8 + $0xe9c] sm:$0xf0]  ;;  %v5224_v13 = vld [vmem:[#allocation8 + $0xe0] sm:$0xf0] }
  0x9f   :  { %v6983_v33 = vor.u32 %v7912_v32, %v6982_v30  ;;  %v6150_v34 = vld [vmem:[#allocation8 + $0x800] sm:$0xf]  ;;  %3567 = vmatpush.bf16.msrb.mxu2 %v6727_v31  ;;  %v7692_v30 = vld [vmem:[#allocation8 + $0x7c4] sm:$0xf] }
  0xa0   :  { %v7704_v35 = vld [vmem:[#allocation8 + $0x81c] sm:$0xf0] }
  0xa1   :  { %v6406_v36 = vld [vmem:[#allocation8 + $0xa00] sm:$0xf]  ;;  %v6151_v37 = vor.u32 %v7704_v35, %v6150_v34  ;;  %3581 = vmatpush.bf16.msrb.mxu3 %v6983_v33  ;;  %v5579_v33 = vor.u32 %v7556_v17, %v5576_v18  ;;  %v6120_v34 = vld [vmem:[#allocation8 + $0x7e0] sm:$0xf0] }
  0xa2   :  { %v7768_v38 = vld [vmem:[#allocation8 + $0xa1c] sm:$0xf0]  ;;  %v7484_v35 = vld [vmem:[#allocation8 + $0x144] sm:$0xf] }
  0xa3   :  { %v6407_v39 = vor.u32 %v7768_v38, %v6406_v36  ;;  %v6694_v40 = vld [vmem:[#allocation8 + $0xc40] sm:$0xf]  ;;  %3541 = vmatpush.bf16.msrb.mxu0 %v6151_v37  ;;  %v5288_v36 = vld [vmem:[#allocation8 + $0x160] sm:$0xf0] }
  0xa4   :  { %v7840_v41 = vld [vmem:[#allocation8 + $0xc5c] sm:$0xf0]  ;;  %v7532_v17 = vld [vmem:[#allocation8 + $0x2c4] sm:$0xf] }
  0xa5   :  { %v6950_v42 = vld [vmem:[#allocation8 + $0xe40] sm:$0xf]  ;;  %3555 = vmatpush.bf16.msrb.mxu1 %v6407_v39  ;;  %v6695_v44 = vor.u32 %v7840_v41, %v6694_v40  ;;  %v7548_v39 = vld [vmem:[#allocation8 + $0x344] sm:$0xf] }
  0xa6   :  { %v7904_v43 = vld [vmem:[#allocation8 + $0xe5c] sm:$0xf0]  ;;  %v5544_v40 = vld [vmem:[#allocation8 + $0x360] sm:$0xf0] }
  0xa7   :  { %v6951_v45 = vor.u32 %v7904_v43, %v6950_v42  ;;  %3568 = vmatpush.bf16.msrb.mxu2 %v6695_v44  ;;  %v6662_v46 = vld [vmem:[#allocation8 + $0xc00] sm:$0xf]  ;;  %v5867_v43 = vor.u32 %v7628_v21, %v5864_v29  ;;  %v5480_v18 = vld [vmem:[#allocation8 + $0x2e0] sm:$0xf0] }
  0xa8   :  { %v7832_v47 = vld [vmem:[#allocation8 + $0xc1c] sm:$0xf0]  ;;  %v261_v53 = vpop.f32.mrf.mxu0  ;;  %v275_v55 = vpop.f32.mrf.mxu1 }
  0xa9   :  { %3582 = vmatpush.bf16.msrb.mxu3 %v6951_v45  ;;  %v6663_v48 = vor.u32 %v7832_v47, %v6662_v46  ;;  %v6918_v49 = vld [vmem:[#allocation8 + $0xe00] sm:$0xf]  ;;  %v262_v26 = vadd.f32 %v261_v53, %v152_v54  ;;  %v276_v57 = vadd.f32 %v275_v55, %v153_v56  ;;  %v6123_v45 = vor.u32 %v7692_v30, %v6120_v34  ;;  %v7620_v47 = vld [vmem:[#allocation8 + $0x584] sm:$0xf] }
  0xaa   :  { %v7896_v50 = vld [vmem:[#allocation8 + $0xe1c] sm:$0xf0]  ;;  %v5291_v46 = vor.u32 %v7484_v35, %v5288_v36  ;;  %v5547_v53 = vor.u32 %v7548_v39, %v5544_v40  ;;  %v7476_v55 = vld [vmem:[#allocation8 + $0x104] sm:$0xf]  ;;  %v5483_v30 = vor.u32 %v7532_v17, %v5480_v18 }
  0xab   :  { %v6919_v51 = vor.u32 %v7896_v50, %v6918_v49  ;;  %3569 = vmatpush.bf16.msrb.mxu2 %v6663_v48  ;;  %v364_v61 = vmax.f32 %v262_v26, 0.0  ;;  %v365_v2 = vmax.f32 %v276_v57, 0.0  ;;  %v5832_v48 = vld [vmem:[#allocation8 + $0x5a0] sm:$0xf0] }
  0xac   :  { %v7684_v49 = vld [vmem:[#allocation8 + $0x784] sm:$0xf] }
  0xad   :  { %3583 = vmatpush.bf16.msrb.mxu3 %v6919_v51  ;;  %v7540_v57 = vld [vmem:[#allocation8 + $0x304] sm:$0xf] }
  0xae   :  { %v5192_v34 = vld [vmem:[#allocation8 + $0xa0] sm:$0xf0] }
  0xaf   :  { %v7524_v35 = vld [vmem:[#allocation8 + $0x284] sm:$0xf] }
  0xb0   :  { %v289_v58 = vpop.f32.mrf.mxu2  ;;  %v303_v59 = vpop.f32.mrf.mxu3  ;;  %v5448_v36 = vld [vmem:[#allocation8 + $0x2a0] sm:$0xf0] }
  0xb1   :  { %v263_v60 = vpop.f32.mrf.mxu0  ;;  %v277_v63 = vpop.f32.mrf.mxu1  ;;  %v290_v15 = vadd.f32 %v289_v58, %v154_v3  ;;  %v304_v19 = vadd.f32 %v303_v59, %v155_v7  ;;  %v5512_v58 = vld [vmem:[#allocation8 + $0x320] sm:$0xf0]  ;;  %v158_v59 = vperm.slane %v8339_v52, 6 }
  0xb2   :  { %v264_v62 = vadd.f32 %v263_v60, %v152_v54  ;;  %v278_v4 = vadd.f32 %v277_v63, %v153_v56  ;;  %v6088_v54 = vld [vmem:[#allocation8 + $0x7a0] sm:$0xf0] }
  0xb3   :  { %v366_v37 = vmax.f32 %v290_v15, 0.0  ;;  %v367_v41 = vmax.f32 %v304_v19, 0.0  ;;  %v5256_v56 = vld [vmem:[#allocation8 + $0x120] sm:$0xf0]  ;;  %v6091_v1 = vor.u32 %v7684_v49, %v6088_v54 }
  0xb4   :  { %v372_v8 = vmax.f32 %v264_v62, 0.0  ;;  %v373_v9 = vmax.f32 %v278_v4, 0.0  ;;  %v7612_v62 = vld [vmem:[#allocation8 + $0x544] sm:$0xf] }
  0xb5   :  { %v7676_v4 = vld [vmem:[#allocation8 + $0x744] sm:$0xf] }
  0xb6   :  { %v8345_v11 = vpack.c.bf16 %v372_v8, %v364_v61  ;;  %v8347_v16 = vpack.c.bf16 %v373_v9, %v365_v2  ;;  %v5835_v61 = vor.u32 %v7620_v47, %v5832_v48  ;;  %v5259_v2 = vor.u32 %v7476_v55, %v5256_v56  ;;  %v7596_v39 = vld [vmem:[#allocation8 + $0x4c4] sm:$0xf] }
  0xb7   :  { %v5736_v40 = vld [vmem:[#allocation8 + $0x4e0] sm:$0xf0] }
  0xb8   :  { %v291_v20 = vpop.f32.mrf.mxu2  ;;  %3486 = vmatmul.bf16.vlgmr.msra.gmra.mxu0 %v8345_v11  ;;  %v305_v23 = vpop.f32.mrf.mxu3  ;;  %3500 = vmatmul.bf16.vlgmr.msra.gmra.mxu1 %v8347_v16  ;;  %v5992_v47 = vld [vmem:[#allocation8 + $0x6e0] sm:$0xf0] }
  0xb9   :  { %v292_v22 = vadd.f32 %v291_v20, %v154_v3  ;;  %3590 = vmatpush.bf16.msra.mxu0 %v5355_v10  ;;  %v317_v25 = vpop.f32.mrf.mxu0  ;;  %v306_v31 = vadd.f32 %v305_v23, %v155_v7  ;;  %3604 = vmatpush.bf16.msra.mxu1 %v5611_v12  ;;  %v331_v32 = vpop.f32.mrf.mxu1  ;;  %v5800_v3 = vld [vmem:[#allocation8 + $0x560] sm:$0xf0]  ;;  %v159_v7 = vperm.slane %v8339_v52, 7  ;;  %v5515_v10 = vor.u32 %v7540_v57, %v5512_v58 }
  0xba   :  { %v318_v51 = vadd.f32 %v317_v25, %v156_v24  ;;  %v332_v26 = vadd.f32 %v331_v32, %v157_v27  ;;  %v7468_v12 = vld [vmem:[#allocation8 + $0xc4] sm:$0xf]  ;;  %v5803_v20 = vor.u32 %v7612_v62, %v5800_v3  ;;  %v6059_v23 = vor.u32 %v7676_v4, %v6056_v5 }
  0xbb   :  { %v374_v38 = vmax.f32 %v292_v22, 0.0  ;;  %v375_v42 = vmax.f32 %v306_v31, 0.0  ;;  %v7604_v25 = vld [vmem:[#allocation8 + $0x504] sm:$0xf]  ;;  %v5227_v29 = vor.u32 %v7468_v12, %v5224_v13 }
  0xbc   :  { %v368_v6 = vmax.f32 %v318_v51, 0.0  ;;  %v369_v14 = vmax.f32 %v332_v26, 0.0  ;;  %v5768_v52 = vld [vmem:[#allocation8 + $0x520] sm:$0xf0] }
  0xbd   :  { %v8353_v44 = vpack.c.bf16 %v374_v38, %v366_v37  ;;  %3591 = vmatpush.bf16.msra.mxu0 %v5323_v28  ;;  %v8355_v50 = vpack.c.bf16 %v375_v42, %v367_v41  ;;  %3605 = vmatpush.bf16.msra.mxu1 %v5579_v33  ;;  %v7668_v31 = vld [vmem:[#allocation8 + $0x704] sm:$0xf]  ;;  %v5771_v38 = vor.u32 %v7604_v25, %v5768_v52 }
  0xbe   :  { %v7460_v32 = vld [vmem:[#allocation8 + $0x84] sm:$0xf] }
  0xbf   :  { %3514 = vmatmul.bf16.vlgmr.msra.gmra.mxu2 %v8353_v44  ;;  %3528 = vmatmul.bf16.vlgmr.msra.gmra.mxu3 %v8355_v50  ;;  %v5195_v51 = vor.u32 %v7460_v32, %v5192_v34  ;;  %v7452_v54 = vld [vmem:[#allocation8 + $0x44] sm:$0xf] }
  0xc0   :  { %3618 = vmatpush.bf16.msra.mxu2 %v5867_v43  ;;  %v345_v60 = vpop.f32.mrf.mxu2  ;;  %3632 = vmatpush.bf16.msra.mxu3 %v6123_v45  ;;  %v5160_v55 = vld [vmem:[#allocation8 + $0x60] sm:$0xf0] }
  0xc1   :  { %v359_v63 = vpop.f32.mrf.mxu3  ;;  %3592 = vmatpush.bf16.msra.mxu0 %v5291_v46  ;;  %v319_v0 = vpop.f32.mrf.mxu0  ;;  %3606 = vmatpush.bf16.msra.mxu1 %v5547_v53  ;;  %v346_v21 = vadd.f32 %v345_v60, %v158_v59  ;;  %v7660_v46 = vld [vmem:[#allocation8 + $0x6c4] sm:$0xf]  ;;  %v5451_v53 = vor.u32 %v7524_v35, %v5448_v36 }
  0xc2   :  { %v320_v8 = vadd.f32 %v319_v0, %v156_v24  ;;  %v333_v9 = vpop.f32.mrf.mxu1  ;;  %v360_v28 = vadd.f32 %v359_v63, %v159_v7  ;;  %v7516_v26 = vld [vmem:[#allocation8 + $0x244] sm:$0xf] }
  0xc3   :  { %v334_v15 = vadd.f32 %v333_v9, %v157_v27  ;;  %v6024_v27 = vld [vmem:[#allocation8 + $0x720] sm:$0xf0]  ;;  %v370_v41 = vmax.f32 %v346_v21, 0.0 }
  0xc4   :  { %v376_v19 = vmax.f32 %v320_v8, 0.0  ;;  %3619 = vmatpush.bf16.msra.mxu2 %v5835_v61  ;;  %3633 = vmatpush.bf16.msra.mxu3 %v6091_v1  ;;  %v6027_v45 = vor.u32 %v7668_v31, %v6024_v27  ;;  %v371_v48 = vmax.f32 %v360_v28, 0.0  ;;  %v5416_v57 = vld [vmem:[#allocation8 + $0x260] sm:$0xf0]  ;;  %v5995_v61 = vor.u32 %v7660_v46, %v5992_v47 }
  0xc5   :  { %v377_v22 = vmax.f32 %v334_v15, 0.0  ;;  %3593 = vmatpush.bf16.msra.mxu0 %v5259_v2  ;;  %3607 = vmatpush.bf16.msra.mxu1 %v5515_v10  ;;  %v7588_v62 = vld [vmem:[#allocation8 + $0x484] sm:$0xf]  ;;  %v5163_v2 = vor.u32 %v7452_v54, %v5160_v55  ;;  %v5419_v3 = vor.u32 %v7516_v26, %v5416_v57 }
  0xc6   :  { %v8361_v24 = vpack.c.bf16 %v376_v19, %v368_v6  ;;  %v5704_v63 = vld [vmem:[#allocation8 + $0x4a0] sm:$0xf0] }
  0xc7   :  { %v8363_v33 = vpack.c.bf16 %v377_v22, %v369_v14  ;;  %v7652_v0 = vld [vmem:[#allocation8 + $0x684] sm:$0xf]  ;;  %v5707_v10 = vor.u32 %v7588_v62, %v5704_v63 }
  0xc8   :  { %3620 = vmatpush.bf16.msra.mxu2 %v5803_v20  ;;  %v347_v37 = vpop.f32.mrf.mxu2  ;;  %3542 = vmatmul.bf16.vlgmr.msrb.gmra.mxu0 %v8361_v24  ;;  %v5960_v4 = vld [vmem:[#allocation8 + $0x6a0] sm:$0xf0] }
  0xc9   :  { %3634 = vmatpush.bf16.msra.mxu3 %v6059_v23  ;;  %v348_v42 = vadd.f32 %v347_v37, %v158_v59  ;;  %v361_v43 = vpop.f32.mrf.mxu3  ;;  %3556 = vmatmul.bf16.vlgmr.msrb.gmra.mxu1 %v8363_v33  ;;  %v5739_v59 = vor.u32 %v7596_v39, %v5736_v40  ;;  %v7444_v5 = vld [vmem:[#allocation8 + $0x4] sm:$0xf]  ;;  %v5963_v15 = vor.u32 %v7652_v0, %v5960_v4 }
  0xca   :  { %v362_v49 = vadd.f32 %v361_v43, %v159_v7  ;;  %3594 = vmatpush.bf16.msra.mxu0 %v5227_v29  ;;  %3608 = vmatpush.bf16.msra.mxu1 %v5483_v30  ;;  %v5128_v6 = vld [vmem:[#allocation8 + $0x20] sm:$0xf0] }
  0xcb   :  { %v378_v56 = vmax.f32 %v348_v42, 0.0  ;;  %v7508_v7 = vld [vmem:[#allocation8 + $0x204] sm:$0xf]  ;;  %v5131_v19 = vor.u32 %v7444_v5, %v5128_v6 }
  0xcc   :  { %v379_v58 = vmax.f32 %v362_v49, 0.0  ;;  %3621 = vmatpush.bf16.msra.mxu2 %v5771_v38  ;;  %v5384_v8 = vld [vmem:[#allocation8 + $0x220] sm:$0xf0] }
  0xcd   :  { %v8367_v60 = vpack.c.bf16 %v378_v56, %v370_v41  ;;  %3635 = vmatpush.bf16.msra.mxu3 %v6027_v45  ;;  %v7756_v9 = vld [vmem:[#allocation8 + $0x9c4] sm:$0xf]  ;;  %v5387_v20 = vor.u32 %v7508_v7, %v5384_v8 }
  0xce   :  { %v8369_v1 = vpack.c.bf16 %v379_v58, %v371_v48  ;;  %3595 = vmatpush.bf16.msra.mxu0 %v5195_v51  ;;  %3609 = vmatpush.bf16.msra.mxu1 %v5451_v53  ;;  %v6376_v12 = vld [vmem:[#allocation8 + $0x9e0] sm:$0xf0] }
  0xcf   :  { %3570 = vmatmul.bf16.vlgmr.msrb.gmra.mxu2 %v8367_v60  ;;  %v7820_v13 = vld [vmem:[#allocation8 + $0xbc4] sm:$0xf]  ;;  %v6379_v23 = vor.u32 %v7756_v9, %v6376_v12 }
  0xd0   :  { %3584 = vmatmul.bf16.vlgmr.msrb.gmra.mxu3 %v8369_v1  ;;  %3622 = vmatpush.bf16.msra.mxu2 %v5739_v59  ;;  %v6632_v14 = vld [vmem:[#allocation8 + $0xbe0] sm:$0xf0] }
  0xd1   :  { %3636 = vmatpush.bf16.msra.mxu3 %v5995_v61  ;;  %v7580_v17 = vld [vmem:[#allocation8 + $0x444] sm:$0xf]  ;;  %v6635_v25 = vor.u32 %v7820_v13, %v6632_v14 }
  0xd2   :  { %v5672_v18 = vld [vmem:[#allocation8 + $0x460] sm:$0xf0]  ;;  %3596 = vmatpush.bf16.msra.mxu0 %v5163_v2  ;;  %3610 = vmatpush.bf16.msra.mxu1 %v5419_v3 }
  0xd3   :  { %v7644_v21 = vld [vmem:[#allocation8 + $0x644] sm:$0xf]  ;;  %v5675_v28 = vor.u32 %v7580_v17, %v5672_v18 }
  0xd4   :  { %v5928_v22 = vld [vmem:[#allocation8 + $0x660] sm:$0xf0]  ;;  %3623 = vmatpush.bf16.msra.mxu2 %v5707_v10 }
  0xd5   :  { %v7748_v52 = vld [vmem:[#allocation8 + $0x984] sm:$0xf]  ;;  %3637 = vmatpush.bf16.msra.mxu3 %v5963_v15  ;;  %v5931_v27 = vor.u32 %v7644_v21, %v5928_v22 }
  0xd6   :  { %v6344_v29 = vld [vmem:[#allocation8 + $0x9a0] sm:$0xf0]  ;;  %3597 = vmatpush.bf16.msra.mxu0 %v5131_v19  ;;  %3611 = vmatpush.bf16.msra.mxu1 %v5387_v20 }
  0xd7   :  { %v7812_v30 = vld [vmem:[#allocation8 + $0xb84] sm:$0xf]  ;;  %v6347_v39 = vor.u32 %v7748_v52, %v6344_v29 }
  0xd8   :  { %v6600_v31 = vld [vmem:[#allocation8 + $0xba0] sm:$0xf0]  ;;  %3624 = vmatpush.bf16.msra.mxu2 %v5675_v28 }
  0xd9   :  { %v7572_v32 = vld [vmem:[#allocation8 + $0x404] sm:$0xf]  ;;  %v6603_v40 = vor.u32 %v7812_v30, %v6600_v31  ;;  %3638 = vmatpush.bf16.msra.mxu3 %v5931_v27  ;;  %3598 = vmatmul.bf16.vlgmr.msra.gmra.mxu0 %v8345_v11 }
  0xda   :  { %v5640_v34 = vld [vmem:[#allocation8 + $0x420] sm:$0xf0]  ;;  %3646 = vmatpush.bf16.msrb.mxu0 %v6379_v23  ;;  %3660 = vmatpush.bf16.msrb.mxu1 %v6635_v25 }
  0xdb   :  { %v7636_v35 = vld [vmem:[#allocation8 + $0x604] sm:$0xf]  ;;  %v5643_v45 = vor.u32 %v7572_v32, %v5640_v34  ;;  %3612 = vmatmul.bf16.vlgmr.msra.gmra.mxu1 %v8347_v16 }
  0xdc   :  { %v5896_v36 = vld [vmem:[#allocation8 + $0x620] sm:$0xf0] }
  0xdd   :  { %v7884_v37 = vld [vmem:[#allocation8 + $0xdc4] sm:$0xf]  ;;  %v5899_v49 = vor.u32 %v7636_v35, %v5896_v36  ;;  %3625 = vmatpush.bf16.msra.mxu2 %v5643_v45 }
  0xde   :  { %v6888_v38 = vld [vmem:[#allocation8 + $0xde0] sm:$0xf0]  ;;  %3647 = vmatpush.bf16.msrb.mxu0 %v6347_v39  ;;  %3661 = vmatpush.bf16.msrb.mxu1 %v6603_v40 }
  0xdf   :  { %v7948_v41 = vld [vmem:[#allocation8 + $0xfc4] sm:$0xf]  ;;  %v6891_v51 = vor.u32 %v7884_v37, %v6888_v38  ;;  %3639 = vmatpush.bf16.msra.mxu3 %v5899_v49 }
  0xe0   :  { %v7144_v42 = vld [vmem:[#allocation8 + $0xfe0] sm:$0xf0]  ;;  %3626 = vmatmul.bf16.vlgmr.msra.gmra.mxu2 %v8353_v44 }
  0xe1   :  { %v7740_v43 = vld [vmem:[#allocation8 + $0x944] sm:$0xf]  ;;  %v7147_v53 = vor.u32 %v7948_v41, %v7144_v42  ;;  %3674 = vmatpush.bf16.msrb.mxu2 %v6891_v51 }
  0xe2   :  { %v6312_v46 = vld [vmem:[#allocation8 + $0x960] sm:$0xf0]  ;;  %3640 = vmatmul.bf16.vlgmr.msra.gmra.mxu3 %v8355_v50 }
  0xe3   :  { %v7804_v47 = vld [vmem:[#allocation8 + $0xb44] sm:$0xf]  ;;  %v6315_v56 = vor.u32 %v7740_v43, %v6312_v46  ;;  %3688 = vmatpush.bf16.msrb.mxu3 %v7147_v53 }
  0xe4   :  { %v6568_v48 = vld [vmem:[#allocation8 + $0xb60] sm:$0xf0] }
  0xe5   :  { %v7876_v54 = vld [vmem:[#allocation8 + $0xd84] sm:$0xf]  ;;  %v6571_v26 = vor.u32 %v7804_v47, %v6568_v48  ;;  %3648 = vmatpush.bf16.msrb.mxu0 %v6315_v56  ;;  %v5358_v56 = vld [vmem:[#allocation8 + $0x1c8] sm:$0xf] }
  0xe6   :  { %v6856_v55 = vld [vmem:[#allocation8 + $0xda0] sm:$0xf0] }
  0xe7   :  { %v7940_v57 = vld [vmem:[#allocation8 + $0xf84] sm:$0xf]  ;;  %v6859_v0 = vor.u32 %v7876_v54, %v6856_v55  ;;  %3662 = vmatpush.bf16.msrb.mxu1 %v6571_v26 }
  0xe8   :  { %v7112_v58 = vld [vmem:[#allocation8 + $0xfa0] sm:$0xf0] }
  0xe9   :  { %v7732_v59 = vld [vmem:[#allocation8 + $0x904] sm:$0xf]  ;;  %v7115_v2 = vor.u32 %v7940_v57, %v7112_v58  ;;  %3675 = vmatpush.bf16.msrb.mxu2 %v6859_v0  ;;  %v7505_v57 = vld [vmem:[#allocation8 + $0x1e4] sm:$0xf0] }
  0xea   :  { %v6280_v61 = vld [vmem:[#allocation8 + $0x920] sm:$0xf0]  ;;  %v5614_v58 = vld [vmem:[#allocation8 + $0x3c8] sm:$0xf] }
  0xeb   :  { %v7796_v62 = vld [vmem:[#allocation8 + $0xb04] sm:$0xf]  ;;  %v6283_v5 = vor.u32 %v7732_v59, %v6280_v61  ;;  %3689 = vmatpush.bf16.msrb.mxu3 %v7115_v2  ;;  %v7569_v59 = vld [vmem:[#allocation8 + $0x3e4] sm:$0xf0] }
  0xec   :  { %v6536_v63 = vld [vmem:[#allocation8 + $0xb20] sm:$0xf0] }
  0xed   :  { %v7868_v3 = vld [vmem:[#allocation8 + $0xd44] sm:$0xf]  ;;  %v6539_v6 = vor.u32 %v7796_v62, %v6536_v63  ;;  %3649 = vmatpush.bf16.msrb.mxu0 %v6283_v5  ;;  %v5359_v5 = vor.u32 %v7505_v57, %v5358_v56  ;;  %v5230_v56 = vld [vmem:[#allocation8 + $0xc8] sm:$0xf] }
  0xee   :  { %v6824_v4 = vld [vmem:[#allocation8 + $0xd60] sm:$0xf0] }
  0xef   :  { %v7932_v7 = vld [vmem:[#allocation8 + $0xf44] sm:$0xf]  ;;  %v6827_v14 = vor.u32 %v7868_v3, %v6824_v4  ;;  %3663 = vmatpush.bf16.msrb.mxu1 %v6539_v6  ;;  %v5615_v6 = vor.u32 %v7569_v59, %v5614_v58  ;;  %v5486_v58 = vld [vmem:[#allocation8 + $0x2c8] sm:$0xf] }
  0xf0   :  { %v7080_v8 = vld [vmem:[#allocation8 + $0xf60] sm:$0xf0]  ;;  %v7537_v59 = vld [vmem:[#allocation8 + $0x2e4] sm:$0xf0] }
  0xf1   :  { %v7724_v9 = vld [vmem:[#allocation8 + $0x8c4] sm:$0xf]  ;;  %v7083_v15 = vor.u32 %v7932_v7, %v7080_v8  ;;  %3676 = vmatpush.bf16.msrb.mxu2 %v6827_v14  ;;  %v5326_v7 = vld [vmem:[#allocation8 + $0x188] sm:$0xf] }
  0xf2   :  { %v6248_v10 = vld [vmem:[#allocation8 + $0x8e0] sm:$0xf0] }
  0xf3   :  { %v7788_v12 = vld [vmem:[#allocation8 + $0xac4] sm:$0xf]  ;;  %v6251_v19 = vor.u32 %v7724_v9, %v6248_v10  ;;  %3690 = vmatpush.bf16.msrb.mxu3 %v7083_v15  ;;  %v7497_v9 = vld [vmem:[#allocation8 + $0x1a4] sm:$0xf0] }
  0xf4   :  { %v6504_v13 = vld [vmem:[#allocation8 + $0xae0] sm:$0xf0]  ;;  %v5582_v10 = vld [vmem:[#allocation8 + $0x388] sm:$0xf] }
  0xf5   :  { %v7860_v17 = vld [vmem:[#allocation8 + $0xd04] sm:$0xf]  ;;  %v6507_v20 = vor.u32 %v7788_v12, %v6504_v13  ;;  %3650 = vmatpush.bf16.msrb.mxu0 %v6251_v19  ;;  %v7561_v12 = vld [vmem:[#allocation8 + $0x3a4] sm:$0xf0] }
  0xf6   :  { %v6792_v18 = vld [vmem:[#allocation8 + $0xd20] sm:$0xf0]  ;;  %v5870_v19 = vld [vmem:[#allocation8 + $0x5c8] sm:$0xf] }
  0xf7   :  { %v7924_v21 = vld [vmem:[#allocation8 + $0xf04] sm:$0xf]  ;;  %v6795_v29 = vor.u32 %v7860_v17, %v6792_v18  ;;  %3664 = vmatpush.bf16.msrb.mxu1 %v6507_v20  ;;  %v7633_v20 = vld [vmem:[#allocation8 + $0x5e4] sm:$0xf0] }
  0xf8   :  { %v7048_v22 = vld [vmem:[#allocation8 + $0xf20] sm:$0xf0] }
  0xf9   :  { %v7716_v23 = vld [vmem:[#allocation8 + $0x884] sm:$0xf]  ;;  %v7051_v30 = vor.u32 %v7924_v21, %v7048_v22  ;;  %3677 = vmatpush.bf16.msrb.mxu2 %v6795_v29  ;;  %v5327_v21 = vor.u32 %v7497_v9, %v5326_v7  ;;  %v5583_v22 = vor.u32 %v7561_v12, %v5582_v10  ;;  %v7489_v29 = vld [vmem:[#allocation8 + $0x164] sm:$0xf0] }
  0xfa   :  { %v6216_v25 = vld [vmem:[#allocation8 + $0x8a0] sm:$0xf0]  ;;  %v7529_v9 = vld [vmem:[#allocation8 + $0x2a4] sm:$0xf0] }
  0xfb   :  { %v7780_v52 = vld [vmem:[#allocation8 + $0xa84] sm:$0xf]  ;;  %v6219_v32 = vor.u32 %v7716_v23, %v6216_v25  ;;  %3691 = vmatpush.bf16.msrb.mxu3 %v7051_v30  ;;  %v6126_v23 = vld [vmem:[#allocation8 + $0x7c8] sm:$0xf] }
  0xfc   :  { %v6472_v28 = vld [vmem:[#allocation8 + $0xaa0] sm:$0xf0]  ;;  %v7697_v25 = vld [vmem:[#allocation8 + $0x7e4] sm:$0xf0] }
  0xfd   :  { %v7852_v31 = vld [vmem:[#allocation8 + $0xcc4] sm:$0xf]  ;;  %v6475_v34 = vor.u32 %v7780_v52, %v6472_v28  ;;  %3651 = vmatpush.bf16.msrb.mxu0 %v6219_v32  ;;  %v5294_v28 = vld [vmem:[#allocation8 + $0x148] sm:$0xf] }
  0xfe   :  { %v6760_v27 = vld [vmem:[#allocation8 + $0xce0] sm:$0xf0]  ;;  %v7553_v32 = vld [vmem:[#allocation8 + $0x364] sm:$0xf0] }
  0xff   :  { %v7916_v35 = vld [vmem:[#allocation8 + $0xec4] sm:$0xf]  ;;  %v6763_v41 = vor.u32 %v7852_v31, %v6760_v27  ;;  %3665 = vmatpush.bf16.msrb.mxu1 %v6475_v34  ;;  %v5871_v31 = vor.u32 %v7633_v20, %v5870_v19  ;;  %v5550_v27 = vld [vmem:[#allocation8 + $0x348] sm:$0xf]  ;;  %v6127_v34 = vor.u32 %v7697_v25, %v6126_v23 }
 0x100   :  { %v7016_v36 = vld [vmem:[#allocation8 + $0xee0] sm:$0xf0]  ;;  %v5742_v12 = vld [vmem:[#allocation8 + $0x4c8] sm:$0xf] }
 0x101   :  { %v7708_v37 = vld [vmem:[#allocation8 + $0x844] sm:$0xf]  ;;  %v7019_v42 = vor.u32 %v7916_v35, %v7016_v36  ;;  %3678 = vmatpush.bf16.msrb.mxu2 %v6763_v41  ;;  %v5838_v35 = vld [vmem:[#allocation8 + $0x588] sm:$0xf] }
 0x102   :  { %v6184_v38 = vld [vmem:[#allocation8 + $0x860] sm:$0xf0]  ;;  %v7625_v36 = vld [vmem:[#allocation8 + $0x5a4] sm:$0xf0] }
 0x103   :  { %v7772_v39 = vld [vmem:[#allocation8 + $0xa44] sm:$0xf]  ;;  %v6187_v47 = vor.u32 %v7708_v37, %v6184_v38  ;;  %3692 = vmatpush.bf16.msrb.mxu3 %v7019_v42  ;;  %v5295_v37 = vor.u32 %v7489_v29, %v5294_v28  ;;  %v6094_v38 = vld [vmem:[#allocation8 + $0x788] sm:$0xf] }
 0x104   :  { %v6440_v40 = vld [vmem:[#allocation8 + $0xa60] sm:$0xf0]  ;;  %v5262_v41 = vld [vmem:[#allocation8 + $0x108] sm:$0xf] }
 0x105   :  { %v7844_v43 = vld [vmem:[#allocation8 + $0xc84] sm:$0xf]  ;;  %v6443_v48 = vor.u32 %v7772_v39, %v6440_v40  ;;  %3652 = vmatpush.bf16.msrb.mxu0 %v6187_v47  ;;  %v7689_v39 = vld [vmem:[#allocation8 + $0x7a4] sm:$0xf0]  ;;  %v5551_v40 = vor.u32 %v7553_v32, %v5550_v27 }
 0x106   :  { %v6728_v45 = vld [vmem:[#allocation8 + $0xca0] sm:$0xf0]  ;;  %v7481_v42 = vld [vmem:[#allocation8 + $0x124] sm:$0xf0]  ;;  %v6095_v47 = vor.u32 %v7689_v39, %v6094_v38 }
 0x107   :  { %v7908_v46 = vld [vmem:[#allocation8 + $0xe84] sm:$0xf]  ;;  %v6731_v26 = vor.u32 %v7844_v43, %v6728_v45  ;;  %3666 = vmatpush.bf16.msrb.mxu1 %v6443_v48  ;;  %v5839_v43 = vor.u32 %v7625_v36, %v5838_v35  ;;  %v5518_v45 = vld [vmem:[#allocation8 + $0x308] sm:$0xf] }
 0x108   :  { %v6984_v49 = vld [vmem:[#allocation8 + $0xea0] sm:$0xf0]  ;;  %v5806_v48 = vld [vmem:[#allocation8 + $0x548] sm:$0xf] }
 0x109   :  { %v7700_v51 = vld [vmem:[#allocation8 + $0x804] sm:$0xf]  ;;  %v6987_v61 = vor.u32 %v7908_v46, %v6984_v49  ;;  %3679 = vmatpush.bf16.msrb.mxu2 %v6731_v26  ;;  %v7545_v46 = vld [vmem:[#allocation8 + $0x324] sm:$0xf0] }
 0x10a   :  { %v6152_v53 = vld [vmem:[#allocation8 + $0x820] sm:$0xf0]  ;;  %v7617_v49 = vld [vmem:[#allocation8 + $0x564] sm:$0xf0] }
 0x10b   :  { %v7764_v54 = vld [vmem:[#allocation8 + $0xa04] sm:$0xf]  ;;  %v6155_v0 = vor.u32 %v7700_v51, %v6152_v53  ;;  %3693 = vmatpush.bf16.msrb.mxu3 %v6987_v61  ;;  %v5263_v51 = vor.u32 %v7481_v42, %v5262_v41  ;;  %v6062_v53 = vld [vmem:[#allocation8 + $0x748] sm:$0xf]  ;;  %v5807_v57 = vor.u32 %v7617_v49, %v5806_v48 }
 0x10c   :  { %v6408_v55 = vld [vmem:[#allocation8 + $0xa20] sm:$0xf0]  ;;  %v7473_v26 = vld [vmem:[#allocation8 + $0xe4] sm:$0xf0] }
 0x10d   :  { %v7836_v62 = vld [vmem:[#allocation8 + $0xc44] sm:$0xf]  ;;  %v6411_v2 = vor.u32 %v7764_v54, %v6408_v55  ;;  %3653 = vmatpush.bf16.msrb.mxu0 %v6155_v0  ;;  %v7681_v54 = vld [vmem:[#allocation8 + $0x764] sm:$0xf0]  ;;  %v5519_v55 = vor.u32 %v7545_v46, %v5518_v45  ;;  %v5231_v0 = vor.u32 %v7473_v26, %v5230_v56 }
 0x10e   :  { %v6696_v63 = vld [vmem:[#allocation8 + $0xc60] sm:$0xf0]  ;;  %v6063_v61 = vor.u32 %v7681_v54, %v6062_v53  ;;  %v5166_v19 = vld [vmem:[#allocation8 + $0x48] sm:$0xf] }
 0x10f   :  { %v7900_v3 = vld [vmem:[#allocation8 + $0xe44] sm:$0xf]  ;;  %v6699_v8 = vor.u32 %v7836_v62, %v6696_v63  ;;  %3667 = vmatpush.bf16.msrb.mxu1 %v6411_v2  ;;  %v5774_v62 = vld [vmem:[#allocation8 + $0x508] sm:$0xf] }
 0x110   :  { %v6952_v4 = vld [vmem:[#allocation8 + $0xe60] sm:$0xf0]  ;;  %3654 = vmatmul.bf16.vlgmr.msrb.gmra.mxu0 %v8361_v24  ;;  %v7609_v63 = vld [vmem:[#allocation8 + $0x524] sm:$0xf0] }
 0x111   :  { %v6955_v13 = vor.u32 %v7900_v3, %v6952_v4  ;;  %v7828_v14 = vld [vmem:[#allocation8 + $0xc04] sm:$0xf]  ;;  %3702 = vmatpush.bf16.msra.mxu0 %v5359_v5  ;;  %3680 = vmatpush.bf16.msrb.mxu2 %v6699_v8  ;;  %v6030_v2 = vld [vmem:[#allocation8 + $0x708] sm:$0xf]  ;;  %v5487_v4 = vor.u32 %v7537_v59, %v5486_v58  ;;  %v5775_v7 = vor.u32 %v7609_v63, %v5774_v62 }
 0x112   :  { %v6664_v15 = vld [vmem:[#allocation8 + $0xc20] sm:$0xf0]  ;;  %3668 = vmatmul.bf16.vlgmr.msrb.gmra.mxu1 %v8363_v33  ;;  %v7673_v3 = vld [vmem:[#allocation8 + $0x724] sm:$0xf0] }
 0x113   :  { %v7892_v17 = vld [vmem:[#allocation8 + $0xe04] sm:$0xf]  ;;  %3716 = vmatpush.bf16.msra.mxu1 %v5615_v6  ;;  %v6667_v52 = vor.u32 %v7828_v14, %v6664_v15  ;;  %3694 = vmatpush.bf16.msrb.mxu3 %v6955_v13  ;;  %v5198_v5 = vld [vmem:[#allocation8 + $0x88] sm:$0xf]  ;;  %v6031_v10 = vor.u32 %v7673_v3, %v6030_v2 }
 0x114   :  { %v6920_v18 = vld [vmem:[#allocation8 + $0xe20] sm:$0xf0]  ;;  %v7465_v6 = vld [vmem:[#allocation8 + $0xa4] sm:$0xf0] }
 0x115   :  { %v6923_v30 = vor.u32 %v7892_v17, %v6920_v18  ;;  %3703 = vmatpush.bf16.msra.mxu0 %v5327_v21  ;;  %3681 = vmatpush.bf16.msrb.mxu2 %v6667_v52  ;;  %v5454_v8 = vld [vmem:[#allocation8 + $0x288] sm:$0xf]  ;;  %v5199_v14 = vor.u32 %v7465_v6, %v5198_v5 }
 0x116   :  { %v7601_v13 = vld [vmem:[#allocation8 + $0x4e4] sm:$0xf0]  ;;  %v5455_v18 = vor.u32 %v7529_v9, %v5454_v8 }
 0x117   :  { %3717 = vmatpush.bf16.msra.mxu1 %v5583_v22  ;;  %3695 = vmatpush.bf16.msrb.mxu3 %v6923_v30  ;;  %v5998_v15 = vld [vmem:[#allocation8 + $0x6c8] sm:$0xf]  ;;  %v5743_v21 = vor.u32 %v7601_v13, %v5742_v12 }
 0x118   :  { %3682 = vmatmul.bf16.vlgmr.msrb.gmra.mxu2 %v8367_v60  ;;  %v7665_v17 = vld [vmem:[#allocation8 + $0x6e4] sm:$0xf0] }
 0x119   :  { %3730 = vmatpush.bf16.msra.mxu2 %v5871_v31  ;;  %3704 = vmatpush.bf16.msra.mxu0 %v5295_v37  ;;  %v7457_v20 = vld [vmem:[#allocation8 + $0x64] sm:$0xf0]  ;;  %v5999_v25 = vor.u32 %v7665_v17, %v5998_v15 }
 0x11a   :  { %3696 = vmatmul.bf16.vlgmr.msrb.gmra.mxu3 %v8369_v1  ;;  %v5422_v22 = vld [vmem:[#allocation8 + $0x248] sm:$0xf]  ;;  %v5167_v29 = vor.u32 %v7457_v20, %v5166_v19 }
 0x11b   :  { %3744 = vmatpush.bf16.msra.mxu3 %v6127_v34  ;;  %3718 = vmatpush.bf16.msra.mxu1 %v5551_v40  ;;  %v7521_v23 = vld [vmem:[#allocation8 + $0x264] sm:$0xf0] }
 0x11c   :  { %v5710_v52 = vld [vmem:[#allocation8 + $0x488] sm:$0xf]  ;;  %v5423_v32 = vor.u32 %v7521_v23, %v5422_v22 }
 0x11d   :  { %3731 = vmatpush.bf16.msra.mxu2 %v5839_v43  ;;  %3705 = vmatpush.bf16.msra.mxu0 %v5263_v51  ;;  %v7593_v28 = vld [vmem:[#allocation8 + $0x4a4] sm:$0xf0] }
 0x11e   :  { %v5966_v30 = vld [vmem:[#allocation8 + $0x688] sm:$0xf]  ;;  %v5711_v37 = vor.u32 %v7593_v28, %v5710_v52 }
 0x11f   :  { %3745 = vmatpush.bf16.msra.mxu3 %v6095_v47  ;;  %3719 = vmatpush.bf16.msra.mxu1 %v5519_v55  ;;  %v7657_v31 = vld [vmem:[#allocation8 + $0x6a4] sm:$0xf0] }
 0x120   :  { %v5134_v27 = vld [vmem:[#allocation8 + $0x8] sm:$0xf]  ;;  %v5967_v41 = vor.u32 %v7657_v31, %v5966_v30 }
 0x121   :  { %3732 = vmatpush.bf16.msra.mxu2 %v5807_v57  ;;  %3706 = vmatpush.bf16.msra.mxu0 %v5231_v0  ;;  %v7449_v34 = vld [vmem:[#allocation8 + $0x24] sm:$0xf0] }
 0x122   :  { %v5390_v35 = vld [vmem:[#allocation8 + $0x208] sm:$0xf]  ;;  %v5135_v46 = vor.u32 %v7449_v34, %v5134_v27 }
 0x123   :  { %3746 = vmatpush.bf16.msra.mxu3 %v6063_v61  ;;  %3720 = vmatpush.bf16.msra.mxu1 %v5487_v4  ;;  %v7513_v36 = vld [vmem:[#allocation8 + $0x224] sm:$0xf0] }
 0x124   :  { %v6382_v38 = vld [vmem:[#allocation8 + $0x9c8] sm:$0xf]  ;;  %v5391_v49 = vor.u32 %v7513_v36, %v5390_v35 }
 0x125   :  { %3733 = vmatpush.bf16.msra.mxu2 %v5775_v7  ;;  %3707 = vmatpush.bf16.msra.mxu0 %v5199_v14  ;;  %v7761_v39 = vld [vmem:[#allocation8 + $0x9e4] sm:$0xf0] }
 0x126   :  { %v6638_v40 = vld [vmem:[#allocation8 + $0xbc8] sm:$0xf]  ;;  %v6383_v51 = vor.u32 %v7761_v39, %v6382_v38 }
 0x127   :  { %3747 = vmatpush.bf16.msra.mxu3 %v6031_v10  ;;  %3721 = vmatpush.bf16.msra.mxu1 %v5455_v18  ;;  %v7825_v42 = vld [vmem:[#allocation8 + $0xbe4] sm:$0xf0] }
 0x128   :  { %v5678_v43 = vld [vmem:[#allocation8 + $0x448] sm:$0xf]  ;;  %v6639_v54 = vor.u32 %v7825_v42, %v6638_v40 }
 0x129   :  { %3734 = vmatpush.bf16.msra.mxu2 %v5743_v21  ;;  %v7585_v45 = vld [vmem:[#allocation8 + $0x464] sm:$0xf0]  ;;  %3708 = vmatpush.bf16.msra.mxu0 %v5167_v29 }
 0x12a   :  { %v5934_v47 = vld [vmem:[#allocation8 + $0x648] sm:$0xf]  ;;  %v5679_v55 = vor.u32 %v7585_v45, %v5678_v43 }
 0x12b   :  { %3748 = vmatpush.bf16.msra.mxu3 %v5999_v25  ;;  %v7649_v48 = vld [vmem:[#allocation8 + $0x664] sm:$0xf0]  ;;  %3722 = vmatpush.bf16.msra.mxu1 %v5423_v32 }
 0x12c   :  { %v6350_v53 = vld [vmem:[#allocation8 + $0x988] sm:$0xf]  ;;  %v5935_v58 = vor.u32 %v7649_v48, %v5934_v47 }
 0x12d   :  { %3735 = vmatpush.bf16.msra.mxu2 %v5711_v37  ;;  %v7753_v56 = vld [vmem:[#allocation8 + $0x9a4] sm:$0xf0]  ;;  %3709 = vmatpush.bf16.msra.mxu0 %v5135_v46 }
 0x12e   :  { %v6606_v26 = vld [vmem:[#allocation8 + $0xb88] sm:$0xf]  ;;  %v6351_v3 = vor.u32 %v7753_v56, %v6350_v53 }
 0x12f   :  { %v7817_v57 = vld [vmem:[#allocation8 + $0xba4] sm:$0xf0]  ;;  %3749 = vmatpush.bf16.msra.mxu3 %v5967_v41  ;;  %3723 = vmatpush.bf16.msra.mxu1 %v5391_v49 }
 0x130   :  { %v5646_v59 = vld [vmem:[#allocation8 + $0x408] sm:$0xf]  ;;  %v6607_v6 = vor.u32 %v7817_v57, %v6606_v26  ;;  %3710 = vmatmul.bf16.vlgmr.msra.gmra.mxu0 %v8345_v11 }
 0x131   :  { %v7577_v61 = vld [vmem:[#allocation8 + $0x424] sm:$0xf0]  ;;  %3758 = vmatpush.bf16.msrb.mxu0 %v6383_v51  ;;  %3736 = vmatpush.bf16.msra.mxu2 %v5679_v55 }
 0x132   :  { %v5902_v62 = vld [vmem:[#allocation8 + $0x608] sm:$0xf]  ;;  %v5647_v7 = vor.u32 %v7577_v61, %v5646_v59  ;;  %3724 = vmatmul.bf16.vlgmr.msra.gmra.mxu1 %v8347_v16 }
 0x133   :  { %v7641_v63 = vld [vmem:[#allocation8 + $0x624] sm:$0xf0]  ;;  %3772 = vmatpush.bf16.msrb.mxu1 %v6639_v54  ;;  %3750 = vmatpush.bf16.msra.mxu3 %v5935_v58 }
 0x134   :  { %v6894_v0 = vld [vmem:[#allocation8 + $0xdc8] sm:$0xf]  ;;  %v5903_v10 = vor.u32 %v7641_v63, %v5902_v62 }
 0x135   :  { %v7889_v2 = vld [vmem:[#allocation8 + $0xde4] sm:$0xf0]  ;;  %3759 = vmatpush.bf16.msrb.mxu0 %v6351_v3  ;;  %3737 = vmatpush.bf16.msra.mxu2 %v5647_v7 }
 0x136   :  { %v7150_v4 = vld [vmem:[#allocation8 + $0xfc8] sm:$0xf]  ;;  %v6895_v12 = vor.u32 %v7889_v2, %v6894_v0 }
 0x137   :  { %v7953_v5 = vld [vmem:[#allocation8 + $0xfe4] sm:$0xf0]  ;;  %3773 = vmatpush.bf16.msrb.mxu1 %v6607_v6  ;;  %3751 = vmatpush.bf16.msra.mxu3 %v5903_v10 }
 0x138   :  { %v6318_v8 = vld [vmem:[#allocation8 + $0x948] sm:$0xf]  ;;  %v7151_v15 = vor.u32 %v7953_v5, %v7150_v4  ;;  %3738 = vmatmul.bf16.vlgmr.msra.gmra.mxu2 %v8353_v44 }
 0x139   :  { %v7745_v9 = vld [vmem:[#allocation8 + $0x964] sm:$0xf0]  ;;  %3786 = vmatpush.bf16.msrb.mxu2 %v6895_v12 }
 0x13a   :  { %v6574_v13 = vld [vmem:[#allocation8 + $0xb48] sm:$0xf]  ;;  %v6319_v19 = vor.u32 %v7745_v9, %v6318_v8  ;;  %3752 = vmatmul.bf16.vlgmr.msra.gmra.mxu3 %v8355_v50 }
 0x13b   :  { %v7809_v14 = vld [vmem:[#allocation8 + $0xb64] sm:$0xf0]  ;;  %3800 = vmatpush.bf16.msrb.mxu3 %v7151_v15 }
 0x13c   :  { %v6862_v17 = vld [vmem:[#allocation8 + $0xd88] sm:$0xf]  ;;  %v6575_v22 = vor.u32 %v7809_v14, %v6574_v13  ;;  %3760 = vmatpush.bf16.msrb.mxu0 %v6319_v19 }
 0x13d   :  { %v7881_v18 = vld [vmem:[#allocation8 + $0xda4] sm:$0xf0] }
 0x13e   :  { %v7118_v20 = vld [vmem:[#allocation8 + $0xf88] sm:$0xf]  ;;  %v6863_v52 = vor.u32 %v7881_v18, %v6862_v17  ;;  %3774 = vmatpush.bf16.msrb.mxu1 %v6575_v22  ;;  %v7565_v22 = vld [vmem:[#allocation8 + $0x3cc] sm:$0xf] }
 0x13f   :  { %v7945_v21 = vld [vmem:[#allocation8 + $0xfa4] sm:$0xf0] }
 0x140   :  { %v6286_v23 = vld [vmem:[#allocation8 + $0x908] sm:$0xf]  ;;  %v7119_v30 = vor.u32 %v7945_v21, %v7118_v20  ;;  %3787 = vmatpush.bf16.msrb.mxu2 %v6863_v52  ;;  %v7501_v20 = vld [vmem:[#allocation8 + $0x1cc] sm:$0xf] }
 0x141   :  { %v7737_v25 = vld [vmem:[#allocation8 + $0x924] sm:$0xf0]  ;;  %v5360_v21 = vld [vmem:[#allocation8 + $0x1e8] sm:$0xf0] }
 0x142   :  { %v6542_v28 = vld [vmem:[#allocation8 + $0xb08] sm:$0xf]  ;;  %v6287_v32 = vor.u32 %v7737_v25, %v6286_v23  ;;  %3801 = vmatpush.bf16.msrb.mxu3 %v7119_v30  ;;  %v5616_v25 = vld [vmem:[#allocation8 + $0x3e8] sm:$0xf0] }
 0x143   :  { %v7801_v29 = vld [vmem:[#allocation8 + $0xb24] sm:$0xf0] }
 0x144   :  { %v6830_v31 = vld [vmem:[#allocation8 + $0xd48] sm:$0xf]  ;;  %v6543_v36 = vor.u32 %v7801_v29, %v6542_v28  ;;  %3761 = vmatpush.bf16.msrb.mxu0 %v6287_v32  ;;  %v5363_v32 = vor.u32 %v7501_v20, %v5360_v21  ;;  %v7677_v21 = vld [vmem:[#allocation8 + $0x74c] sm:$0xf] }
 0x145   :  { %v7873_v27 = vld [vmem:[#allocation8 + $0xd64] sm:$0xf0] }
 0x146   :  { %v7086_v34 = vld [vmem:[#allocation8 + $0xf48] sm:$0xf]  ;;  %v6831_v39 = vor.u32 %v7873_v27, %v6830_v31  ;;  %3775 = vmatpush.bf16.msrb.mxu1 %v6543_v36 }
 0x147   :  { %v7937_v35 = vld [vmem:[#allocation8 + $0xf64] sm:$0xf0] }
 0x148   :  { %v6254_v37 = vld [vmem:[#allocation8 + $0x8c8] sm:$0xf]  ;;  %v7087_v42 = vor.u32 %v7937_v35, %v7086_v34  ;;  %3788 = vmatpush.bf16.msrb.mxu2 %v6831_v39  ;;  %v7493_v34 = vld [vmem:[#allocation8 + $0x18c] sm:$0xf]  ;;  %v5619_v35 = vor.u32 %v7565_v22, %v5616_v25 }
 0x149   :  { %v7729_v38 = vld [vmem:[#allocation8 + $0x8e4] sm:$0xf0]  ;;  %v5584_v39 = vld [vmem:[#allocation8 + $0x3a8] sm:$0xf0] }
 0x14a   :  { %v6510_v40 = vld [vmem:[#allocation8 + $0xac8] sm:$0xf]  ;;  %v6255_v46 = vor.u32 %v7729_v38, %v6254_v37  ;;  %3802 = vmatpush.bf16.msrb.mxu3 %v7087_v42  ;;  %v5328_v37 = vld [vmem:[#allocation8 + $0x1a8] sm:$0xf0] }
 0x14b   :  { %v7793_v41 = vld [vmem:[#allocation8 + $0xae4] sm:$0xf0]  ;;  %v7557_v38 = vld [vmem:[#allocation8 + $0x38c] sm:$0xf] }
 0x14c   :  { %v6798_v43 = vld [vmem:[#allocation8 + $0xd08] sm:$0xf]  ;;  %v6511_v49 = vor.u32 %v7793_v41, %v6510_v40  ;;  %3762 = vmatpush.bf16.msrb.mxu0 %v6255_v46  ;;  %v7629_v46 = vld [vmem:[#allocation8 + $0x5cc] sm:$0xf] }
 0x14d   :  { %v7865_v45 = vld [vmem:[#allocation8 + $0xd24] sm:$0xf0]  ;;  %v6064_v22 = vld [vmem:[#allocation8 + $0x768] sm:$0xf0] }
 0x14e   :  { %v7054_v47 = vld [vmem:[#allocation8 + $0xf08] sm:$0xf]  ;;  %v6799_v54 = vor.u32 %v7865_v45, %v6798_v43  ;;  %3776 = vmatpush.bf16.msrb.mxu1 %v6511_v49  ;;  %v7693_v49 = vld [vmem:[#allocation8 + $0x7cc] sm:$0xf] }
 0x14f   :  { %v7929_v48 = vld [vmem:[#allocation8 + $0xf24] sm:$0xf0]  ;;  %v7469_v25 = vld [vmem:[#allocation8 + $0xcc] sm:$0xf] }
 0x150   :  { %v6222_v51 = vld [vmem:[#allocation8 + $0x888] sm:$0xf]  ;;  %v7055_v26 = vor.u32 %v7929_v48, %v7054_v47  ;;  %3789 = vmatpush.bf16.msrb.mxu2 %v6799_v54  ;;  %v5872_v47 = vld [vmem:[#allocation8 + $0x5e8] sm:$0xf0]  ;;  %v5331_v48 = vor.u32 %v7493_v34, %v5328_v37 }
 0x151   :  { %v7721_v53 = vld [vmem:[#allocation8 + $0x8a4] sm:$0xf0]  ;;  %v5776_v34 = vld [vmem:[#allocation8 + $0x528] sm:$0xf0] }
 0x152   :  { %v6478_v55 = vld [vmem:[#allocation8 + $0xa88] sm:$0xf]  ;;  %v6223_v59 = vor.u32 %v7721_v53, %v6222_v51  ;;  %3803 = vmatpush.bf16.msrb.mxu3 %v7055_v26  ;;  %v6128_v51 = vld [vmem:[#allocation8 + $0x7e8] sm:$0xf0]  ;;  %v5587_v53 = vor.u32 %v7557_v38, %v5584_v39  ;;  %v8385_v26 = vld [vmem:[#allocation10] sm:$0xff] }
 0x153   :  { %v7785_v56 = vld [vmem:[#allocation8 + $0xaa4] sm:$0xf0]  ;;  %v6032_v37 = vld [vmem:[#allocation8 + $0x728] sm:$0xf0] }
 0x154   :  { %v6766_v57 = vld [vmem:[#allocation8 + $0xcc8] sm:$0xf]  ;;  %v6479_v63 = vor.u32 %v7785_v56, %v6478_v55  ;;  %3763 = vmatpush.bf16.msrb.mxu0 %v6223_v59  ;;  %v7485_v55 = vld [vmem:[#allocation8 + $0x14c] sm:$0xf] }
 0x155   :  { %v7857_v58 = vld [vmem:[#allocation8 + $0xce4] sm:$0xf0]  ;;  %v5296_v56 = vld [vmem:[#allocation8 + $0x168] sm:$0xf0] }
 0x156   :  { %v7022_v61 = vld [vmem:[#allocation8 + $0xec8] sm:$0xf]  ;;  %v6767_v3 = vor.u32 %v7857_v58, %v6766_v57  ;;  %3777 = vmatpush.bf16.msrb.mxu1 %v6479_v63  ;;  %v5875_v58 = vor.u32 %v7629_v46, %v5872_v47  ;;  %v7549_v59 = vld [vmem:[#allocation8 + $0x34c] sm:$0xf] }
 0x157   :  { %v7921_v62 = vld [vmem:[#allocation8 + $0xee4] sm:$0xf0]  ;;  %v7621_v63 = vld [vmem:[#allocation8 + $0x58c] sm:$0xf] }
 0x158   :  { %v6190_v0 = vld [vmem:[#allocation8 + $0x848] sm:$0xf]  ;;  %v7023_v6 = vor.u32 %v7921_v62, %v7022_v61  ;;  %3790 = vmatpush.bf16.msrb.mxu2 %v6767_v3  ;;  %v5552_v61 = vld [vmem:[#allocation8 + $0x368] sm:$0xf0]  ;;  %v6131_v62 = vor.u32 %v7693_v49, %v6128_v51  ;;  %v8667_v3 = vperm.slane %v8385_v26, 0 }
 0x159   :  { %v7713_v2 = vld [vmem:[#allocation8 + $0x864] sm:$0xf0]  ;;  %v7461_v39 = vld [vmem:[#allocation8 + $0x8c] sm:$0xf] }
 0x15a   :  { %v6446_v4 = vld [vmem:[#allocation8 + $0xa48] sm:$0xf]  ;;  %v6191_v9 = vor.u32 %v7713_v2, %v6190_v0  ;;  %3804 = vmatpush.bf16.msrb.mxu3 %v7023_v6  ;;  %v5840_v0 = vld [vmem:[#allocation8 + $0x5a8] sm:$0xf0]  ;;  %v5299_v2 = vor.u32 %v7485_v55, %v5296_v56  ;;  %v5555_v6 = vor.u32 %v7549_v59, %v5552_v61 }
 0x15b   :  { %v7777_v5 = vld [vmem:[#allocation8 + $0xa64] sm:$0xf0]  ;;  %v7597_v47 = vld [vmem:[#allocation8 + $0x4cc] sm:$0xf] }
 0x15c   :  { %v6734_v7 = vld [vmem:[#allocation8 + $0xc88] sm:$0xf]  ;;  %v6447_v14 = vor.u32 %v7777_v5, %v6446_v4  ;;  %3764 = vmatpush.bf16.msrb.mxu0 %v6191_v9  ;;  %v7685_v4 = vld [vmem:[#allocation8 + $0x78c] sm:$0xf]  ;;  %v5843_v9 = vor.u32 %v7621_v63, %v5840_v0 }
 0x15d   :  { %v7849_v8 = vld [vmem:[#allocation8 + $0xca4] sm:$0xf0]  ;;  %v6096_v5 = vld [vmem:[#allocation8 + $0x7a8] sm:$0xf0] }
 0x15e   :  { %v6990_v10 = vld [vmem:[#allocation8 + $0xe88] sm:$0xf]  ;;  %v6735_v19 = vor.u32 %v7849_v8, %v6734_v7  ;;  %3778 = vmatpush.bf16.msrb.mxu1 %v6447_v14  ;;  %v7477_v7 = vld [vmem:[#allocation8 + $0x10c] sm:$0xf]  ;;  %v6099_v14 = vor.u32 %v7685_v4, %v6096_v5 }
 0x15f   :  { %v7913_v12 = vld [vmem:[#allocation8 + $0xea4] sm:$0xf0]  ;;  %v5264_v8 = vld [vmem:[#allocation8 + $0x128] sm:$0xf0] }
 0x160   :  { %v6158_v13 = vld [vmem:[#allocation8 + $0x808] sm:$0xf]  ;;  %v6991_v23 = vor.u32 %v7913_v12, %v6990_v10  ;;  %3791 = vmatpush.bf16.msrb.mxu2 %v6735_v19  ;;  %v7541_v10 = vld [vmem:[#allocation8 + $0x30c] sm:$0xf]  ;;  %v3501_v19 = vpop.f32.mrf.mxu1  ;;  %v5267_v20 = vor.u32 %v7477_v7, %v5264_v8 }
 0x161   :  { %v7705_v15 = vld [vmem:[#allocation8 + $0x824] sm:$0xf0]  ;;  %v5520_v12 = vld [vmem:[#allocation8 + $0x328] sm:$0xf0] }
 0x162   :  { %v6414_v17 = vld [vmem:[#allocation8 + $0xa08] sm:$0xf]  ;;  %v6159_v29 = vor.u32 %v7705_v15, %v6158_v13  ;;  %3805 = vmatpush.bf16.msrb.mxu3 %v6991_v23  ;;  %v3487_v13 = vpop.f32.mrf.mxu0  ;;  %v7613_v15 = vld [vmem:[#allocation8 + $0x54c] sm:$0xf]  ;;  %v5523_v23 = vor.u32 %v7541_v10, %v5520_v12 }
 0x163   :  { %v7769_v18 = vld [vmem:[#allocation8 + $0xa24] sm:$0xf0]  ;;  %v7453_v56 = vld [vmem:[#allocation8 + $0x4c] sm:$0xf] }
 0x164   :  { %v6702_v52 = vld [vmem:[#allocation8 + $0xc48] sm:$0xf]  ;;  %v6415_v27 = vor.u32 %v7769_v18, %v6414_v17  ;;  %3765 = vmatpush.bf16.msrb.mxu0 %v6159_v29  ;;  %v5808_v17 = vld [vmem:[#allocation8 + $0x568] sm:$0xf0]  ;;  %v3488_v18 = vadd.f32 %v3487_v13, %v8667_v3  ;;  %v7835_v3 = vld [vmem:[#allocation8 + $0xc34] sm:$0xf0] }
 0x165   :  { %v7841_v28 = vld [vmem:[#allocation8 + $0xc64] sm:$0xf0]  ;;  %v5811_v29 = vor.u32 %v7613_v15, %v5808_v17  ;;  %v7517_v59 = vld [vmem:[#allocation8 + $0x24c] sm:$0xf] }
 0x166   :  { %v6958_v30 = vld [vmem:[#allocation8 + $0xe48] sm:$0xf]  ;;  %v6703_v36 = vor.u32 %v7841_v28, %v6702_v52  ;;  %3779 = vmatpush.bf16.msrb.mxu1 %v6415_v27  ;;  %v5232_v52 = vld [vmem:[#allocation8 + $0xe8] sm:$0xf0]  ;;  %v3502_v28 = vadd.f32 %v3501_v19, %v3488_v18  ;;  %v6067_v27 = vor.u32 %v7677_v21, %v6064_v22 }
 0x167   :  { %v7905_v31 = vld [vmem:[#allocation8 + $0xe64] sm:$0xf0]  ;;  %3766 = vmatmul.bf16.vlgmr.msrb.gmra.mxu0 %v8361_v24  ;;  %v5424_v61 = vld [vmem:[#allocation8 + $0x268] sm:$0xf0] }
 0x168   :  { %v6959_v40 = vor.u32 %v7905_v31, %v6958_v30  ;;  %v6670_v41 = vld [vmem:[#allocation8 + $0xc08] sm:$0xf]  ;;  %3814 = vmatpush.bf16.msra.mxu0 %v5363_v32  ;;  %3792 = vmatpush.bf16.msrb.mxu2 %v6703_v36  ;;  %v7533_v30 = vld [vmem:[#allocation8 + $0x2cc] sm:$0xf]  ;;  %v8396_v49 = vpop.f32.mrf.mxu1  ;;  %v5427_v10 = vor.u32 %v7517_v59, %v5424_v61 }
 0x169   :  { %v7833_v42 = vld [vmem:[#allocation8 + $0xc24] sm:$0xf0]  ;;  %3780 = vmatmul.bf16.vlgmr.msrb.gmra.mxu1 %v8363_v33  ;;  %v5488_v31 = vld [vmem:[#allocation8 + $0x2e8] sm:$0xf0] }
 0x16a   :  { %v6926_v43 = vld [vmem:[#allocation8 + $0xe08] sm:$0xf]  ;;  %3828 = vmatpush.bf16.msra.mxu1 %v5619_v35  ;;  %v6671_v54 = vor.u32 %v7833_v42, %v6670_v41  ;;  %3806 = vmatpush.bf16.msrb.mxu3 %v6959_v40  ;;  %v7605_v32 = vld [vmem:[#allocation8 + $0x50c] sm:$0xf]  ;;  %v5235_v35 = vor.u32 %v7469_v25, %v5232_v52  ;;  %v5491_v38 = vor.u32 %v7533_v30, %v5488_v31 }
 0x16b   :  { %v7897_v45 = vld [vmem:[#allocation8 + $0xe24] sm:$0xf0]  ;;  %v7669_v36 = vld [vmem:[#allocation8 + $0x70c] sm:$0xf]  ;;  %v5779_v41 = vor.u32 %v7605_v32, %v5776_v34 }
 0x16c   :  { %v6927_v57 = vor.u32 %v7897_v45, %v6926_v43  ;;  %3815 = vmatpush.bf16.msra.mxu0 %v5331_v48  ;;  %3793 = vmatpush.bf16.msrb.mxu2 %v6671_v54  ;;  %v5200_v40 = vld [vmem:[#allocation8 + $0xa8] sm:$0xf0]  ;;  %v8394_v45 = vpop.f32.mrf.mxu0  ;;  %v6035_v46 = vor.u32 %v7669_v36, %v6032_v37 }
 0x16d   :  { %v7525_v42 = vld [vmem:[#allocation8 + $0x28c] sm:$0xf]  ;;  %v5203_v51 = vor.u32 %v7461_v39, %v5200_v40 }
 0x16e   :  { %3829 = vmatpush.bf16.msra.mxu1 %v5587_v53  ;;  %3807 = vmatpush.bf16.msrb.mxu3 %v6927_v57  ;;  %v5456_v43 = vld [vmem:[#allocation8 + $0x2a8] sm:$0xf0] }
 0x16f   :  { %3794 = vmatmul.bf16.vlgmr.msrb.gmra.mxu2 %v8367_v60  ;;  %v5744_v48 = vld [vmem:[#allocation8 + $0x4e8] sm:$0xf0]  ;;  %v5459_v55 = vor.u32 %v7525_v42, %v5456_v43 }
 0x170   :  { %3842 = vmatpush.bf16.msra.mxu2 %v5875_v58  ;;  %3816 = vmatpush.bf16.msra.mxu0 %v5299_v2  ;;  %v7661_v53 = vld [vmem:[#allocation8 + $0x6cc] sm:$0xf]  ;;  %v5747_v58 = vor.u32 %v7597_v47, %v5744_v48  ;;  %v3515_v2 = vpop.f32.mrf.mxu2 }
 0x171   :  { %3808 = vmatmul.bf16.vlgmr.msrb.gmra.mxu3 %v8369_v1  ;;  %v6000_v54 = vld [vmem:[#allocation8 + $0x6e8] sm:$0xf0]  ;;  %v3516_v8 = vadd.f32 %v3515_v2, %v3502_v28 }
 0x172   :  { %3856 = vmatpush.bf16.msra.mxu3 %v6131_v62  ;;  %3830 = vmatpush.bf16.msra.mxu1 %v5555_v6  ;;  %v5168_v57 = vld [vmem:[#allocation8 + $0x68] sm:$0xf0]  ;;  %v6003_v62 = vor.u32 %v7661_v53, %v6000_v54 }
 0x173   :  { %v7589_v63 = vld [vmem:[#allocation8 + $0x48c] sm:$0xf]  ;;  %v5171_v4 = vor.u32 %v7453_v56, %v5168_v57 }
 0x174   :  { %3843 = vmatpush.bf16.msra.mxu2 %v5843_v9  ;;  %3817 = vmatpush.bf16.msra.mxu0 %v5267_v20  ;;  %v5712_v0 = vld [vmem:[#allocation8 + $0x4a8] sm:$0xf0]  ;;  %v3529_v9 = vpop.f32.mrf.mxu3  ;;  %v3543_v21 = vpop.f32.mrf.mxu0 }
 0x175   :  { %v7653_v5 = vld [vmem:[#allocation8 + $0x68c] sm:$0xf]  ;;  %v5715_v15 = vor.u32 %v7589_v63, %v5712_v0  ;;  %v3530_v20 = vadd.f32 %v3529_v9, %v3516_v8 }
 0x176   :  { %3857 = vmatpush.bf16.msra.mxu3 %v6099_v14  ;;  %3831 = vmatpush.bf16.msra.mxu1 %v5523_v23  ;;  %v5968_v6 = vld [vmem:[#allocation8 + $0x6a8] sm:$0xf0] }
 0x177   :  { %v7445_v7 = vld [vmem:[#allocation8 + $0xc] sm:$0xf]  ;;  %v5971_v22 = vor.u32 %v7653_v5, %v5968_v6 }
 0x178   :  { %3844 = vmatpush.bf16.msra.mxu2 %v5811_v29  ;;  %3818 = vmatpush.bf16.msra.mxu0 %v5235_v35  ;;  %v5136_v12 = vld [vmem:[#allocation8 + $0x28] sm:$0xf0]  ;;  %v3557_v29 = vpop.f32.mrf.mxu1  ;;  %v8398_v48 = vpop.f32.mrf.mxu2 }
 0x179   :  { %v7509_v13 = vld [vmem:[#allocation8 + $0x20c] sm:$0xf]  ;;  %v5139_v28 = vor.u32 %v7445_v7, %v5136_v12 }
 0x17a   :  { %3858 = vmatpush.bf16.msra.mxu3 %v6067_v27  ;;  %3832 = vmatpush.bf16.msra.mxu1 %v5491_v38  ;;  %v5392_v14 = vld [vmem:[#allocation8 + $0x228] sm:$0xf0]  ;;  %v3544_v27 = vadd.f32 %v3543_v21, %v3530_v20 }
 0x17b   :  { %v7757_v17 = vld [vmem:[#allocation8 + $0x9cc] sm:$0xf]  ;;  %v5395_v32 = vor.u32 %v7509_v13, %v5392_v14 }
 0x17c   :  { %3845 = vmatpush.bf16.msra.mxu2 %v5779_v41  ;;  %3819 = vmatpush.bf16.msra.mxu0 %v5203_v51  ;;  %v6384_v18 = vld [vmem:[#allocation8 + $0x9e8] sm:$0xf0]  ;;  %v3558_v41 = vadd.f32 %v3557_v29, %v3544_v27  ;;  %v8403_v0 = vpop.f32.mrf.mxu0 }
 0x17d   :  { %v7821_v19 = vld [vmem:[#allocation8 + $0xbcc] sm:$0xf]  ;;  %v6387_v34 = vor.u32 %v7757_v17, %v6384_v18 }
 0x17e   :  { %3859 = vmatpush.bf16.msra.mxu3 %v6035_v46  ;;  %3833 = vmatpush.bf16.msra.mxu1 %v5459_v55  ;;  %v6640_v23 = vld [vmem:[#allocation8 + $0xbe8] sm:$0xf0]  ;;  %v8400_v55 = vpop.f32.mrf.mxu3 }
 0x17f   :  { %v7581_v25 = vld [vmem:[#allocation8 + $0x44c] sm:$0xf]  ;;  %v6643_v36 = vor.u32 %v7821_v19, %v6640_v23 }
 0x180   :  { %3846 = vmatpush.bf16.msra.mxu2 %v5747_v58  ;;  %v5680_v52 = vld [vmem:[#allocation8 + $0x468] sm:$0xf0]  ;;  %3820 = vmatpush.bf16.msra.mxu0 %v5171_v4  ;;  %v8406_v7 = vpop.f32.mrf.mxu1 }
 0x181   :  { %v7645_v30 = vld [vmem:[#allocation8 + $0x64c] sm:$0xf]  ;;  %v5683_v37 = vor.u32 %v7581_v25, %v5680_v52 }
 0x182   :  { %3860 = vmatpush.bf16.msra.mxu3 %v6003_v62  ;;  %v5936_v31 = vld [vmem:[#allocation8 + $0x668] sm:$0xf0]  ;;  %3834 = vmatpush.bf16.msra.mxu1 %v5427_v10 }
 0x183   :  { %v7749_v35 = vld [vmem:[#allocation8 + $0x98c] sm:$0xf]  ;;  %v5939_v42 = vor.u32 %v7645_v30, %v5936_v31  ;;  %v8666_v30 = vperm.slane %v8385_v26, 1 }
 0x184   :  { %3847 = vmatpush.bf16.msra.mxu2 %v5715_v15  ;;  %v6352_v38 = vld [vmem:[#allocation8 + $0x9a8] sm:$0xf0]  ;;  %3821 = vmatpush.bf16.msra.mxu0 %v5139_v28 }
 0x185   :  { %v7813_v39 = vld [vmem:[#allocation8 + $0xb8c] sm:$0xf]  ;;  %v6355_v56 = vor.u32 %v7749_v35, %v6352_v38 }
 0x186   :  { %v6608_v40 = vld [vmem:[#allocation8 + $0xba8] sm:$0xf0]  ;;  %3861 = vmatpush.bf16.msra.mxu3 %v5971_v22  ;;  %3835 = vmatpush.bf16.msra.mxu1 %v5395_v32  ;;  %v3571_v22 = vpop.f32.mrf.mxu2  ;;  %v3585_v28 = vpop.f32.mrf.mxu3 }
 0x187   :  { %v7573_v43 = vld [vmem:[#allocation8 + $0x40c] sm:$0xf]  ;;  %v6611_v59 = vor.u32 %v7813_v39, %v6608_v40  ;;  %3822 = vmatmul.bf16.vlgmr.msra.gmra.mxu0 %v8345_v11  ;;  %v3572_v29 = vadd.f32 %v3571_v22, %v3558_v41  ;;  %v3599_v41 = vpop.f32.mrf.mxu0 }
 0x188   :  { %v5648_v46 = vld [vmem:[#allocation8 + $0x428] sm:$0xf0]  ;;  %3870 = vmatpush.bf16.msrb.mxu0 %v6387_v34  ;;  %3848 = vmatpush.bf16.msra.mxu2 %v5683_v37 }
 0x189   :  { %v7637_v47 = vld [vmem:[#allocation8 + $0x60c] sm:$0xf]  ;;  %v5651_v61 = vor.u32 %v7573_v43, %v5648_v46  ;;  %3836 = vmatmul.bf16.vlgmr.msra.gmra.mxu1 %v8347_v16  ;;  %v8411_v37 = vadd.f32 %v3585_v28, %v3572_v29 }
 0x18a   :  { %v5904_v51 = vld [vmem:[#allocation8 + $0x628] sm:$0xf0]  ;;  %3884 = vmatpush.bf16.msrb.mxu1 %v6643_v36  ;;  %3862 = vmatpush.bf16.msra.mxu3 %v5939_v42 }
 0x18b   :  { %v7885_v53 = vld [vmem:[#allocation8 + $0xdcc] sm:$0xf]  ;;  %v5907_v2 = vor.u32 %v7637_v47, %v5904_v51  ;;  %8668 = vst [vmem:[#allocation20_spill] sm:$0xff] %v8411_v37  ;;  %v3600_v47 = vadd.f32 %v3599_v41, %v8666_v30  ;;  %v7570_v41 = vld [vmem:[#allocation8 + $0x3ec] sm:$0xf0] }
 0x18c   :  { %v6896_v54 = vld [vmem:[#allocation8 + $0xde8] sm:$0xf0]  ;;  %3871 = vmatpush.bf16.msrb.mxu0 %v6355_v56  ;;  %3849 = vmatpush.bf16.msra.mxu2 %v5651_v61  ;;  %v3613_v56 = vpop.f32.mrf.mxu1  ;;  %v7559_v30 = vld [vmem:[#allocation8 + $0x39c] sm:$0xf] }
 0x18d   :  { %v7949_v57 = vld [vmem:[#allocation8 + $0xfcc] sm:$0xf]  ;;  %v6899_v4 = vor.u32 %v7885_v53, %v6896_v54  ;;  %v3614_v61 = vadd.f32 %v3613_v56, %v3600_v47 }
 0x18e   :  { %v7152_v58 = vld [vmem:[#allocation8 + $0xfe8] sm:$0xf0]  ;;  %3885 = vmatpush.bf16.msrb.mxu1 %v6611_v59  ;;  %3863 = vmatpush.bf16.msra.mxu3 %v5907_v2 }
 0x18f   :  { %v7741_v62 = vld [vmem:[#allocation8 + $0x94c] sm:$0xf]  ;;  %v7155_v8 = vor.u32 %v7949_v57, %v7152_v58  ;;  %3850 = vmatmul.bf16.vlgmr.msra.gmra.mxu2 %v8353_v44 }
 0x190   :  { %v6320_v63 = vld [vmem:[#allocation8 + $0x968] sm:$0xf0]  ;;  %3898 = vmatpush.bf16.msrb.mxu2 %v6899_v4  ;;  %v8415_v4 = vpop.f32.mrf.mxu2 }
 0x191   :  { %v7805_v5 = vld [vmem:[#allocation8 + $0xb4c] sm:$0xf]  ;;  %v6323_v12 = vor.u32 %v7741_v62, %v6320_v63  ;;  %3864 = vmatmul.bf16.vlgmr.msra.gmra.mxu3 %v8355_v50 }
 0x192   :  { %v6576_v6 = vld [vmem:[#allocation8 + $0xb68] sm:$0xf0]  ;;  %3912 = vmatpush.bf16.msrb.mxu3 %v7155_v8 }
 0x193   :  { %v7877_v9 = vld [vmem:[#allocation8 + $0xd8c] sm:$0xf]  ;;  %v6579_v15 = vor.u32 %v7805_v5, %v6576_v6  ;;  %3872 = vmatpush.bf16.msrb.mxu0 %v6323_v12 }
 0x194   :  { %v6864_v10 = vld [vmem:[#allocation8 + $0xda8] sm:$0xf0] }
 0x195   :  { %v7941_v13 = vld [vmem:[#allocation8 + $0xf8c] sm:$0xf]  ;;  %v6867_v19 = vor.u32 %v7877_v9, %v6864_v10  ;;  %3886 = vmatpush.bf16.msrb.mxu1 %v6579_v15  ;;  %v8417_v9 = vpop.f32.mrf.mxu3 }
 0x196   :  { %v7120_v14 = vld [vmem:[#allocation8 + $0xfa8] sm:$0xf0]  ;;  %8669 = vst [vmem:[#allocation21_spill] sm:$0xff] %v8417_v9  ;;  %v7751_v9 = vld [vmem:[#allocation8 + $0x99c] sm:$0xf] }
 0x197   :  { %v7733_v17 = vld [vmem:[#allocation8 + $0x90c] sm:$0xf]  ;;  %v7123_v23 = vor.u32 %v7941_v13, %v7120_v14  ;;  %3899 = vmatpush.bf16.msrb.mxu2 %v6867_v19 }
 0x198   :  { %v6288_v18 = vld [vmem:[#allocation8 + $0x928] sm:$0xf0] }
 0x199   :  { %v7797_v20 = vld [vmem:[#allocation8 + $0xb0c] sm:$0xf]  ;;  %v6291_v31 = vor.u32 %v7733_v17, %v6288_v18  ;;  %3913 = vmatpush.bf16.msrb.mxu3 %v7123_v23 }
 0x19a   :  { %v6544_v21 = vld [vmem:[#allocation8 + $0xb28] sm:$0xf0] }
 0x19b   :  { %v7869_v25 = vld [vmem:[#allocation8 + $0xd4c] sm:$0xf]  ;;  %v6547_v34 = vor.u32 %v7797_v20, %v6544_v21  ;;  %3873 = vmatpush.bf16.msrb.mxu0 %v6291_v31 }
 0x19c   :  { %v6832_v52 = vld [vmem:[#allocation8 + $0xd68] sm:$0xf0] }
 0x19d   :  { %v7933_v27 = vld [vmem:[#allocation8 + $0xf4c] sm:$0xf]  ;;  %v6835_v38 = vor.u32 %v7869_v25, %v6832_v52  ;;  %3887 = vmatpush.bf16.msrb.mxu1 %v6547_v34 }
 0x19e   :  { %v7088_v32 = vld [vmem:[#allocation8 + $0xf68] sm:$0xf0] }
 0x19f   :  { %v7725_v35 = vld [vmem:[#allocation8 + $0x8cc] sm:$0xf]  ;;  %v7091_v42 = vor.u32 %v7933_v27, %v7088_v32  ;;  %3900 = vmatpush.bf16.msrb.mxu2 %v6835_v38  ;;  %v7506_v38 = vld [vmem:[#allocation8 + $0x1ec] sm:$0xf0] }
 0x1a0   :  { %v6256_v36 = vld [vmem:[#allocation8 + $0x8e8] sm:$0xf0] }
 0x1a1   :  { %v7789_v39 = vld [vmem:[#allocation8 + $0xacc] sm:$0xf]  ;;  %v6259_v51 = vor.u32 %v7725_v35, %v6256_v36  ;;  %3914 = vmatpush.bf16.msrb.mxu3 %v7091_v42  ;;  %v5366_v36 = vld [vmem:[#allocation8 + $0x1d0] sm:$0xf] }
 0x1a2   :  { %v6512_v40 = vld [vmem:[#allocation8 + $0xae8] sm:$0xf0] }
 0x1a3   :  { %v7861_v43 = vld [vmem:[#allocation8 + $0xd0c] sm:$0xf]  ;;  %v6515_v57 = vor.u32 %v7789_v39, %v6512_v40  ;;  %3874 = vmatpush.bf16.msrb.mxu0 %v6259_v51  ;;  %v5622_v39 = vld [vmem:[#allocation8 + $0x3d0] sm:$0xf] }
 0x1a4   :  { %v6800_v46 = vld [vmem:[#allocation8 + $0xd28] sm:$0xf0] }
 0x1a5   :  { %v7925_v53 = vld [vmem:[#allocation8 + $0xf0c] sm:$0xf]  ;;  %v6803_v62 = vor.u32 %v7861_v43, %v6800_v46  ;;  %3888 = vmatpush.bf16.msrb.mxu1 %v6515_v57  ;;  %v3627_v46 = vpop.f32.mrf.mxu2  ;;  %v5367_v57 = vor.u32 %v7506_v38, %v5366_v36  ;;  %v6102_v38 = vld [vmem:[#allocation8 + $0x790] sm:$0xf] }
 0x1a6   :  { %v7056_v54 = vld [vmem:[#allocation8 + $0xf28] sm:$0xf0] }
 0x1a7   :  { %v7717_v58 = vld [vmem:[#allocation8 + $0x88c] sm:$0xf]  ;;  %v7059_v5 = vor.u32 %v7925_v53, %v7056_v54  ;;  %3901 = vmatpush.bf16.msrb.mxu2 %v6803_v62  ;;  %v3628_v54 = vadd.f32 %v3627_v46, %v3614_v61  ;;  %v5623_v62 = vor.u32 %v7570_v41, %v5622_v39  ;;  %v7690_v39 = vld [vmem:[#allocation8 + $0x7ac] sm:$0xf0] }
 0x1a8   :  { %v6224_v59 = vld [vmem:[#allocation8 + $0x8a8] sm:$0xf0] }
 0x1a9   :  { %v7781_v63 = vld [vmem:[#allocation8 + $0xa8c] sm:$0xf]  ;;  %v6227_v10 = vor.u32 %v7717_v58, %v6224_v59  ;;  %3915 = vmatpush.bf16.msrb.mxu3 %v7059_v5  ;;  %v5334_v58 = vld [vmem:[#allocation8 + $0x190] sm:$0xf]  ;;  %v3641_v59 = vpop.f32.mrf.mxu3 }
 0x1aa   :  { %v6480_v2 = vld [vmem:[#allocation8 + $0xaa8] sm:$0xf0]  ;;  %v5590_v5 = vld [vmem:[#allocation8 + $0x390] sm:$0xf] }
 0x1ab   :  { %v7853_v6 = vld [vmem:[#allocation8 + $0xccc] sm:$0xf]  ;;  %v6483_v14 = vor.u32 %v7781_v63, %v6480_v2  ;;  %3875 = vmatpush.bf16.msrb.mxu0 %v6227_v10  ;;  %v7498_v2 = vld [vmem:[#allocation8 + $0x1ac] sm:$0xf0] }
 0x1ac   :  { %v6768_v8 = vld [vmem:[#allocation8 + $0xce8] sm:$0xf0] }
 0x1ad   :  { %v7917_v12 = vld [vmem:[#allocation8 + $0xecc] sm:$0xf]  ;;  %v6771_v18 = vor.u32 %v7853_v6, %v6768_v8  ;;  %3889 = vmatpush.bf16.msrb.mxu1 %v6483_v14  ;;  %v7562_v6 = vld [vmem:[#allocation8 + $0x3ac] sm:$0xf0]  ;;  %v8419_v8 = vadd.f32 %v3641_v59, %v3628_v54 }
 0x1ae   :  { %v7024_v13 = vld [vmem:[#allocation8 + $0xee8] sm:$0xf0]  ;;  %v5814_v54 = vld [vmem:[#allocation8 + $0x550] sm:$0xf] }
 0x1af   :  { %v7709_v15 = vld [vmem:[#allocation8 + $0x84c] sm:$0xf]  ;;  %v7027_v21 = vor.u32 %v7917_v12, %v7024_v13  ;;  %3902 = vmatpush.bf16.msrb.mxu2 %v6771_v18  ;;  %v5335_v18 = vor.u32 %v7498_v2, %v5334_v58  ;;  %v6070_v58 = vld [vmem:[#allocation8 + $0x750] sm:$0xf] }
 0x1b0   :  { %v6192_v17 = vld [vmem:[#allocation8 + $0x868] sm:$0xf0]  ;;  %v7682_v59 = vld [vmem:[#allocation8 + $0x76c] sm:$0xf0] }
 0x1b1   :  { %v7773_v19 = vld [vmem:[#allocation8 + $0xa4c] sm:$0xf]  ;;  %v6195_v25 = vor.u32 %v7709_v15, %v6192_v17  ;;  %3916 = vmatpush.bf16.msrb.mxu3 %v7027_v21  ;;  %v5878_v15 = vld [vmem:[#allocation8 + $0x5d0] sm:$0xf]  ;;  %v5591_v21 = vor.u32 %v7562_v6, %v5590_v5 }
 0x1b2   :  { %v6448_v20 = vld [vmem:[#allocation8 + $0xa68] sm:$0xf0]  ;;  %v7634_v17 = vld [vmem:[#allocation8 + $0x5ec] sm:$0xf0] }
 0x1b3   :  { %v7845_v22 = vld [vmem:[#allocation8 + $0xc8c] sm:$0xf]  ;;  %v6451_v31 = vor.u32 %v7773_v19, %v6448_v20  ;;  %3876 = vmatpush.bf16.msrb.mxu0 %v6195_v25  ;;  %v6134_v19 = vld [vmem:[#allocation8 + $0x7d0] sm:$0xf] }
 0x1b4   :  { %v6736_v23 = vld [vmem:[#allocation8 + $0xca8] sm:$0xf0]  ;;  %v7698_v20 = vld [vmem:[#allocation8 + $0x7ec] sm:$0xf0] }
 0x1b5   :  { %v7909_v52 = vld [vmem:[#allocation8 + $0xe8c] sm:$0xf]  ;;  %v6739_v35 = vor.u32 %v7845_v22, %v6736_v23  ;;  %3890 = vmatpush.bf16.msrb.mxu1 %v6451_v31  ;;  %v5302_v23 = vld [vmem:[#allocation8 + $0x150] sm:$0xf] }
 0x1b6   :  { %v6992_v29 = vld [vmem:[#allocation8 + $0xea8] sm:$0xf0]  ;;  %v7490_v25 = vld [vmem:[#allocation8 + $0x16c] sm:$0xf0] }
 0x1b7   :  { %v7701_v28 = vld [vmem:[#allocation8 + $0x80c] sm:$0xf]  ;;  %v6995_v40 = vor.u32 %v7909_v52, %v6992_v29  ;;  %3903 = vmatpush.bf16.msrb.mxu2 %v6739_v35  ;;  %v5879_v29 = vor.u32 %v7634_v17, %v5878_v15  ;;  %v7554_v31 = vld [vmem:[#allocation8 + $0x36c] sm:$0xf0]  ;;  %v5303_v36 = vor.u32 %v7490_v25, %v5302_v23 }
 0x1b8   :  { %v6160_v27 = vld [vmem:[#allocation8 + $0x828] sm:$0xf0]  ;;  %v7626_v35 = vld [vmem:[#allocation8 + $0x5ac] sm:$0xf0] }
 0x1b9   :  { %v7765_v32 = vld [vmem:[#allocation8 + $0xa0c] sm:$0xf]  ;;  %v6163_v47 = vor.u32 %v7701_v28, %v6160_v27  ;;  %3917 = vmatpush.bf16.msrb.mxu3 %v6995_v40  ;;  %v5558_v28 = vld [vmem:[#allocation8 + $0x350] sm:$0xf]  ;;  %v8422_v27 = vpop.f32.mrf.mxu0  ;;  %v8425_v40 = vpop.f32.mrf.mxu1 }
 0x1ba   :  { %v6416_v34 = vld [vmem:[#allocation8 + $0xa28] sm:$0xf0]  ;;  %v5559_v41 = vor.u32 %v7554_v31, %v5558_v28  ;;  %v7474_v2 = vld [vmem:[#allocation8 + $0xec] sm:$0xf0]  ;;  %v8430_v31 = vpop.f32.mrf.mxu2 }
 0x1bb   :  { %v7837_v42 = vld [vmem:[#allocation8 + $0xc4c] sm:$0xf]  ;;  %v6419_v56 = vor.u32 %v7765_v32, %v6416_v34  ;;  %3877 = vmatpush.bf16.msrb.mxu0 %v6163_v47  ;;  %v6135_v32 = vor.u32 %v7698_v20, %v6134_v19  ;;  %v5846_v34 = vld [vmem:[#allocation8 + $0x590] sm:$0xf] }
 0x1bc   :  { %v6704_v43 = vld [vmem:[#allocation8 + $0xc68] sm:$0xf0]  ;;  %v5847_v46 = vor.u32 %v7626_v35, %v5846_v34  ;;  %v5526_v47 = vld [vmem:[#allocation8 + $0x310] sm:$0xf] }
 0x1bd   :  { %v7901_v51 = vld [vmem:[#allocation8 + $0xe4c] sm:$0xf]  ;;  %v6707_v63 = vor.u32 %v7837_v42, %v6704_v43  ;;  %3891 = vmatpush.bf16.msrb.mxu1 %v6419_v56  ;;  %v5270_v42 = vld [vmem:[#allocation8 + $0x110] sm:$0xf] }
 0x1be   :  { %v6960_v53 = vld [vmem:[#allocation8 + $0xe68] sm:$0xf0]  ;;  %3878 = vmatmul.bf16.vlgmr.msrb.gmra.mxu0 %v8361_v24  ;;  %v7482_v43 = vld [vmem:[#allocation8 + $0x12c] sm:$0xf0] }
 0x1bf   :  { %v6963_v10 = vor.u32 %v7901_v51, %v6960_v53  ;;  %v7829_v12 = vld [vmem:[#allocation8 + $0xc0c] sm:$0xf]  ;;  %3926 = vmatpush.bf16.msra.mxu0 %v5367_v57  ;;  %3904 = vmatpush.bf16.msrb.mxu2 %v6707_v63  ;;  %v7546_v51 = vld [vmem:[#allocation8 + $0x32c] sm:$0xf0]  ;;  %v6103_v53 = vor.u32 %v7690_v39, %v6102_v38  ;;  %v5271_v57 = vor.u32 %v7482_v43, %v5270_v42  ;;  %v8432_v39 = vpop.f32.mrf.mxu3 }
 0x1c0   :  { %v6672_v13 = vld [vmem:[#allocation8 + $0xc28] sm:$0xf0]  ;;  %3892 = vmatmul.bf16.vlgmr.msrb.gmra.mxu1 %v8363_v33  ;;  %v7618_v56 = vld [vmem:[#allocation8 + $0x56c] sm:$0xf0] }
 0x1c1   :  { %v7893_v14 = vld [vmem:[#allocation8 + $0xe0c] sm:$0xf]  ;;  %3940 = vmatpush.bf16.msra.mxu1 %v5623_v62  ;;  %v6675_v22 = vor.u32 %v7829_v12, %v6672_v13  ;;  %3918 = vmatpush.bf16.msrb.mxu3 %v6963_v10  ;;  %v5527_v62 = vor.u32 %v7546_v51, %v5526_v47  ;;  %v5238_v63 = vld [vmem:[#allocation8 + $0xd0] sm:$0xf]  ;;  %v5815_v5 = vor.u32 %v7618_v56, %v5814_v54  ;;  %v3655_v12 = vpop.f32.mrf.mxu0  ;;  %v3669_v20 = vpop.f32.mrf.mxu1 }
 0x1c2   :  { %v6928_v61 = vld [vmem:[#allocation8 + $0xe28] sm:$0xf0]  ;;  %v5494_v6 = vld [vmem:[#allocation8 + $0x2d0] sm:$0xf]  ;;  %v6071_v13 = vor.u32 %v7682_v59, %v6070_v58  ;;  %v3656_v15 = vadd.f32 %v3655_v12, %v8419_v8  ;;  %v5239_v17 = vor.u32 %v7474_v2, %v5238_v63 }
 0x1c3   :  { %v6931_v52 = vor.u32 %v7893_v14, %v6928_v61  ;;  %3927 = vmatpush.bf16.msra.mxu0 %v5335_v18  ;;  %3905 = vmatpush.bf16.msrb.mxu2 %v6675_v22  ;;  %v7538_v10 = vld [vmem:[#allocation8 + $0x2ec] sm:$0xf0] }
 0x1c4   :  { %v5782_v14 = vld [vmem:[#allocation8 + $0x510] sm:$0xf]  ;;  %v3670_v25 = vadd.f32 %v3669_v20, %v3656_v15 }
 0x1c5   :  { %3941 = vmatpush.bf16.msra.mxu1 %v5591_v21  ;;  %3919 = vmatpush.bf16.msrb.mxu3 %v6931_v52  ;;  %v7610_v61 = vld [vmem:[#allocation8 + $0x52c] sm:$0xf0]  ;;  %v5495_v21 = vor.u32 %v7538_v10, %v5494_v6 }
 0x1c6   :  { %3906 = vmatmul.bf16.vlgmr.msrb.gmra.mxu2 %v8367_v60  ;;  %v6038_v18 = vld [vmem:[#allocation8 + $0x710] sm:$0xf]  ;;  %v5783_v52 = vor.u32 %v7610_v61, %v5782_v14  ;;  %v3683_v61 = vpop.f32.mrf.mxu2 }
 0x1c7   :  { %3954 = vmatpush.bf16.msra.mxu2 %v5879_v29  ;;  %3928 = vmatpush.bf16.msra.mxu0 %v5303_v36  ;;  %v7674_v19 = vld [vmem:[#allocation8 + $0x72c] sm:$0xf0]  ;;  %v3684_v20 = vadd.f32 %v3683_v61, %v3670_v25 }
 0x1c8   :  { %3920 = vmatmul.bf16.vlgmr.msrb.gmra.mxu3 %v8369_v1  ;;  %v5206_v22 = vld [vmem:[#allocation8 + $0x90] sm:$0xf] }
 0x1c9   :  { %3968 = vmatpush.bf16.msra.mxu3 %v6135_v32  ;;  %3942 = vmatpush.bf16.msra.mxu1 %v5559_v41  ;;  %v7466_v23 = vld [vmem:[#allocation8 + $0xac] sm:$0xf0]  ;;  %v6039_v32 = vor.u32 %v7674_v19, %v6038_v18 }
 0x1ca   :  { %v5462_v29 = vld [vmem:[#allocation8 + $0x290] sm:$0xf]  ;;  %v5207_v35 = vor.u32 %v7466_v23, %v5206_v22 }
 0x1cb   :  { %3955 = vmatpush.bf16.msra.mxu2 %v5847_v46  ;;  %3929 = vmatpush.bf16.msra.mxu0 %v5271_v57  ;;  %v7530_v28 = vld [vmem:[#allocation8 + $0x2ac] sm:$0xf0] }
 0x1cc   :  { %v5750_v34 = vld [vmem:[#allocation8 + $0x4d0] sm:$0xf]  ;;  %v5463_v41 = vor.u32 %v7530_v28, %v5462_v29 }
 0x1cd   :  { %3969 = vmatpush.bf16.msra.mxu3 %v6103_v53  ;;  %3943 = vmatpush.bf16.msra.mxu1 %v5527_v62  ;;  %v7602_v8 = vld [vmem:[#allocation8 + $0x4ec] sm:$0xf0] }
 0x1ce   :  { %v6006_v36 = vld [vmem:[#allocation8 + $0x6d0] sm:$0xf]  ;;  %v5751_v46 = vor.u32 %v7602_v8, %v5750_v34 }
 0x1cf   :  { %3956 = vmatpush.bf16.msra.mxu2 %v5815_v5  ;;  %3930 = vmatpush.bf16.msra.mxu0 %v5239_v17  ;;  %v7666_v38 = vld [vmem:[#allocation8 + $0x6ec] sm:$0xf0] }
 0x1d0   :  { %v5174_v42 = vld [vmem:[#allocation8 + $0x50] sm:$0xf]  ;;  %v6007_v53 = vor.u32 %v7666_v38, %v6006_v36 }
 0x1d1   :  { %3970 = vmatpush.bf16.msra.mxu3 %v6071_v13  ;;  %3944 = vmatpush.bf16.msra.mxu1 %v5495_v21  ;;  %v7458_v43 = vld [vmem:[#allocation8 + $0x6c] sm:$0xf0] }
 0x1d2   :  { %v5430_v47 = vld [vmem:[#allocation8 + $0x250] sm:$0xf]  ;;  %v5175_v57 = vor.u32 %v7458_v43, %v5174_v42 }
 0x1d3   :  { %3957 = vmatpush.bf16.msra.mxu2 %v5783_v52  ;;  %v7522_v51 = vld [vmem:[#allocation8 + $0x26c] sm:$0xf0]  ;;  %3931 = vmatpush.bf16.msra.mxu0 %v5207_v35  ;;  %v3697_v52 = vpop.f32.mrf.mxu3 }
 0x1d4   :  { %v5718_v54 = vld [vmem:[#allocation8 + $0x490] sm:$0xf]  ;;  %v5431_v63 = vor.u32 %v7522_v51, %v5430_v47  ;;  %v8434_v34 = vadd.f32 %v3697_v52, %v3684_v20 }
 0x1d5   :  { %3971 = vmatpush.bf16.msra.mxu3 %v6039_v32  ;;  %v7594_v56 = vld [vmem:[#allocation8 + $0x4ac] sm:$0xf0]  ;;  %3945 = vmatpush.bf16.msra.mxu1 %v5463_v41 }
 0x1d6   :  { %v5974_v58 = vld [vmem:[#allocation8 + $0x690] sm:$0xf]  ;;  %v5719_v10 = vor.u32 %v7594_v56, %v5718_v54  ;;  %8670 = vst [vmem:[#allocation22_spill] sm:$0xff] %v8434_v34 }
 0x1d7   :  { %v7658_v59 = vld [vmem:[#allocation8 + $0x6ac] sm:$0xf0]  ;;  %3958 = vmatpush.bf16.msra.mxu2 %v5751_v46  ;;  %3932 = vmatpush.bf16.msra.mxu0 %v5175_v57 }
 0x1d8   :  { %v5142_v62 = vld [vmem:[#allocation8 + $0x10] sm:$0xf]  ;;  %v5975_v15 = vor.u32 %v7658_v59, %v5974_v58 }
 0x1d9   :  { %v7450_v2 = vld [vmem:[#allocation8 + $0x2c] sm:$0xf0]  ;;  %3972 = vmatpush.bf16.msra.mxu3 %v6007_v53  ;;  %3946 = vmatpush.bf16.msra.mxu1 %v5431_v63 }
 0x1da   :  { %v5398_v5 = vld [vmem:[#allocation8 + $0x210] sm:$0xf]  ;;  %v5143_v21 = vor.u32 %v7450_v2, %v5142_v62 }
 0x1db   :  { %v7514_v6 = vld [vmem:[#allocation8 + $0x22c] sm:$0xf0]  ;;  %3959 = vmatpush.bf16.msra.mxu2 %v5719_v10 }
 0x1dc   :  { %v6390_v12 = vld [vmem:[#allocation8 + $0x9d0] sm:$0xf]  ;;  %v5399_v29 = vor.u32 %v7514_v6, %v5398_v5  ;;  %3933 = vmatpush.bf16.msra.mxu0 %v5143_v21 }
 0x1dd   :  { %v7762_v13 = vld [vmem:[#allocation8 + $0x9ec] sm:$0xf0]  ;;  %3973 = vmatpush.bf16.msra.mxu3 %v5975_v15 }
 0x1de   :  { %v6646_v14 = vld [vmem:[#allocation8 + $0xbd0] sm:$0xf]  ;;  %v6391_v28 = vor.u32 %v7762_v13, %v6390_v12  ;;  %3947 = vmatpush.bf16.msra.mxu1 %v5399_v29  ;;  %v8437_v12 = vpop.f32.mrf.mxu0 }
 0x1df   :  { %v7826_v17 = vld [vmem:[#allocation8 + $0xbec] sm:$0xf0]  ;;  %3934 = vmatmul.bf16.vlgmr.msra.gmra.mxu0 %v8345_v11 }
 0x1e0   :  { %v5686_v18 = vld [vmem:[#allocation8 + $0x450] sm:$0xf]  ;;  %v6647_v8 = vor.u32 %v7826_v17, %v6646_v14  ;;  %3982 = vmatpush.bf16.msrb.mxu0 %v6391_v28 }
 0x1e1   :  { %v7586_v19 = vld [vmem:[#allocation8 + $0x46c] sm:$0xf0]  ;;  %3948 = vmatmul.bf16.vlgmr.msra.gmra.mxu1 %v8347_v16 }
 0x1e2   :  { %v5942_v22 = vld [vmem:[#allocation8 + $0x650] sm:$0xf]  ;;  %v5687_v35 = vor.u32 %v7586_v19, %v5686_v18  ;;  %3996 = vmatpush.bf16.msrb.mxu1 %v6647_v8  ;;  %v8440_v19 = vpop.f32.mrf.mxu1 }
 0x1e3   :  { %v7650_v23 = vld [vmem:[#allocation8 + $0x66c] sm:$0xf0] }
 0x1e4   :  { %v6358_v32 = vld [vmem:[#allocation8 + $0x990] sm:$0xf]  ;;  %v5943_v42 = vor.u32 %v7650_v23, %v5942_v22  ;;  %3960 = vmatpush.bf16.msra.mxu2 %v5687_v35  ;;  %v8665_v35 = vperm.slane %v8385_v26, 2 }
 0x1e5   :  { %v7754_v36 = vld [vmem:[#allocation8 + $0x9ac] sm:$0xf0] }
 0x1e6   :  { %v6614_v38 = vld [vmem:[#allocation8 + $0xb90] sm:$0xf]  ;;  %v6359_v54 = vor.u32 %v7754_v36, %v6358_v32  ;;  %3974 = vmatpush.bf16.msra.mxu3 %v5943_v42 }
 0x1e7   :  { %v7818_v41 = vld [vmem:[#allocation8 + $0xbac] sm:$0xf0] }
 0x1e8   :  { %v5654_v25 = vld [vmem:[#allocation8 + $0x410] sm:$0xf]  ;;  %v6615_v58 = vor.u32 %v7818_v41, %v6614_v38  ;;  %3983 = vmatpush.bf16.msrb.mxu0 %v6359_v54 }
 0x1e9   :  { %v7578_v43 = vld [vmem:[#allocation8 + $0x42c] sm:$0xf0] }
 0x1ea   :  { %v5910_v46 = vld [vmem:[#allocation8 + $0x610] sm:$0xf]  ;;  %v5655_v59 = vor.u32 %v7578_v43, %v5654_v25  ;;  %3997 = vmatpush.bf16.msrb.mxu1 %v6615_v58 }
 0x1eb   :  { %v7642_v47 = vld [vmem:[#allocation8 + $0x62c] sm:$0xf0] }
 0x1ec   :  { %v6902_v51 = vld [vmem:[#allocation8 + $0xdd0] sm:$0xf]  ;;  %v5911_v2 = vor.u32 %v7642_v47, %v5910_v46  ;;  %3961 = vmatpush.bf16.msra.mxu2 %v5655_v59 }
 0x1ed   :  { %v7890_v53 = vld [vmem:[#allocation8 + $0xdec] sm:$0xf0] }
 0x1ee   :  { %v7158_v56 = vld [vmem:[#allocation8 + $0xfd0] sm:$0xf]  ;;  %v6903_v5 = vor.u32 %v7890_v53, %v6902_v51  ;;  %3975 = vmatpush.bf16.msra.mxu3 %v5911_v2  ;;  %v3711_v53 = vpop.f32.mrf.mxu0  ;;  %v3725_v2 = vpop.f32.mrf.mxu1 }
 0x1ef   :  { %v7954_v57 = vld [vmem:[#allocation8 + $0xfec] sm:$0xf0]  ;;  %3962 = vmatmul.bf16.vlgmr.msra.gmra.mxu2 %v8353_v44  ;;  %v3712_v58 = vadd.f32 %v3711_v53, %v8665_v35 }
 0x1f0   :  { %v6326_v62 = vld [vmem:[#allocation8 + $0x950] sm:$0xf]  ;;  %v7159_v13 = vor.u32 %v7954_v57, %v7158_v56  ;;  %4010 = vmatpush.bf16.msrb.mxu2 %v6903_v5 }
 0x1f1   :  { %v7746_v63 = vld [vmem:[#allocation8 + $0x96c] sm:$0xf0]  ;;  %3976 = vmatmul.bf16.vlgmr.msra.gmra.mxu3 %v8355_v50 }
 0x1f2   :  { %v6582_v6 = vld [vmem:[#allocation8 + $0xb50] sm:$0xf]  ;;  %v6327_v15 = vor.u32 %v7746_v63, %v6326_v62  ;;  %4024 = vmatpush.bf16.msrb.mxu3 %v7159_v13  ;;  %v3726_v13 = vadd.f32 %v3725_v2, %v3712_v58  ;;  %v7566_v2 = vld [vmem:[#allocation8 + $0x3d4] sm:$0xf] }
 0x1f3   :  { %v7810_v10 = vld [vmem:[#allocation8 + $0xb6c] sm:$0xf0] }
 0x1f4   :  { %v6870_v14 = vld [vmem:[#allocation8 + $0xd90] sm:$0xf]  ;;  %v6583_v20 = vor.u32 %v7810_v10, %v6582_v6  ;;  %3984 = vmatpush.bf16.msrb.mxu0 %v6327_v15 }
 0x1f5   :  { %v7882_v61 = vld [vmem:[#allocation8 + $0xdac] sm:$0xf0] }
 0x1f6   :  { %v7126_v17 = vld [vmem:[#allocation8 + $0xf90] sm:$0xf]  ;;  %v6871_v23 = vor.u32 %v7882_v61, %v6870_v14  ;;  %3998 = vmatpush.bf16.msrb.mxu1 %v6583_v20 }
 0x1f7   :  { %v7946_v18 = vld [vmem:[#allocation8 + $0xfac] sm:$0xf0] }
 0x1f8   :  { %v6294_v21 = vld [vmem:[#allocation8 + $0x910] sm:$0xf]  ;;  %v7127_v28 = vor.u32 %v7946_v18, %v7126_v17  ;;  %4011 = vmatpush.bf16.msrb.mxu2 %v6871_v23  ;;  %v8447_v17 = vpop.f32.mrf.mxu2 }
 0x1f9   :  { %v7738_v22 = vld [vmem:[#allocation8 + $0x92c] sm:$0xf0] }
 0x1fa   :  { %v6550_v52 = vld [vmem:[#allocation8 + $0xb10] sm:$0xf]  ;;  %v6295_v36 = vor.u32 %v7738_v22, %v6294_v21  ;;  %4025 = vmatpush.bf16.msrb.mxu3 %v7127_v28 }
 0x1fb   :  { %v7802_v29 = vld [vmem:[#allocation8 + $0xb2c] sm:$0xf0] }
 0x1fc   :  { %v6838_v32 = vld [vmem:[#allocation8 + $0xd50] sm:$0xf]  ;;  %v6551_v42 = vor.u32 %v7802_v29, %v6550_v52  ;;  %3985 = vmatpush.bf16.msrb.mxu0 %v6295_v36  ;;  %v8449_v29 = vpop.f32.mrf.mxu3 }
 0x1fd   :  { %v7874_v8 = vld [vmem:[#allocation8 + $0xd6c] sm:$0xf0]  ;;  %8671 = vst [vmem:[#allocation23_spill] sm:$0xff] %v8449_v29 }
 0x1fe   :  { %v7094_v38 = vld [vmem:[#allocation8 + $0xf50] sm:$0xf]  ;;  %v6839_v46 = vor.u32 %v7874_v8, %v6838_v32  ;;  %3999 = vmatpush.bf16.msrb.mxu1 %v6551_v42 }
 0x1ff   :  { %v7938_v41 = vld [vmem:[#allocation8 + $0xf6c] sm:$0xf0] }
 0x200   :  { %v6262_v25 = vld [vmem:[#allocation8 + $0x8d0] sm:$0xf]  ;;  %v7095_v54 = vor.u32 %v7938_v41, %v7094_v38  ;;  %4012 = vmatpush.bf16.msrb.mxu2 %v6839_v46 }
 0x201   :  { %v7730_v43 = vld [vmem:[#allocation8 + $0x8ec] sm:$0xf0] }
 0x202   :  { %v6518_v47 = vld [vmem:[#allocation8 + $0xad0] sm:$0xf]  ;;  %v6263_v59 = vor.u32 %v7730_v43, %v6262_v25  ;;  %4026 = vmatpush.bf16.msrb.mxu3 %v7095_v54 }
 0x203   :  { %v7794_v51 = vld [vmem:[#allocation8 + $0xaec] sm:$0xf0] }
 0x204   :  { %v6806_v56 = vld [vmem:[#allocation8 + $0xd10] sm:$0xf]  ;;  %v6519_v5 = vor.u32 %v7794_v51, %v6518_v47  ;;  %3986 = vmatpush.bf16.msrb.mxu0 %v6263_v59 }
 0x205   :  { %v7866_v57 = vld [vmem:[#allocation8 + $0xd2c] sm:$0xf0] }
 0x206   :  { %v7062_v62 = vld [vmem:[#allocation8 + $0xf10] sm:$0xf]  ;;  %v6807_v14 = vor.u32 %v7866_v57, %v6806_v56  ;;  %4000 = vmatpush.bf16.msrb.mxu1 %v6519_v5  ;;  %v3739_v5 = vpop.f32.mrf.mxu2 }
 0x207   :  { %v7930_v63 = vld [vmem:[#allocation8 + $0xf2c] sm:$0xf0] }
 0x208   :  { %v6230_v6 = vld [vmem:[#allocation8 + $0x890] sm:$0xf]  ;;  %v7063_v18 = vor.u32 %v7930_v63, %v7062_v62  ;;  %4013 = vmatpush.bf16.msrb.mxu2 %v6807_v14  ;;  %v7502_v62 = vld [vmem:[#allocation8 + $0x1d4] sm:$0xf] }
 0x209   :  { %v7722_v10 = vld [vmem:[#allocation8 + $0x8ac] sm:$0xf0]  ;;  %v5368_v63 = vld [vmem:[#allocation8 + $0x1f0] sm:$0xf0] }
 0x20a   :  { %v6486_v61 = vld [vmem:[#allocation8 + $0xa90] sm:$0xf]  ;;  %v6231_v22 = vor.u32 %v7722_v10, %v6230_v6  ;;  %4027 = vmatpush.bf16.msrb.mxu3 %v7063_v18  ;;  %v5624_v10 = vld [vmem:[#allocation8 + $0x3f0] sm:$0xf0] }
 0x20b   :  { %v7786_v15 = vld [vmem:[#allocation8 + $0xaac] sm:$0xf0] }
 0x20c   :  { %v6774_v20 = vld [vmem:[#allocation8 + $0xcd0] sm:$0xf]  ;;  %v6487_v28 = vor.u32 %v7786_v15, %v6486_v61  ;;  %3987 = vmatpush.bf16.msrb.mxu0 %v6231_v22  ;;  %v3740_v15 = vadd.f32 %v3739_v5, %v3726_v13  ;;  %v3753_v22 = vpop.f32.mrf.mxu3 }
 0x20d   :  { %v7858_v21 = vld [vmem:[#allocation8 + $0xcec] sm:$0xf0] }
 0x20e   :  { %v7030_v23 = vld [vmem:[#allocation8 + $0xed0] sm:$0xf]  ;;  %v6775_v36 = vor.u32 %v7858_v21, %v6774_v20  ;;  %4001 = vmatpush.bf16.msrb.mxu1 %v6487_v28  ;;  %v7494_v28 = vld [vmem:[#allocation8 + $0x194] sm:$0xf] }
 0x20f   :  { %v7922_v52 = vld [vmem:[#allocation8 + $0xeec] sm:$0xf0] }
 0x210   :  { %v6198_v32 = vld [vmem:[#allocation8 + $0x850] sm:$0xf]  ;;  %v7031_v42 = vor.u32 %v7922_v52, %v7030_v23  ;;  %4014 = vmatpush.bf16.msrb.mxu2 %v6775_v36  ;;  %v5371_v52 = vor.u32 %v7502_v62, %v5368_v63  ;;  %v7486_v62 = vld [vmem:[#allocation8 + $0x154] sm:$0xf] }
 0x211   :  { %v7714_v8 = vld [vmem:[#allocation8 + $0x86c] sm:$0xf0]  ;;  %v5304_v63 = vld [vmem:[#allocation8 + $0x170] sm:$0xf0] }
 0x212   :  { %v6454_v38 = vld [vmem:[#allocation8 + $0xa50] sm:$0xf]  ;;  %v6199_v46 = vor.u32 %v7714_v8, %v6198_v32  ;;  %4028 = vmatpush.bf16.msrb.mxu3 %v7031_v42  ;;  %v8451_v32 = vadd.f32 %v3753_v22, %v3740_v15  ;;  %v5627_v8 = vor.u32 %v7566_v2, %v5624_v10  ;;  %v5592_v42 = vld [vmem:[#allocation8 + $0x3b0] sm:$0xf0] }
 0x213   :  { %v7778_v41 = vld [vmem:[#allocation8 + $0xa6c] sm:$0xf0]  ;;  %v5560_v10 = vld [vmem:[#allocation8 + $0x370] sm:$0xf0] }
 0x214   :  { %v6742_v25 = vld [vmem:[#allocation8 + $0xc90] sm:$0xf]  ;;  %v6455_v54 = vor.u32 %v7778_v41, %v6454_v38  ;;  %3988 = vmatpush.bf16.msrb.mxu0 %v6199_v46  ;;  %v5336_v38 = vld [vmem:[#allocation8 + $0x1b0] sm:$0xf0] }
 0x215   :  { %v7850_v43 = vld [vmem:[#allocation8 + $0xcac] sm:$0xf0]  ;;  %v7558_v41 = vld [vmem:[#allocation8 + $0x394] sm:$0xf] }
 0x216   :  { %v6998_v47 = vld [vmem:[#allocation8 + $0xe90] sm:$0xf]  ;;  %v6743_v59 = vor.u32 %v7850_v43, %v6742_v25  ;;  %4002 = vmatpush.bf16.msrb.mxu1 %v6455_v54  ;;  %v5339_v54 = vor.u32 %v7494_v28, %v5336_v38  ;;  %v7622_v15 = vld [vmem:[#allocation8 + $0x594] sm:$0xf] }
 0x217   :  { %v7914_v51 = vld [vmem:[#allocation8 + $0xeac] sm:$0xf0]  ;;  %v6104_v22 = vld [vmem:[#allocation8 + $0x7b0] sm:$0xf0] }
 0x218   :  { %v6166_v53 = vld [vmem:[#allocation8 + $0x810] sm:$0xf]  ;;  %v6999_v6 = vor.u32 %v7914_v51, %v6998_v47  ;;  %4015 = vmatpush.bf16.msrb.mxu2 %v6743_v59  ;;  %v7630_v51 = vld [vmem:[#allocation8 + $0x5d4] sm:$0xf] }
 0x219   :  { %v7706_v56 = vld [vmem:[#allocation8 + $0x82c] sm:$0xf0]  ;;  %v7478_v28 = vld [vmem:[#allocation8 + $0x114] sm:$0xf] }
 0x21a   :  { %v6422_v57 = vld [vmem:[#allocation8 + $0xa10] sm:$0xf]  ;;  %v6167_v18 = vor.u32 %v7706_v56, %v6166_v53  ;;  %4029 = vmatpush.bf16.msrb.mxu3 %v6999_v6  ;;  %v5880_v53 = vld [vmem:[#allocation8 + $0x5f0] sm:$0xf0] }
 0x21b   :  { %v7770_v58 = vld [vmem:[#allocation8 + $0xa2c] sm:$0xf0]  ;;  %v7694_v56 = vld [vmem:[#allocation8 + $0x7d4] sm:$0xf]  ;;  %v5883_v5 = vor.u32 %v7630_v51, %v5880_v53 }
 0x21c   :  { %v6710_v14 = vld [vmem:[#allocation8 + $0xc50] sm:$0xf]  ;;  %v6423_v23 = vor.u32 %v7770_v58, %v6422_v57  ;;  %3989 = vmatpush.bf16.msrb.mxu0 %v6167_v18  ;;  %v6136_v57 = vld [vmem:[#allocation8 + $0x7f0] sm:$0xf0]  ;;  %v5595_v58 = vor.u32 %v7558_v41, %v5592_v42 }
 0x21d   :  { %v7842_v61 = vld [vmem:[#allocation8 + $0xc6c] sm:$0xf0]  ;;  %v7550_v6 = vld [vmem:[#allocation8 + $0x354] sm:$0xf] }
 0x21e   :  { %v6966_v20 = vld [vmem:[#allocation8 + $0xe50] sm:$0xf]  ;;  %v6711_v36 = vor.u32 %v7842_v61, %v6710_v14  ;;  %4003 = vmatpush.bf16.msrb.mxu1 %v6423_v23  ;;  %v8454_v14 = vpop.f32.mrf.mxu0  ;;  %v6139_v61 = vor.u32 %v7694_v56, %v6136_v57  ;;  %v5848_v18 = vld [vmem:[#allocation8 + $0x5b0] sm:$0xf0]  ;;  %v8457_v23 = vpop.f32.mrf.mxu1 }
 0x21f   :  { %v7906_v21 = vld [vmem:[#allocation8 + $0xe6c] sm:$0xf0]  ;;  %3990 = vmatmul.bf16.vlgmr.msrb.gmra.mxu0 %v8361_v24  ;;  %v7542_v38 = vld [vmem:[#allocation8 + $0x314] sm:$0xf] }
 0x220   :  { %v6967_v25 = vor.u32 %v7906_v21, %v6966_v20  ;;  %v6678_v13 = vld [vmem:[#allocation8 + $0xc10] sm:$0xf]  ;;  %4038 = vmatpush.bf16.msra.mxu0 %v5371_v52  ;;  %4016 = vmatpush.bf16.msrb.mxu2 %v6711_v36  ;;  %v5307_v20 = vor.u32 %v7486_v62, %v5304_v63  ;;  %v7686_v21 = vld [vmem:[#allocation8 + $0x794] sm:$0xf]  ;;  %v5563_v52 = vor.u32 %v7550_v6, %v5560_v10 }
 0x221   :  { %v7834_v43 = vld [vmem:[#allocation8 + $0xc2c] sm:$0xf0]  ;;  %4004 = vmatmul.bf16.vlgmr.msrb.gmra.mxu1 %v8363_v33  ;;  %v5851_v36 = vor.u32 %v7622_v15, %v5848_v18  ;;  %v5528_v41 = vld [vmem:[#allocation8 + $0x330] sm:$0xf0]  ;;  %v6107_v42 = vor.u32 %v7686_v21, %v6104_v22 }
 0x222   :  { %v6934_v46 = vld [vmem:[#allocation8 + $0xe10] sm:$0xf]  ;;  %4052 = vmatpush.bf16.msra.mxu1 %v5627_v8  ;;  %v6679_v59 = vor.u32 %v7834_v43, %v6678_v13  ;;  %4030 = vmatpush.bf16.msrb.mxu3 %v6967_v25  ;;  %v5272_v8 = vld [vmem:[#allocation8 + $0x130] sm:$0xf0]  ;;  %v5531_v51 = vor.u32 %v7542_v38, %v5528_v41 }
 0x223   :  { %v7898_v47 = vld [vmem:[#allocation8 + $0xe2c] sm:$0xf0]  ;;  %v7614_v25 = vld [vmem:[#allocation8 + $0x554] sm:$0xf]  ;;  %v5275_v43 = vor.u32 %v7478_v28, %v5272_v8 }
 0x224   :  { %v6935_v2 = vor.u32 %v7898_v47, %v6934_v46  ;;  %4039 = vmatpush.bf16.msra.mxu0 %v5339_v54  ;;  %4017 = vmatpush.bf16.msrb.mxu2 %v6679_v59  ;;  %v5816_v13 = vld [vmem:[#allocation8 + $0x570] sm:$0xf0] }
 0x225   :  { %v7678_v46 = vld [vmem:[#allocation8 + $0x754] sm:$0xf]  ;;  %v5819_v56 = vor.u32 %v7614_v25, %v5816_v13 }
 0x226   :  { %4053 = vmatpush.bf16.msra.mxu1 %v5595_v58  ;;  %4031 = vmatpush.bf16.msrb.mxu3 %v6935_v2  ;;  %v6072_v47 = vld [vmem:[#allocation8 + $0x770] sm:$0xf0]  ;;  %v3767_v59 = vpop.f32.mrf.mxu0  ;;  %v3781_v15 = vpop.f32.mrf.mxu1 }
 0x227   :  { %4018 = vmatmul.bf16.vlgmr.msrb.gmra.mxu2 %v8367_v60  ;;  %v7470_v53 = vld [vmem:[#allocation8 + $0xd4] sm:$0xf]  ;;  %v6075_v62 = vor.u32 %v7678_v46, %v6072_v47 }
 0x228   :  { %4066 = vmatpush.bf16.msra.mxu2 %v5883_v5  ;;  %4040 = vmatpush.bf16.msra.mxu0 %v5307_v20  ;;  %v5240_v54 = vld [vmem:[#allocation8 + $0xf0] sm:$0xf0]  ;;  %v3768_v5 = vadd.f32 %v3767_v59, %v8451_v32 }
 0x229   :  { %4032 = vmatmul.bf16.vlgmr.msrb.gmra.mxu3 %v8369_v1  ;;  %v7534_v57 = vld [vmem:[#allocation8 + $0x2d4] sm:$0xf]  ;;  %v5243_v6 = vor.u32 %v7470_v53, %v5240_v54 }
 0x22a   :  { %4080 = vmatpush.bf16.msra.mxu3 %v6139_v61  ;;  %4054 = vmatpush.bf16.msra.mxu1 %v5563_v52  ;;  %v5496_v58 = vld [vmem:[#allocation8 + $0x2f0] sm:$0xf0]  ;;  %v3782_v22 = vadd.f32 %v3781_v15, %v3768_v5 }
 0x22b   :  { %v7606_v63 = vld [vmem:[#allocation8 + $0x514] sm:$0xf]  ;;  %v5499_v18 = vor.u32 %v7534_v57, %v5496_v58 }
 0x22c   :  { %4067 = vmatpush.bf16.msra.mxu2 %v5851_v36  ;;  %v5784_v2 = vld [vmem:[#allocation8 + $0x530] sm:$0xf0]  ;;  %4041 = vmatpush.bf16.msra.mxu0 %v5275_v43  ;;  %v8462_v36 = vpop.f32.mrf.mxu2  ;;  %v8464_v43 = vpop.f32.mrf.mxu3 }
 0x22d   :  { %v7670_v10 = vld [vmem:[#allocation8 + $0x714] sm:$0xf]  ;;  %v5787_v52 = vor.u32 %v7606_v63, %v5784_v2 }
 0x22e   :  { %4081 = vmatpush.bf16.msra.mxu3 %v6107_v42  ;;  %v6040_v61 = vld [vmem:[#allocation8 + $0x730] sm:$0xf0]  ;;  %4055 = vmatpush.bf16.msra.mxu1 %v5531_v51 }
 0x22f   :  { %v7462_v20 = vld [vmem:[#allocation8 + $0x94] sm:$0xf]  ;;  %v6043_v38 = vor.u32 %v7670_v10, %v6040_v61 }
 0x230   :  { %v5208_v21 = vld [vmem:[#allocation8 + $0xb0] sm:$0xf0]  ;;  %4068 = vmatpush.bf16.msra.mxu2 %v5819_v56  ;;  %4042 = vmatpush.bf16.msra.mxu0 %v5243_v6 }
 0x231   :  { %v7526_v28 = vld [vmem:[#allocation8 + $0x294] sm:$0xf]  ;;  %v5211_v42 = vor.u32 %v7462_v20, %v5208_v21 }
 0x232   :  { %v5464_v8 = vld [vmem:[#allocation8 + $0x2b0] sm:$0xf0]  ;;  %4082 = vmatpush.bf16.msra.mxu3 %v6075_v62  ;;  %4056 = vmatpush.bf16.msra.mxu1 %v5499_v18 }
 0x233   :  { %v7598_v41 = vld [vmem:[#allocation8 + $0x4d4] sm:$0xf]  ;;  %v5467_v46 = vor.u32 %v7526_v28, %v5464_v8 }
 0x234   :  { %v5752_v32 = vld [vmem:[#allocation8 + $0x4f0] sm:$0xf0]  ;;  %4069 = vmatpush.bf16.msra.mxu2 %v5787_v52  ;;  %4043 = vmatpush.bf16.msra.mxu0 %v5211_v42  ;;  %v3795_v28 = vpop.f32.mrf.mxu2 }
 0x235   :  { %v7662_v25 = vld [vmem:[#allocation8 + $0x6d4] sm:$0xf]  ;;  %v5755_v53 = vor.u32 %v7598_v41, %v5752_v32  ;;  %v3796_v42 = vadd.f32 %v3795_v28, %v3782_v22 }
 0x236   :  { %v6008_v13 = vld [vmem:[#allocation8 + $0x6f0] sm:$0xf0]  ;;  %4083 = vmatpush.bf16.msra.mxu3 %v6043_v38  ;;  %4057 = vmatpush.bf16.msra.mxu1 %v5467_v46 }
 0x237   :  { %v7454_v47 = vld [vmem:[#allocation8 + $0x54] sm:$0xf]  ;;  %v6011_v57 = vor.u32 %v7662_v25, %v6008_v13 }
 0x238   :  { %v5176_v51 = vld [vmem:[#allocation8 + $0x70] sm:$0xf0]  ;;  %4070 = vmatpush.bf16.msra.mxu2 %v5755_v53 }
 0x239   :  { %v7518_v54 = vld [vmem:[#allocation8 + $0x254] sm:$0xf]  ;;  %v5179_v62 = vor.u32 %v7454_v47, %v5176_v51  ;;  %v3809_v47 = vpop.f32.mrf.mxu3 }
 0x23a   :  { %v5432_v56 = vld [vmem:[#allocation8 + $0x270] sm:$0xf0]  ;;  %4084 = vmatpush.bf16.msra.mxu3 %v6011_v57 }
 0x23b   :  { %v7590_v58 = vld [vmem:[#allocation8 + $0x494] sm:$0xf]  ;;  %v5435_v6 = vor.u32 %v7518_v54, %v5432_v56  ;;  %4044 = vmatpush.bf16.msra.mxu0 %v5179_v62  ;;  %v8466_v56 = vadd.f32 %v3809_v47, %v3796_v42 }
 0x23c   :  { %v5720_v59 = vld [vmem:[#allocation8 + $0x4b0] sm:$0xf0] }
 0x23d   :  { %v7654_v63 = vld [vmem:[#allocation8 + $0x694] sm:$0xf]  ;;  %v5723_v18 = vor.u32 %v7590_v58, %v5720_v59  ;;  %4058 = vmatpush.bf16.msra.mxu1 %v5435_v6  ;;  %8672 = vst [vmem:[#allocation24_spill] sm:$0xff] %v8466_v56  ;;  %v5888_v56 = vld [vmem:[#allocation8 + $0x5f8] sm:$0xf0] }
 0x23e   :  { %v5976_v2 = vld [vmem:[#allocation8 + $0x6b0] sm:$0xf0] }
 0x23f   :  { %v7446_v5 = vld [vmem:[#allocation8 + $0x14] sm:$0xf]  ;;  %v5979_v8 = vor.u32 %v7654_v63, %v5976_v2  ;;  %4071 = vmatpush.bf16.msra.mxu2 %v5723_v18 }
 0x240   :  { %v5144_v10 = vld [vmem:[#allocation8 + $0x30] sm:$0xf0] }
 0x241   :  { %v7510_v61 = vld [vmem:[#allocation8 + $0x214] sm:$0xf]  ;;  %v5147_v25 = vor.u32 %v7446_v5, %v5144_v10  ;;  %4085 = vmatpush.bf16.msra.mxu3 %v5979_v8  ;;  %v8488_v34 = vpop.f32.mrf.mxu3 }
 0x242   :  { %v5400_v15 = vld [vmem:[#allocation8 + $0x230] sm:$0xf0]  ;;  %8675 = vst [vmem:[#allocation27_spill] sm:$0xff] %v8488_v34 }
 0x243   :  { %v7758_v20 = vld [vmem:[#allocation8 + $0x9d4] sm:$0xf]  ;;  %v5403_v51 = vor.u32 %v7510_v61, %v5400_v15  ;;  %4045 = vmatpush.bf16.msra.mxu0 %v5147_v25 }
 0x244   :  { %v6392_v21 = vld [vmem:[#allocation8 + $0x9f0] sm:$0xf0] }
 0x245   :  { %v7822_v52 = vld [vmem:[#allocation8 + $0xbd4] sm:$0xf]  ;;  %v6395_v54 = vor.u32 %v7758_v20, %v6392_v21  ;;  %4059 = vmatpush.bf16.msra.mxu1 %v5403_v51 }
 0x246   :  { %v6648_v38 = vld [vmem:[#allocation8 + $0xbf0] sm:$0xf0]  ;;  %4046 = vmatmul.bf16.vlgmr.msra.gmra.mxu0 %v8345_v11 }
 0x247   :  { %v7582_v41 = vld [vmem:[#allocation8 + $0x454] sm:$0xf]  ;;  %v6651_v58 = vor.u32 %v7822_v52, %v6648_v38  ;;  %4094 = vmatpush.bf16.msrb.mxu0 %v6395_v54 }
 0x248   :  { %v5688_v32 = vld [vmem:[#allocation8 + $0x470] sm:$0xf0]  ;;  %4060 = vmatmul.bf16.vlgmr.msra.gmra.mxu1 %v8347_v16 }
 0x249   :  { %v7646_v13 = vld [vmem:[#allocation8 + $0x654] sm:$0xf]  ;;  %v5691_v57 = vor.u32 %v7582_v41, %v5688_v32  ;;  %4108 = vmatpush.bf16.msrb.mxu1 %v6651_v58 }
 0x24a   :  { %v5944_v46 = vld [vmem:[#allocation8 + $0x670] sm:$0xf0] }
 0x24b   :  { %v7750_v53 = vld [vmem:[#allocation8 + $0x994] sm:$0xf]  ;;  %v5947_v35 = vor.u32 %v7646_v13, %v5944_v46  ;;  %4072 = vmatpush.bf16.msra.mxu2 %v5691_v57 }
 0x24c   :  { %v6360_v59 = vld [vmem:[#allocation8 + $0x9b0] sm:$0xf0] }
 0x24d   :  { %v7814_v63 = vld [vmem:[#allocation8 + $0xb94] sm:$0xf]  ;;  %v6363_v61 = vor.u32 %v7750_v53, %v6360_v59  ;;  %4086 = vmatpush.bf16.msra.mxu3 %v5947_v35 }
 0x24e   :  { %v6616_v2 = vld [vmem:[#allocation8 + $0xbb0] sm:$0xf0] }
 0x24f   :  { %v7574_v22 = vld [vmem:[#allocation8 + $0x414] sm:$0xf]  ;;  %v6619_v18 = vor.u32 %v7814_v63, %v6616_v2  ;;  %4095 = vmatpush.bf16.msrb.mxu0 %v6363_v61 }
 0x250   :  { %v5656_v62 = vld [vmem:[#allocation8 + $0x430] sm:$0xf0] }
 0x251   :  { %v7638_v5 = vld [vmem:[#allocation8 + $0x614] sm:$0xf]  ;;  %v5659_v21 = vor.u32 %v7574_v22, %v5656_v62  ;;  %4109 = vmatpush.bf16.msrb.mxu1 %v6619_v18 }
 0x252   :  { %v5912_v10 = vld [vmem:[#allocation8 + $0x630] sm:$0xf0] }
 0x253   :  { %v7886_v28 = vld [vmem:[#allocation8 + $0xdd4] sm:$0xf]  ;;  %v5915_v8 = vor.u32 %v7638_v5, %v5912_v10  ;;  %4073 = vmatpush.bf16.msra.mxu2 %v5659_v21 }
 0x254   :  { %v6904_v6 = vld [vmem:[#allocation8 + $0xdf0] sm:$0xf0] }
 0x255   :  { %v7950_v15 = vld [vmem:[#allocation8 + $0xfd4] sm:$0xf]  ;;  %v6907_v41 = vor.u32 %v7886_v28, %v6904_v6  ;;  %4087 = vmatpush.bf16.msra.mxu3 %v5915_v8 }
 0x256   :  { %v7160_v20 = vld [vmem:[#allocation8 + $0xff0] sm:$0xf0]  ;;  %4074 = vmatmul.bf16.vlgmr.msra.gmra.mxu2 %v8353_v44 }
 0x257   :  { %v7742_v52 = vld [vmem:[#allocation8 + $0x954] sm:$0xf]  ;;  %v7163_v25 = vor.u32 %v7950_v15, %v7160_v20  ;;  %4122 = vmatpush.bf16.msrb.mxu2 %v6907_v41 }
 0x258   :  { %v6328_v38 = vld [vmem:[#allocation8 + $0x970] sm:$0xf0]  ;;  %4088 = vmatmul.bf16.vlgmr.msra.gmra.mxu3 %v8355_v50 }
 0x259   :  { %v7806_v32 = vld [vmem:[#allocation8 + $0xb54] sm:$0xf]  ;;  %v6331_v47 = vor.u32 %v7742_v52, %v6328_v38  ;;  %4136 = vmatpush.bf16.msrb.mxu3 %v7163_v25 }
 0x25a   :  { %v6584_v42 = vld [vmem:[#allocation8 + $0xb70] sm:$0xf0] }
 0x25b   :  { %v7878_v13 = vld [vmem:[#allocation8 + $0xd94] sm:$0xf]  ;;  %v6587_v53 = vor.u32 %v7806_v32, %v6584_v42  ;;  %4096 = vmatpush.bf16.msrb.mxu0 %v6331_v47 }
 0x25c   :  { %v6872_v46 = vld [vmem:[#allocation8 + $0xdb0] sm:$0xf0] }
 0x25d   :  { %v7942_v51 = vld [vmem:[#allocation8 + $0xf94] sm:$0xf]  ;;  %v6875_v57 = vor.u32 %v7878_v13, %v6872_v46  ;;  %4110 = vmatpush.bf16.msrb.mxu1 %v6587_v53 }
 0x25e   :  { %v7128_v54 = vld [vmem:[#allocation8 + $0xfb0] sm:$0xf0] }
 0x25f   :  { %v7734_v58 = vld [vmem:[#allocation8 + $0x914] sm:$0xf]  ;;  %v7131_v2 = vor.u32 %v7942_v51, %v7128_v54  ;;  %4123 = vmatpush.bf16.msrb.mxu2 %v6875_v57 }
 0x260   :  { %v6296_v35 = vld [vmem:[#allocation8 + $0x930] sm:$0xf0] }
 0x261   :  { %v7798_v59 = vld [vmem:[#allocation8 + $0xb14] sm:$0xf]  ;;  %v6299_v5 = vor.u32 %v7734_v58, %v6296_v35  ;;  %4137 = vmatpush.bf16.msrb.mxu3 %v7131_v2 }
 0x262   :  { %v6552_v63 = vld [vmem:[#allocation8 + $0xb30] sm:$0xf0] }
 0x263   :  { %v7870_v22 = vld [vmem:[#allocation8 + $0xd54] sm:$0xf]  ;;  %v6555_v6 = vor.u32 %v7798_v59, %v6552_v63  ;;  %4097 = vmatpush.bf16.msrb.mxu0 %v6299_v5 }
 0x264   :  { %v6840_v62 = vld [vmem:[#allocation8 + $0xd70] sm:$0xf0] }
 0x265   :  { %v7934_v10 = vld [vmem:[#allocation8 + $0xf54] sm:$0xf]  ;;  %v6843_v20 = vor.u32 %v7870_v22, %v6840_v62  ;;  %4111 = vmatpush.bf16.msrb.mxu1 %v6555_v6 }
 0x266   :  { %v7096_v28 = vld [vmem:[#allocation8 + $0xf70] sm:$0xf0] }
 0x267   :  { %v7726_v61 = vld [vmem:[#allocation8 + $0x8d4] sm:$0xf]  ;;  %v7099_v52 = vor.u32 %v7934_v10, %v7096_v28  ;;  %4124 = vmatpush.bf16.msrb.mxu2 %v6843_v20 }
 0x268   :  { %v6264_v15 = vld [vmem:[#allocation8 + $0x8f0] sm:$0xf0] }
 0x269   :  { %v7790_v18 = vld [vmem:[#allocation8 + $0xad4] sm:$0xf]  ;;  %v6267_v41 = vor.u32 %v7726_v61, %v6264_v15  ;;  %4138 = vmatpush.bf16.msrb.mxu3 %v7099_v52 }
 0x26a   :  { %v6520_v21 = vld [vmem:[#allocation8 + $0xaf0] sm:$0xf0] }
 0x26b   :  { %v7862_v38 = vld [vmem:[#allocation8 + $0xd14] sm:$0xf]  ;;  %v6523_v25 = vor.u32 %v7790_v18, %v6520_v21  ;;  %4098 = vmatpush.bf16.msrb.mxu0 %v6267_v41 }
 0x26c   :  { %v6808_v8 = vld [vmem:[#allocation8 + $0xd30] sm:$0xf0] }
 0x26d   :  { %v7926_v32 = vld [vmem:[#allocation8 + $0xf14] sm:$0xf]  ;;  %v6811_v47 = vor.u32 %v7862_v38, %v6808_v8  ;;  %4112 = vmatpush.bf16.msrb.mxu1 %v6523_v25  ;;  %v5374_v25 = vld [vmem:[#allocation8 + $0x1d8] sm:$0xf] }
 0x26e   :  { %v7064_v42 = vld [vmem:[#allocation8 + $0xf30] sm:$0xf0] }
 0x26f   :  { %v7718_v13 = vld [vmem:[#allocation8 + $0x894] sm:$0xf]  ;;  %v7067_v53 = vor.u32 %v7926_v32, %v7064_v42  ;;  %4125 = vmatpush.bf16.msrb.mxu2 %v6811_v47 }
 0x270   :  { %v6232_v46 = vld [vmem:[#allocation8 + $0x8b0] sm:$0xf0] }
 0x271   :  { %v7782_v51 = vld [vmem:[#allocation8 + $0xa94] sm:$0xf]  ;;  %v6235_v57 = vor.u32 %v7718_v13, %v6232_v46  ;;  %4139 = vmatpush.bf16.msrb.mxu3 %v7067_v53  ;;  %v7507_v13 = vld [vmem:[#allocation8 + $0x1f4] sm:$0xf0] }
 0x272   :  { %v6488_v54 = vld [vmem:[#allocation8 + $0xab0] sm:$0xf0]  ;;  %v5630_v46 = vld [vmem:[#allocation8 + $0x3d8] sm:$0xf] }
 0x273   :  { %v7854_v58 = vld [vmem:[#allocation8 + $0xcd4] sm:$0xf]  ;;  %v6491_v2 = vor.u32 %v7782_v51, %v6488_v54  ;;  %4099 = vmatpush.bf16.msrb.mxu0 %v6235_v57  ;;  %v7571_v51 = vld [vmem:[#allocation8 + $0x3f4] sm:$0xf0] }
 0x274   :  { %v6776_v35 = vld [vmem:[#allocation8 + $0xcf0] sm:$0xf0] }
 0x275   :  { %v7918_v59 = vld [vmem:[#allocation8 + $0xed4] sm:$0xf]  ;;  %v6779_v5 = vor.u32 %v7854_v58, %v6776_v35  ;;  %4113 = vmatpush.bf16.msrb.mxu1 %v6491_v2  ;;  %v5342_v2 = vld [vmem:[#allocation8 + $0x198] sm:$0xf] }
 0x276   :  { %v7032_v63 = vld [vmem:[#allocation8 + $0xef0] sm:$0xf0] }
 0x277   :  { %v7710_v22 = vld [vmem:[#allocation8 + $0x854] sm:$0xf]  ;;  %v7035_v6 = vor.u32 %v7918_v59, %v7032_v63  ;;  %4126 = vmatpush.bf16.msrb.mxu2 %v6779_v5  ;;  %v5375_v63 = vor.u32 %v7507_v13, %v5374_v25  ;;  %v7499_v5 = vld [vmem:[#allocation8 + $0x1b4] sm:$0xf0] }
 0x278   :  { %v6200_v62 = vld [vmem:[#allocation8 + $0x870] sm:$0xf0]  ;;  %v5310_v25 = vld [vmem:[#allocation8 + $0x158] sm:$0xf] }
 0x279   :  { %v7774_v10 = vld [vmem:[#allocation8 + $0xa54] sm:$0xf]  ;;  %v6203_v20 = vor.u32 %v7710_v22, %v6200_v62  ;;  %4140 = vmatpush.bf16.msrb.mxu3 %v7035_v6  ;;  %v5631_v22 = vor.u32 %v7571_v51, %v5630_v46  ;;  %v7491_v13 = vld [vmem:[#allocation8 + $0x174] sm:$0xf0] }
 0x27a   :  { %v6456_v28 = vld [vmem:[#allocation8 + $0xa70] sm:$0xf0]  ;;  %v5566_v51 = vld [vmem:[#allocation8 + $0x358] sm:$0xf] }
 0x27b   :  { %v7846_v61 = vld [vmem:[#allocation8 + $0xc94] sm:$0xf]  ;;  %v6459_v38 = vor.u32 %v7774_v10, %v6456_v28  ;;  %4100 = vmatpush.bf16.msrb.mxu0 %v6203_v20  ;;  %v5598_v10 = vld [vmem:[#allocation8 + $0x398] sm:$0xf] }
 0x27c   :  { %v6744_v15 = vld [vmem:[#allocation8 + $0xcb0] sm:$0xf0]  ;;  %v7563_v28 = vld [vmem:[#allocation8 + $0x3b4] sm:$0xf0] }
 0x27d   :  { %v7910_v18 = vld [vmem:[#allocation8 + $0xe94] sm:$0xf]  ;;  %v6747_v42 = vor.u32 %v7846_v61, %v6744_v15  ;;  %4114 = vmatpush.bf16.msrb.mxu1 %v6459_v38  ;;  %v5343_v38 = vor.u32 %v7499_v5, %v5342_v2 }
 0x27e   :  { %v7000_v21 = vld [vmem:[#allocation8 + $0xeb0] sm:$0xf0] }
 0x27f   :  { %v7702_v52 = vld [vmem:[#allocation8 + $0x814] sm:$0xf]  ;;  %v7003_v47 = vor.u32 %v7910_v18, %v7000_v21  ;;  %4127 = vmatpush.bf16.msrb.mxu2 %v6747_v42  ;;  %v5886_v21 = vld [vmem:[#allocation8 + $0x5d8] sm:$0xf] }
 0x280   :  { %v6168_v8 = vld [vmem:[#allocation8 + $0x830] sm:$0xf0] }
 0x281   :  { %v7766_v41 = vld [vmem:[#allocation8 + $0xa14] sm:$0xf]  ;;  %v6171_v58 = vor.u32 %v7702_v52, %v6168_v8  ;;  %4141 = vmatpush.bf16.msrb.mxu3 %v7003_v47  ;;  %v7635_v52 = vld [vmem:[#allocation8 + $0x5f4] sm:$0xf0] }
 0x282   :  { %v6424_v32 = vld [vmem:[#allocation8 + $0xa30] sm:$0xf0]  ;;  %v6142_v8 = vld [vmem:[#allocation8 + $0x7d8] sm:$0xf]  ;;  %v5887_v47 = vor.u32 %v7635_v52, %v5886_v21 }
 0x283   :  { %v7838_v54 = vld [vmem:[#allocation8 + $0xc54] sm:$0xf]  ;;  %v6427_v59 = vor.u32 %v7766_v41, %v6424_v32  ;;  %4101 = vmatpush.bf16.msrb.mxu0 %v6171_v58  ;;  %v7699_v41 = vld [vmem:[#allocation8 + $0x7f4] sm:$0xf0]  ;;  %v5599_v32 = vor.u32 %v7563_v28, %v5598_v10 }
 0x284   :  { %v6712_v53 = vld [vmem:[#allocation8 + $0xc70] sm:$0xf0]  ;;  %v5854_v58 = vld [vmem:[#allocation8 + $0x598] sm:$0xf] }
 0x285   :  { %v7902_v35 = vld [vmem:[#allocation8 + $0xe54] sm:$0xf]  ;;  %v6715_v62 = vor.u32 %v7838_v54, %v6712_v53  ;;  %4115 = vmatpush.bf16.msrb.mxu1 %v6427_v59  ;;  %v7555_v54 = vld [vmem:[#allocation8 + $0x374] sm:$0xf0]  ;;  %v6143_v53 = vor.u32 %v7699_v41, %v6142_v8 }
 0x286   :  { %v6968_v57 = vld [vmem:[#allocation8 + $0xe70] sm:$0xf0]  ;;  %4102 = vmatmul.bf16.vlgmr.msrb.gmra.mxu0 %v8361_v24  ;;  %v6110_v59 = vld [vmem:[#allocation8 + $0x798] sm:$0xf]  ;;  %v5567_v2 = vor.u32 %v7555_v54, %v5566_v51 }
 0x287   :  { %v6971_v6 = vor.u32 %v7902_v35, %v6968_v57  ;;  %v7830_v61 = vld [vmem:[#allocation8 + $0xc14] sm:$0xf]  ;;  %4150 = vmatpush.bf16.msra.mxu0 %v5375_v63  ;;  %4128 = vmatpush.bf16.msrb.mxu2 %v6715_v62  ;;  %v7627_v35 = vld [vmem:[#allocation8 + $0x5b4] sm:$0xf0]  ;;  %v5311_v57 = vor.u32 %v7491_v13, %v5310_v25 }
 0x288   :  { %v6680_v15 = vld [vmem:[#allocation8 + $0xc30] sm:$0xf0]  ;;  %4116 = vmatmul.bf16.vlgmr.msrb.gmra.mxu1 %v8363_v33  ;;  %v7691_v63 = vld [vmem:[#allocation8 + $0x7b4] sm:$0xf0]  ;;  %v5855_v5 = vor.u32 %v7627_v35, %v5854_v58 }
 0x289   :  { %v7894_v18 = vld [vmem:[#allocation8 + $0xe14] sm:$0xf]  ;;  %4164 = vmatpush.bf16.msra.mxu1 %v5631_v22  ;;  %v6683_v42 = vor.u32 %v7830_v61, %v6680_v15  ;;  %4142 = vmatpush.bf16.msrb.mxu3 %v6971_v6  ;;  %v5278_v22 = vld [vmem:[#allocation8 + $0x118] sm:$0xf]  ;;  %v6111_v6 = vor.u32 %v7691_v63, %v6110_v59 }
 0x28a   :  { %v6936_v20 = vld [vmem:[#allocation8 + $0xe30] sm:$0xf0]  ;;  %v7483_v62 = vld [vmem:[#allocation8 + $0x134] sm:$0xf0] }
 0x28b   :  { %v6939_v46 = vor.u32 %v7894_v18, %v6936_v20  ;;  %4151 = vmatpush.bf16.msra.mxu0 %v5343_v38  ;;  %4129 = vmatpush.bf16.msrb.mxu2 %v6683_v42  ;;  %v5534_v10 = vld [vmem:[#allocation8 + $0x318] sm:$0xf]  ;;  %v5279_v18 = vor.u32 %v7483_v62, %v5278_v22 }
 0x28c   :  { %v7547_v28 = vld [vmem:[#allocation8 + $0x334] sm:$0xf0] }
 0x28d   :  { %4165 = vmatpush.bf16.msra.mxu1 %v5599_v32  ;;  %4143 = vmatpush.bf16.msrb.mxu3 %v6939_v46  ;;  %v5822_v61 = vld [vmem:[#allocation8 + $0x558] sm:$0xf]  ;;  %v5535_v52 = vor.u32 %v7547_v28, %v5534_v10 }
 0x28e   :  { %v7619_v15 = vld [vmem:[#allocation8 + $0x574] sm:$0xf0]  ;;  %4130 = vmatmul.bf16.vlgmr.msrb.gmra.mxu2 %v8367_v60 }
 0x28f   :  { %4178 = vmatpush.bf16.msra.mxu2 %v5887_v47  ;;  %4152 = vmatpush.bf16.msra.mxu0 %v5311_v57  ;;  %v6078_v20 = vld [vmem:[#allocation8 + $0x758] sm:$0xf]  ;;  %v5823_v41 = vor.u32 %v7619_v15, %v5822_v61 }
 0x290   :  { %v7683_v21 = vld [vmem:[#allocation8 + $0x774] sm:$0xf0]  ;;  %4144 = vmatmul.bf16.vlgmr.msrb.gmra.mxu3 %v8369_v1 }
 0x291   :  { %4192 = vmatpush.bf16.msra.mxu3 %v6143_v53  ;;  %4166 = vmatpush.bf16.msra.mxu1 %v5567_v2  ;;  %v5246_v38 = vld [vmem:[#allocation8 + $0xd8] sm:$0xf]  ;;  %v6079_v25 = vor.u32 %v7683_v21, %v6078_v20 }
 0x292   :  { %v7475_v8 = vld [vmem:[#allocation8 + $0xf4] sm:$0xf0] }
 0x293   :  { %4179 = vmatpush.bf16.msra.mxu2 %v5855_v5  ;;  %v5502_v32 = vld [vmem:[#allocation8 + $0x2d8] sm:$0xf]  ;;  %4153 = vmatpush.bf16.msra.mxu0 %v5279_v18  ;;  %v5247_v47 = vor.u32 %v7475_v8, %v5246_v38 }
 0x294   :  { %v7539_v42 = vld [vmem:[#allocation8 + $0x2f4] sm:$0xf0] }
 0x295   :  { %4193 = vmatpush.bf16.msra.mxu3 %v6111_v6  ;;  %v5790_v13 = vld [vmem:[#allocation8 + $0x518] sm:$0xf]  ;;  %4167 = vmatpush.bf16.msra.mxu1 %v5535_v52  ;;  %v5503_v53 = vor.u32 %v7539_v42, %v5502_v32 }
 0x296   :  { %v7611_v46 = vld [vmem:[#allocation8 + $0x534] sm:$0xf0] }
 0x297   :  { %v6046_v51 = vld [vmem:[#allocation8 + $0x718] sm:$0xf]  ;;  %4180 = vmatpush.bf16.msra.mxu2 %v5823_v41  ;;  %v5791_v57 = vor.u32 %v7611_v46, %v5790_v13  ;;  %4154 = vmatpush.bf16.msra.mxu0 %v5247_v47 }
 0x298   :  { %v7675_v54 = vld [vmem:[#allocation8 + $0x734] sm:$0xf0] }
 0x299   :  { %v5214_v58 = vld [vmem:[#allocation8 + $0x98] sm:$0xf]  ;;  %4194 = vmatpush.bf16.msra.mxu3 %v6079_v25  ;;  %v6047_v2 = vor.u32 %v7675_v54, %v6046_v51  ;;  %4168 = vmatpush.bf16.msra.mxu1 %v5503_v53 }
 0x29a   :  { %v7467_v35 = vld [vmem:[#allocation8 + $0xb4] sm:$0xf0] }
 0x29b   :  { %v5470_v59 = vld [vmem:[#allocation8 + $0x298] sm:$0xf]  ;;  %v5215_v5 = vor.u32 %v7467_v35, %v5214_v58  ;;  %4181 = vmatpush.bf16.msra.mxu2 %v5791_v57 }
 0x29c   :  { %v7531_v63 = vld [vmem:[#allocation8 + $0x2b4] sm:$0xf0] }
 0x29d   :  { %v5758_v22 = vld [vmem:[#allocation8 + $0x4d8] sm:$0xf]  ;;  %v5471_v6 = vor.u32 %v7531_v63, %v5470_v59  ;;  %4195 = vmatpush.bf16.msra.mxu3 %v6047_v2  ;;  %4155 = vmatpush.bf16.msra.mxu0 %v5215_v5 }
 0x29e   :  { %v7603_v62 = vld [vmem:[#allocation8 + $0x4f4] sm:$0xf0] }
 0x29f   :  { %v6014_v10 = vld [vmem:[#allocation8 + $0x6d8] sm:$0xf]  ;;  %v5759_v18 = vor.u32 %v7603_v62, %v5758_v22  ;;  %4169 = vmatpush.bf16.msra.mxu1 %v5471_v6 }
 0x2a0   :  { %v7667_v28 = vld [vmem:[#allocation8 + $0x6f4] sm:$0xf0] }
 0x2a1   :  { %v5182_v61 = vld [vmem:[#allocation8 + $0x58] sm:$0xf]  ;;  %v6015_v52 = vor.u32 %v7667_v28, %v6014_v10  ;;  %4182 = vmatpush.bf16.msra.mxu2 %v5759_v18 }
 0x2a2   :  { %v7459_v15 = vld [vmem:[#allocation8 + $0x74] sm:$0xf0] }
 0x2a3   :  { %v5438_v20 = vld [vmem:[#allocation8 + $0x258] sm:$0xf]  ;;  %v5183_v41 = vor.u32 %v7459_v15, %v5182_v61  ;;  %4196 = vmatpush.bf16.msra.mxu3 %v6015_v52 }
 0x2a4   :  { %v7523_v21 = vld [vmem:[#allocation8 + $0x274] sm:$0xf0] }
 0x2a5   :  { %v5726_v38 = vld [vmem:[#allocation8 + $0x498] sm:$0xf]  ;;  %v5439_v13 = vor.u32 %v7523_v21, %v5438_v20  ;;  %4156 = vmatpush.bf16.msra.mxu0 %v5183_v41 }
 0x2a6   :  { %v7595_v8 = vld [vmem:[#allocation8 + $0x4b4] sm:$0xf0] }
 0x2a7   :  { %v5982_v32 = vld [vmem:[#allocation8 + $0x698] sm:$0xf]  ;;  %v5727_v54 = vor.u32 %v7595_v8, %v5726_v38  ;;  %4170 = vmatpush.bf16.msra.mxu1 %v5439_v13 }
 0x2a8   :  { %v7659_v42 = vld [vmem:[#allocation8 + $0x6b4] sm:$0xf0] }
 0x2a9   :  { %v5150_v25 = vld [vmem:[#allocation8 + $0x18] sm:$0xf]  ;;  %v5983_v57 = vor.u32 %v7659_v42, %v5982_v32  ;;  %4183 = vmatpush.bf16.msra.mxu2 %v5727_v54 }
 0x2aa   :  { %v7451_v46 = vld [vmem:[#allocation8 + $0x34] sm:$0xf0] }
 0x2ab   :  { %v5406_v47 = vld [vmem:[#allocation8 + $0x218] sm:$0xf]  ;;  %v5151_v22 = vor.u32 %v7451_v46, %v5150_v25  ;;  %4197 = vmatpush.bf16.msra.mxu3 %v5983_v57 }
 0x2ac   :  { %v7515_v51 = vld [vmem:[#allocation8 + $0x234] sm:$0xf0] }
 0x2ad   :  { %v6398_v53 = vld [vmem:[#allocation8 + $0x9d8] sm:$0xf]  ;;  %v5407_v10 = vor.u32 %v7515_v51, %v5406_v47  ;;  %4157 = vmatpush.bf16.msra.mxu0 %v5151_v22 }
 0x2ae   :  { %v7763_v58 = vld [vmem:[#allocation8 + $0x9f4] sm:$0xf0] }
 0x2af   :  { %v6654_v35 = vld [vmem:[#allocation8 + $0xbd8] sm:$0xf]  ;;  %v6399_v28 = vor.u32 %v7763_v58, %v6398_v53  ;;  %4171 = vmatpush.bf16.msra.mxu1 %v5407_v10 }
 0x2b0   :  { %v7827_v59 = vld [vmem:[#allocation8 + $0xbf4] sm:$0xf0]  ;;  %4158 = vmatmul.bf16.vlgmr.msra.gmra.mxu0 %v8345_v11 }
 0x2b1   :  { %v5694_v63 = vld [vmem:[#allocation8 + $0x458] sm:$0xf]  ;;  %v6655_v61 = vor.u32 %v7827_v59, %v6654_v35  ;;  %4206 = vmatpush.bf16.msrb.mxu0 %v6399_v28 }
 0x2b2   :  { %v7587_v2 = vld [vmem:[#allocation8 + $0x474] sm:$0xf0]  ;;  %4172 = vmatmul.bf16.vlgmr.msra.gmra.mxu1 %v8347_v16 }
 0x2b3   :  { %v5950_v62 = vld [vmem:[#allocation8 + $0x658] sm:$0xf]  ;;  %v5695_v15 = vor.u32 %v7587_v2, %v5694_v63  ;;  %4220 = vmatpush.bf16.msrb.mxu1 %v6655_v61 }
 0x2b4   :  { %v7651_v5 = vld [vmem:[#allocation8 + $0x674] sm:$0xf0] }
 0x2b5   :  { %v6366_v6 = vld [vmem:[#allocation8 + $0x998] sm:$0xf]  ;;  %v5951_v52 = vor.u32 %v7651_v5, %v5950_v62  ;;  %4184 = vmatpush.bf16.msra.mxu2 %v5695_v15 }
 0x2b6   :  { %v7755_v18 = vld [vmem:[#allocation8 + $0x9b4] sm:$0xf0] }
 0x2b7   :  { %v6622_v20 = vld [vmem:[#allocation8 + $0xb98] sm:$0xf]  ;;  %v6367_v13 = vor.u32 %v7755_v18, %v6366_v6  ;;  %4198 = vmatpush.bf16.msra.mxu3 %v5951_v52 }
 0x2b8   :  { %v7819_v21 = vld [vmem:[#allocation8 + $0xbb4] sm:$0xf0] }
 0x2b9   :  { %v5662_v38 = vld [vmem:[#allocation8 + $0x418] sm:$0xf]  ;;  %v6623_v51 = vor.u32 %v7819_v21, %v6622_v20  ;;  %4207 = vmatpush.bf16.msrb.mxu0 %v6367_v13 }
 0x2ba   :  { %v7579_v8 = vld [vmem:[#allocation8 + $0x434] sm:$0xf0] }
 0x2bb   :  { %v5918_v32 = vld [vmem:[#allocation8 + $0x618] sm:$0xf]  ;;  %v5663_v54 = vor.u32 %v7579_v8, %v5662_v38  ;;  %4221 = vmatpush.bf16.msrb.mxu1 %v6623_v51 }
 0x2bc   :  { %v7643_v41 = vld [vmem:[#allocation8 + $0x634] sm:$0xf0] }
 0x2bd   :  { %v6910_v42 = vld [vmem:[#allocation8 + $0xdd8] sm:$0xf]  ;;  %v5919_v35 = vor.u32 %v7643_v41, %v5918_v32  ;;  %4185 = vmatpush.bf16.msra.mxu2 %v5663_v54 }
 0x2be   :  { %v7891_v25 = vld [vmem:[#allocation8 + $0xdf4] sm:$0xf0] }
 0x2bf   :  { %v7166_v46 = vld [vmem:[#allocation8 + $0xfd8] sm:$0xf]  ;;  %v6911_v57 = vor.u32 %v7891_v25, %v6910_v42  ;;  %4199 = vmatpush.bf16.msra.mxu3 %v5919_v35 }
 0x2c0   :  { %v7955_v47 = vld [vmem:[#allocation8 + $0xff4] sm:$0xf0]  ;;  %4186 = vmatmul.bf16.vlgmr.msra.gmra.mxu2 %v8353_v44 }
 0x2c1   :  { %v6334_v53 = vld [vmem:[#allocation8 + $0x958] sm:$0xf]  ;;  %v7167_v2 = vor.u32 %v7955_v47, %v7166_v46  ;;  %4234 = vmatpush.bf16.msrb.mxu2 %v6911_v57 }
 0x2c2   :  { %v7747_v58 = vld [vmem:[#allocation8 + $0x974] sm:$0xf0]  ;;  %4200 = vmatmul.bf16.vlgmr.msra.gmra.mxu3 %v8355_v50 }
 0x2c3   :  { %v6590_v59 = vld [vmem:[#allocation8 + $0xb58] sm:$0xf]  ;;  %v6335_v5 = vor.u32 %v7747_v58, %v6334_v53  ;;  %4248 = vmatpush.bf16.msrb.mxu3 %v7167_v2 }
 0x2c4   :  { %v7811_v63 = vld [vmem:[#allocation8 + $0xb74] sm:$0xf0] }
 0x2c5   :  { %v6878_v22 = vld [vmem:[#allocation8 + $0xd98] sm:$0xf]  ;;  %v6591_v6 = vor.u32 %v7811_v63, %v6590_v59  ;;  %4208 = vmatpush.bf16.msrb.mxu0 %v6335_v5 }
 0x2c6   :  { %v7883_v62 = vld [vmem:[#allocation8 + $0xdb4] sm:$0xf0] }
 0x2c7   :  { %v7134_v10 = vld [vmem:[#allocation8 + $0xf98] sm:$0xf]  ;;  %v6879_v18 = vor.u32 %v7883_v62, %v6878_v22  ;;  %4222 = vmatpush.bf16.msrb.mxu1 %v6591_v6 }
 0x2c8   :  { %v7947_v28 = vld [vmem:[#allocation8 + $0xfb4] sm:$0xf0] }
 0x2c9   :  { %v6302_v61 = vld [vmem:[#allocation8 + $0x918] sm:$0xf]  ;;  %v7135_v52 = vor.u32 %v7947_v28, %v7134_v10  ;;  %4235 = vmatpush.bf16.msrb.mxu2 %v6879_v18 }
 0x2ca   :  { %v7739_v15 = vld [vmem:[#allocation8 + $0x934] sm:$0xf0] }
 0x2cb   :  { %v6558_v20 = vld [vmem:[#allocation8 + $0xb18] sm:$0xf]  ;;  %v6303_v32 = vor.u32 %v7739_v15, %v6302_v61  ;;  %4249 = vmatpush.bf16.msrb.mxu3 %v7135_v52  ;;  %v8480_v52 = vpop.f32.mrf.mxu0 }
 0x2cc   :  { %v7803_v21 = vld [vmem:[#allocation8 + $0xb34] sm:$0xf0] }
 0x2cd   :  { %v6846_v38 = vld [vmem:[#allocation8 + $0xd58] sm:$0xf]  ;;  %v6559_v25 = vor.u32 %v7803_v21, %v6558_v20  ;;  %4209 = vmatpush.bf16.msrb.mxu0 %v6303_v32 }
 0x2ce   :  { %v7875_v8 = vld [vmem:[#allocation8 + $0xd74] sm:$0xf0] }
 0x2cf   :  { %v7102_v41 = vld [vmem:[#allocation8 + $0xf58] sm:$0xf]  ;;  %v6847_v47 = vor.u32 %v7875_v8, %v6846_v38  ;;  %4223 = vmatpush.bf16.msrb.mxu1 %v6559_v25 }
 0x2d0   :  { %v7939_v42 = vld [vmem:[#allocation8 + $0xf74] sm:$0xf0] }
 0x2d1   :  { %v6270_v13 = vld [vmem:[#allocation8 + $0x8d8] sm:$0xf]  ;;  %v7103_v53 = vor.u32 %v7939_v42, %v7102_v41  ;;  %4236 = vmatpush.bf16.msrb.mxu2 %v6847_v47 }
 0x2d2   :  { %v7731_v46 = vld [vmem:[#allocation8 + $0x8f4] sm:$0xf0] }
 0x2d3   :  { %v6526_v51 = vld [vmem:[#allocation8 + $0xad8] sm:$0xf]  ;;  %v6271_v57 = vor.u32 %v7731_v46, %v6270_v13  ;;  %4250 = vmatpush.bf16.msrb.mxu3 %v7103_v53 }
 0x2d4   :  { %v7795_v54 = vld [vmem:[#allocation8 + $0xaf4] sm:$0xf0] }
 0x2d5   :  { %v6814_v58 = vld [vmem:[#allocation8 + $0xd18] sm:$0xf]  ;;  %v6527_v2 = vor.u32 %v7795_v54, %v6526_v51  ;;  %4210 = vmatpush.bf16.msrb.mxu0 %v6271_v57 }
 0x2d6   :  { %v7867_v35 = vld [vmem:[#allocation8 + $0xd34] sm:$0xf0] }
 0x2d7   :  { %v7070_v59 = vld [vmem:[#allocation8 + $0xf18] sm:$0xf]  ;;  %v6815_v5 = vor.u32 %v7867_v35, %v6814_v58  ;;  %4224 = vmatpush.bf16.msrb.mxu1 %v6527_v2 }
 0x2d8   :  { %v7931_v63 = vld [vmem:[#allocation8 + $0xf34] sm:$0xf0] }
 0x2d9   :  { %v6238_v22 = vld [vmem:[#allocation8 + $0x898] sm:$0xf]  ;;  %v7071_v6 = vor.u32 %v7931_v63, %v7070_v59  ;;  %4237 = vmatpush.bf16.msrb.mxu2 %v6815_v5  ;;  %v7567_v5 = vld [vmem:[#allocation8 + $0x3dc] sm:$0xf] }
 0x2da   :  { %v7723_v62 = vld [vmem:[#allocation8 + $0x8b4] sm:$0xf0] }
 0x2db   :  { %v6494_v10 = vld [vmem:[#allocation8 + $0xa98] sm:$0xf]  ;;  %v6239_v18 = vor.u32 %v7723_v62, %v6238_v22  ;;  %4251 = vmatpush.bf16.msrb.mxu3 %v7071_v6  ;;  %v7503_v22 = vld [vmem:[#allocation8 + $0x1dc] sm:$0xf] }
 0x2dc   :  { %v7787_v28 = vld [vmem:[#allocation8 + $0xab4] sm:$0xf0]  ;;  %v5376_v62 = vld [vmem:[#allocation8 + $0x1f8] sm:$0xf0] }
 0x2dd   :  { %v6782_v61 = vld [vmem:[#allocation8 + $0xcd8] sm:$0xf]  ;;  %v6495_v38 = vor.u32 %v7787_v28, %v6494_v10  ;;  %4211 = vmatpush.bf16.msrb.mxu0 %v6239_v18  ;;  %v8482_v10 = vpop.f32.mrf.mxu1  ;;  %v8484_v28 = vpop.f32.mrf.mxu2 }
 0x2de   :  { %v7859_v15 = vld [vmem:[#allocation8 + $0xcf4] sm:$0xf0]  ;;  %8673 = vst [vmem:[#allocation25_spill] sm:$0xff] %v8482_v10  ;;  %v7583_v10 = vld [vmem:[#allocation8 + $0x45c] sm:$0xf] }
 0x2df   :  { %v7038_v20 = vld [vmem:[#allocation8 + $0xed8] sm:$0xf]  ;;  %v6783_v41 = vor.u32 %v7859_v15, %v6782_v61  ;;  %4225 = vmatpush.bf16.msrb.mxu1 %v6495_v38  ;;  %8674 = vst [vmem:[#allocation26_spill] sm:$0xff] %v8484_v28  ;;  %v5632_v61 = vld [vmem:[#allocation8 + $0x3f8] sm:$0xf0] }
 0x2e0   :  { %v7923_v21 = vld [vmem:[#allocation8 + $0xef4] sm:$0xf0]  ;;  %v5152_v28 = vld [vmem:[#allocation8 + $0x38] sm:$0xf0] }
 0x2e1   :  { %v6206_v8 = vld [vmem:[#allocation8 + $0x858] sm:$0xf]  ;;  %v7039_v13 = vor.u32 %v7923_v21, %v7038_v20  ;;  %4238 = vmatpush.bf16.msrb.mxu2 %v6783_v41  ;;  %v5379_v41 = vor.u32 %v7503_v22, %v5376_v62  ;;  %v7487_v62 = vld [vmem:[#allocation8 + $0x15c] sm:$0xf] }
 0x2e2   :  { %v7715_v32 = vld [vmem:[#allocation8 + $0x874] sm:$0xf0] }
 0x2e3   :  { %v6462_v42 = vld [vmem:[#allocation8 + $0xa58] sm:$0xf]  ;;  %v6207_v51 = vor.u32 %v7715_v32, %v6206_v8  ;;  %4252 = vmatpush.bf16.msrb.mxu3 %v7039_v13  ;;  %v8486_v8 = vpop.f32.mrf.mxu0  ;;  %v5600_v13 = vld [vmem:[#allocation8 + $0x3b8] sm:$0xf0] }
 0x2e4   :  { %v7779_v25 = vld [vmem:[#allocation8 + $0xa74] sm:$0xf0] }
 0x2e5   :  { %v6750_v46 = vld [vmem:[#allocation8 + $0xc98] sm:$0xf]  ;;  %v6463_v35 = vor.u32 %v7779_v25, %v6462_v42  ;;  %4212 = vmatpush.bf16.msrb.mxu0 %v6207_v51  ;;  %v7495_v42 = vld [vmem:[#allocation8 + $0x19c] sm:$0xf]  ;;  %v5635_v25 = vor.u32 %v7567_v5, %v5632_v61  ;;  %v8492_v61 = vpop.f32.mrf.mxu2 }
 0x2e6   :  { %v7851_v47 = vld [vmem:[#allocation8 + $0xcb4] sm:$0xf0]  ;;  %v5312_v5 = vld [vmem:[#allocation8 + $0x178] sm:$0xf0] }
 0x2e7   :  { %v7006_v54 = vld [vmem:[#allocation8 + $0xe98] sm:$0xf]  ;;  %v6751_v2 = vor.u32 %v7851_v47, %v6750_v46  ;;  %4226 = vmatpush.bf16.msrb.mxu1 %v6463_v35  ;;  %v5344_v47 = vld [vmem:[#allocation8 + $0x1b8] sm:$0xf0] }
 0x2e8   :  { %v7915_v53 = vld [vmem:[#allocation8 + $0xeb4] sm:$0xf0]  ;;  %v5347_v35 = vor.u32 %v7495_v42, %v5344_v47  ;;  %v6112_v42 = vld [vmem:[#allocation8 + $0x7b8] sm:$0xf0] }
 0x2e9   :  { %v6174_v58 = vld [vmem:[#allocation8 + $0x818] sm:$0xf]  ;;  %v7007_v6 = vor.u32 %v7915_v53, %v7006_v54  ;;  %4239 = vmatpush.bf16.msrb.mxu2 %v6751_v2  ;;  %v5603_v2 = vor.u32 %v7559_v30, %v5600_v13  ;;  %v7687_v30 = vld [vmem:[#allocation8 + $0x79c] sm:$0xf] }
 0x2ea   :  { %v7707_v57 = vld [vmem:[#allocation8 + $0x834] sm:$0xf0]  ;;  %v5280_v47 = vld [vmem:[#allocation8 + $0x138] sm:$0xf0] }
 0x2eb   :  { %v6430_v59 = vld [vmem:[#allocation8 + $0xa18] sm:$0xf]  ;;  %v6175_v20 = vor.u32 %v7707_v57, %v6174_v58  ;;  %4253 = vmatpush.bf16.msrb.mxu3 %v7007_v6  ;;  %v7631_v57 = vld [vmem:[#allocation8 + $0x5dc] sm:$0xf]  ;;  %v8490_v6 = vpop.f32.mrf.mxu1  ;;  %v8496_v13 = vpop.f32.mrf.mxu0 }
 0x2ec   :  { %v7771_v63 = vld [vmem:[#allocation8 + $0xa34] sm:$0xf0] }
 0x2ed   :  { %v6718_v15 = vld [vmem:[#allocation8 + $0xc58] sm:$0xf]  ;;  %v6431_v32 = vor.u32 %v7771_v63, %v6430_v59  ;;  %4213 = vmatpush.bf16.msrb.mxu0 %v6175_v20  ;;  %v7695_v59 = vld [vmem:[#allocation8 + $0x7dc] sm:$0xf] }
 0x2ee   :  { %v7843_v18 = vld [vmem:[#allocation8 + $0xc74] sm:$0xf0]  ;;  %v6144_v63 = vld [vmem:[#allocation8 + $0x7f8] sm:$0xf0] }
 0x2ef   :  { %v6974_v21 = vld [vmem:[#allocation8 + $0xe58] sm:$0xf]  ;;  %v6719_v46 = vor.u32 %v7843_v18, %v6718_v15  ;;  %4227 = vmatpush.bf16.msrb.mxu1 %v6431_v32  ;;  %v5891_v18 = vor.u32 %v7631_v57, %v5888_v56  ;;  %v7551_v20 = vld [vmem:[#allocation8 + $0x35c] sm:$0xf] }
 0x2f0   :  { %v7907_v38 = vld [vmem:[#allocation8 + $0xe74] sm:$0xf0]  ;;  %4214 = vmatmul.bf16.vlgmr.msrb.gmra.mxu0 %v8361_v24  ;;  %v7623_v32 = vld [vmem:[#allocation8 + $0x59c] sm:$0xf] }
 0x2f1   :  { %v6975_v54 = vor.u32 %v7907_v38, %v6974_v21  ;;  %v6686_v53 = vld [vmem:[#allocation8 + $0xc18] sm:$0xf]  ;;  %4262 = vmatpush.bf16.msra.mxu0 %v5379_v41  ;;  %4240 = vmatpush.bf16.msrb.mxu2 %v6719_v46  ;;  %v5568_v21 = vld [vmem:[#allocation8 + $0x378] sm:$0xf0]  ;;  %v6147_v38 = vor.u32 %v7695_v59, %v6144_v63 }
 0x2f2   :  { %v6942_v51 = vld [vmem:[#allocation8 + $0xe18] sm:$0xf]  ;;  %v6687_v22 = vor.u32 %v7835_v3, %v6686_v53  ;;  %4228 = vmatmul.bf16.vlgmr.msrb.gmra.mxu1 %v8363_v33  ;;  %v5856_v41 = vld [vmem:[#allocation8 + $0x5b8] sm:$0xf0]  ;;  %v5315_v3 = vor.u32 %v7487_v62, %v5312_v5 }
 0x2f3   :  { %v7899_v58 = vld [vmem:[#allocation8 + $0xe34] sm:$0xf0]  ;;  %4276 = vmatpush.bf16.msra.mxu1 %v5635_v25  ;;  %4254 = vmatpush.bf16.msrb.mxu3 %v6975_v54  ;;  %v5571_v25 = vor.u32 %v7551_v20, %v5568_v21  ;;  %v7479_v46 = vld [vmem:[#allocation8 + $0x11c] sm:$0xf]  ;;  %v5859_v56 = vor.u32 %v7623_v32, %v5856_v41  ;;  %v8502_v41 = vpop.f32.mrf.mxu1 }
 0x2f4   :  { %v6943_v15 = vor.u32 %v7899_v58, %v6942_v51  ;;  %v7543_v54 = vld [vmem:[#allocation8 + $0x31c] sm:$0xf]  ;;  %v6115_v51 = vor.u32 %v7687_v30, %v6112_v42  ;;  %v5283_v59 = vor.u32 %v7479_v46, %v5280_v47 }
 0x2f5   :  { %4263 = vmatpush.bf16.msra.mxu0 %v5347_v35  ;;  %4241 = vmatpush.bf16.msrb.mxu2 %v6687_v22  ;;  %v5536_v53 = vld [vmem:[#allocation8 + $0x338] sm:$0xf0]  ;;  %v8498_v35 = vpop.f32.mrf.mxu3 }
 0x2f6   :  { %v7615_v58 = vld [vmem:[#allocation8 + $0x55c] sm:$0xf]  ;;  %8676 = vst [vmem:[#allocation28_spill] sm:$0xff] %v8498_v35  ;;  %v5539_v22 = vor.u32 %v7543_v54, %v5536_v53 }
 0x2f7   :  { %4277 = vmatpush.bf16.msra.mxu1 %v5603_v2  ;;  %4255 = vmatpush.bf16.msrb.mxu3 %v6943_v15  ;;  %v5824_v57 = vld [vmem:[#allocation8 + $0x578] sm:$0xf0] }
 0x2f8   :  { %4242 = vmatmul.bf16.vlgmr.msrb.gmra.mxu2 %v8367_v60  ;;  %v7679_v63 = vld [vmem:[#allocation8 + $0x75c] sm:$0xf]  ;;  %v5827_v15 = vor.u32 %v7615_v58, %v5824_v57 }
 0x2f9   :  { %4290 = vmatpush.bf16.msra.mxu2 %v5891_v18  ;;  %4264 = vmatpush.bf16.msra.mxu0 %v5315_v3  ;;  %v6080_v2 = vld [vmem:[#allocation8 + $0x778] sm:$0xf0]  ;;  %v8504_v3 = vpop.f32.mrf.mxu2 }
 0x2fa   :  { %4256 = vmatmul.bf16.vlgmr.msrb.gmra.mxu3 %v8369_v1  ;;  %v7471_v62 = vld [vmem:[#allocation8 + $0xdc] sm:$0xf]  ;;  %v6083_v21 = vor.u32 %v7679_v63, %v6080_v2 }
 0x2fb   :  { %4304 = vmatpush.bf16.msra.mxu3 %v6147_v38  ;;  %4278 = vmatpush.bf16.msra.mxu1 %v5571_v25  ;;  %v5248_v5 = vld [vmem:[#allocation8 + $0xf8] sm:$0xf0] }
 0x2fc   :  { %v7535_v18 = vld [vmem:[#allocation8 + $0x2dc] sm:$0xf]  ;;  %v5251_v30 = vor.u32 %v7471_v62, %v5248_v5 }
 0x2fd   :  { %4291 = vmatpush.bf16.msra.mxu2 %v5859_v56  ;;  %v5504_v20 = vld [vmem:[#allocation8 + $0x2f8] sm:$0xf0]  ;;  %4265 = vmatpush.bf16.msra.mxu0 %v5283_v59  ;;  %v8506_v56 = vpop.f32.mrf.mxu0 }
 0x2fe   :  { %v7607_v38 = vld [vmem:[#allocation8 + $0x51c] sm:$0xf]  ;;  %v5507_v25 = vor.u32 %v7535_v18, %v5504_v20  ;;  %8677 = vst [vmem:[#allocation29_spill] sm:$0xff] %v8506_v56  ;;  %v8508_v20 = vpop.f32.mrf.mxu3 }
 0x2ff   :  { %4305 = vmatpush.bf16.msra.mxu3 %v6115_v51  ;;  %v5792_v32 = vld [vmem:[#allocation8 + $0x538] sm:$0xf0]  ;;  %4279 = vmatpush.bf16.msra.mxu1 %v5539_v22 }
 0x300   :  { %v7671_v42 = vld [vmem:[#allocation8 + $0x71c] sm:$0xf]  ;;  %v5795_v53 = vor.u32 %v7607_v38, %v5792_v32 }
 0x301   :  { %v6048_v46 = vld [vmem:[#allocation8 + $0x738] sm:$0xf0]  ;;  %4292 = vmatpush.bf16.msra.mxu2 %v5827_v15  ;;  %4266 = vmatpush.bf16.msra.mxu0 %v5251_v30  ;;  %v8512_v30 = vpop.f32.mrf.mxu2 }
 0x302   :  { %v7463_v47 = vld [vmem:[#allocation8 + $0x9c] sm:$0xf]  ;;  %v6051_v57 = vor.u32 %v7671_v42, %v6048_v46  ;;  %v8510_v46 = vpop.f32.mrf.mxu1  ;;  %8679 = vst [vmem:[#allocation31_spill] sm:$0xff] %v8512_v30 }
 0x303   :  { %v5216_v54 = vld [vmem:[#allocation8 + $0xb8] sm:$0xf0]  ;;  %4306 = vmatpush.bf16.msra.mxu3 %v6083_v21  ;;  %4280 = vmatpush.bf16.msra.mxu1 %v5507_v25  ;;  %8678 = vst [vmem:[#allocation30_spill] sm:$0xff] %v8510_v46 }
 0x304   :  { %v7527_v51 = vld [vmem:[#allocation8 + $0x29c] sm:$0xf]  ;;  %v5219_v34 = vor.u32 %v7463_v47, %v5216_v54 }
 0x305   :  { %v5472_v58 = vld [vmem:[#allocation8 + $0x2b8] sm:$0xf0]  ;;  %4293 = vmatpush.bf16.msra.mxu2 %v5795_v53 }
 0x306   :  { %v7599_v63 = vld [vmem:[#allocation8 + $0x4dc] sm:$0xf]  ;;  %v5475_v5 = vor.u32 %v7527_v51, %v5472_v58  ;;  %4267 = vmatpush.bf16.msra.mxu0 %v5219_v34  ;;  %v8514_v34 = vpop.f32.mrf.mxu0 }
 0x307   :  { %v5760_v2 = vld [vmem:[#allocation8 + $0x4f8] sm:$0xf0]  ;;  %4307 = vmatpush.bf16.msra.mxu3 %v6051_v57  ;;  %8680 = vst [vmem:[#allocation32_spill] sm:$0xff] %v8514_v34 }
 0x308   :  { %v7663_v59 = vld [vmem:[#allocation8 + $0x6dc] sm:$0xf]  ;;  %v5763_v37 = vor.u32 %v7599_v63, %v5760_v2  ;;  %4281 = vmatpush.bf16.msra.mxu1 %v5475_v5 }
 0x309   :  { %v6016_v62 = vld [vmem:[#allocation8 + $0x6f8] sm:$0xf0] }
 0x30a   :  { %v7455_v22 = vld [vmem:[#allocation8 + $0x5c] sm:$0xf]  ;;  %v6019_v32 = vor.u32 %v7663_v59, %v6016_v62  ;;  %4294 = vmatpush.bf16.msra.mxu2 %v5763_v37  ;;  %v8516_v37 = vpop.f32.mrf.mxu3 }
 0x30b   :  { %v5184_v18 = vld [vmem:[#allocation8 + $0x78] sm:$0xf0] }
 0x30c   :  { %v7519_v15 = vld [vmem:[#allocation8 + $0x25c] sm:$0xf]  ;;  %v5187_v47 = vor.u32 %v7455_v22, %v5184_v18  ;;  %4308 = vmatpush.bf16.msra.mxu3 %v6019_v32 }
 0x30d   :  { %v5440_v38 = vld [vmem:[#allocation8 + $0x278] sm:$0xf0] }
 0x30e   :  { %v7591_v21 = vld [vmem:[#allocation8 + $0x49c] sm:$0xf]  ;;  %v5443_v58 = vor.u32 %v7519_v15, %v5440_v38  ;;  %4268 = vmatpush.bf16.msra.mxu0 %v5187_v47 }
 0x30f   :  { %v5728_v42 = vld [vmem:[#allocation8 + $0x4b8] sm:$0xf0] }
 0x310   :  { %v7655_v25 = vld [vmem:[#allocation8 + $0x69c] sm:$0xf]  ;;  %v5731_v2 = vor.u32 %v7591_v21, %v5728_v42  ;;  %4282 = vmatpush.bf16.msra.mxu1 %v5443_v58 }
 0x311   :  { %v5984_v54 = vld [vmem:[#allocation8 + $0x6b8] sm:$0xf0] }
 0x312   :  { %v7447_v51 = vld [vmem:[#allocation8 + $0x1c] sm:$0xf]  ;;  %v5987_v29 = vor.u32 %v7655_v25, %v5984_v54  ;;  %4295 = vmatpush.bf16.msra.mxu2 %v5731_v2  ;;  %v8518_v2 = vpop.f32.mrf.mxu1 }
 0x313   :  { %v7511_v53 = vld [vmem:[#allocation8 + $0x21c] sm:$0xf]  ;;  %v5155_v22 = vor.u32 %v7447_v51, %v5152_v28 }
 0x314   :  { %v5408_v63 = vld [vmem:[#allocation8 + $0x238] sm:$0xf0]  ;;  %4309 = vmatpush.bf16.msra.mxu3 %v5987_v29 }
 0x315   :  { %v7759_v57 = vld [vmem:[#allocation8 + $0x9dc] sm:$0xf]  ;;  %v5411_v15 = vor.u32 %v7511_v53, %v5408_v63  ;;  %4269 = vmatpush.bf16.msra.mxu0 %v5155_v22 }
 0x316   :  { %v6400_v59 = vld [vmem:[#allocation8 + $0x9f8] sm:$0xf0] }
 0x317   :  { %v7823_v62 = vld [vmem:[#allocation8 + $0xbdc] sm:$0xf]  ;;  %v6403_v38 = vor.u32 %v7759_v57, %v6400_v59  ;;  %4283 = vmatpush.bf16.msra.mxu1 %v5411_v15 }
 0x318   :  { %v6656_v46 = vld [vmem:[#allocation8 + $0xbf8] sm:$0xf0]  ;;  %4270 = vmatmul.bf16.vlgmr.msra.gmra.mxu0 %v8345_v11 }
 0x319   :  { %v5696_v30 = vld [vmem:[#allocation8 + $0x478] sm:$0xf0]  ;;  %v6659_v21 = vor.u32 %v7823_v62, %v6656_v46  ;;  %4318 = vmatpush.bf16.msrb.mxu0 %v6403_v38 }
 0x31a   :  { %v7647_v18 = vld [vmem:[#allocation8 + $0x65c] sm:$0xf]  ;;  %v5699_v42 = vor.u32 %v7583_v10, %v5696_v30  ;;  %v8520_v10 = vpop.f32.mrf.mxu2  ;;  %4284 = vmatmul.bf16.vlgmr.msra.gmra.mxu1 %v8347_v16 }
 0x31b   :  { %v5952_v5 = vld [vmem:[#allocation8 + $0x678] sm:$0xf0]  ;;  %4332 = vmatpush.bf16.msrb.mxu1 %v6659_v21 }
 0x31c   :  { %v6368_v32 = vld [vmem:[#allocation8 + $0x9b8] sm:$0xf0]  ;;  %v5955_v56 = vor.u32 %v7647_v18, %v5952_v5  ;;  %4296 = vmatpush.bf16.msra.mxu2 %v5699_v42 }
 0x31d   :  { %v7815_v25 = vld [vmem:[#allocation8 + $0xb9c] sm:$0xf]  ;;  %v6371_v53 = vor.u32 %v7751_v9, %v6368_v32  ;;  %v8523_v9 = vpop.f32.mrf.mxu0 }
 0x31e   :  { %v6624_v54 = vld [vmem:[#allocation8 + $0xbb8] sm:$0xf0]  ;;  %4310 = vmatpush.bf16.msra.mxu3 %v5955_v56 }
 0x31f   :  { %v7575_v35 = vld [vmem:[#allocation8 + $0x41c] sm:$0xf]  ;;  %v6627_v29 = vor.u32 %v7815_v25, %v6624_v54  ;;  %4319 = vmatpush.bf16.msrb.mxu0 %v6371_v53 }
 0x320   :  { %v5664_v34 = vld [vmem:[#allocation8 + $0x438] sm:$0xf0] }
 0x321   :  { %v7639_v47 = vld [vmem:[#allocation8 + $0x61c] sm:$0xf]  ;;  %v5667_v46 = vor.u32 %v7575_v35, %v5664_v34  ;;  %4333 = vmatpush.bf16.msrb.mxu1 %v6627_v29  ;;  %v8529_v29 = vpop.f32.mrf.mxu1 }
 0x322   :  { %v5920_v28 = vld [vmem:[#allocation8 + $0x638] sm:$0xf0] }
 0x323   :  { %v7887_v51 = vld [vmem:[#allocation8 + $0xddc] sm:$0xf]  ;;  %v5923_v62 = vor.u32 %v7639_v47, %v5920_v28  ;;  %4297 = vmatpush.bf16.msra.mxu2 %v5667_v46  ;;  %v8526_v28 = vpop.f32.mrf.mxu3  ;;  %v8531_v46 = vpop.f32.mrf.mxu2 }
 0x324   :  { %v6912_v58 = vld [vmem:[#allocation8 + $0xdf8] sm:$0xf0]  ;;  %8681 = vst [vmem:[#allocation33_spill] sm:$0xff] %v8531_v46 }
 0x325   :  { %v7951_v63 = vld [vmem:[#allocation8 + $0xfdc] sm:$0xf]  ;;  %v6915_v22 = vor.u32 %v7887_v51, %v6912_v58  ;;  %4311 = vmatpush.bf16.msra.mxu3 %v5923_v62 }
 0x326   :  { %v7168_v57 = vld [vmem:[#allocation8 + $0xff8] sm:$0xf0]  ;;  %4298 = vmatmul.bf16.vlgmr.msra.gmra.mxu2 %v8353_v44 }
 0x327   :  { %v7743_v30 = vld [vmem:[#allocation8 + $0x95c] sm:$0xf]  ;;  %v7171_v15 = vor.u32 %v7951_v63, %v7168_v57  ;;  %4346 = vmatpush.bf16.msrb.mxu2 %v6915_v22 }
 0x328   :  { %v6336_v59 = vld [vmem:[#allocation8 + $0x978] sm:$0xf0]  ;;  %4312 = vmatmul.bf16.vlgmr.msra.gmra.mxu3 %v8355_v50 }
 0x329   :  { %v7807_v18 = vld [vmem:[#allocation8 + $0xb5c] sm:$0xf]  ;;  %v6339_v21 = vor.u32 %v7743_v30, %v6336_v59  ;;  %4360 = vmatpush.bf16.msrb.mxu3 %v7171_v15 }
 0x32a   :  { %v6592_v5 = vld [vmem:[#allocation8 + $0xb78] sm:$0xf0] }
 0x32b   :  { %v7879_v38 = vld [vmem:[#allocation8 + $0xd9c] sm:$0xf]  ;;  %v6595_v56 = vor.u32 %v7807_v18, %v6592_v5  ;;  %4320 = vmatpush.bf16.msrb.mxu0 %v6339_v21 }
 0x32c   :  { %v6880_v32 = vld [vmem:[#allocation8 + $0xdb8] sm:$0xf0] }
 0x32d   :  { %v7943_v42 = vld [vmem:[#allocation8 + $0xf9c] sm:$0xf]  ;;  %v6883_v25 = vor.u32 %v7879_v38, %v6880_v32  ;;  %4334 = vmatpush.bf16.msrb.mxu1 %v6595_v56 }
 0x32e   :  { %v7136_v35 = vld [vmem:[#allocation8 + $0xfb8] sm:$0xf0] }
 0x32f   :  { %v7735_v34 = vld [vmem:[#allocation8 + $0x91c] sm:$0xf]  ;;  %v7139_v16 = vor.u32 %v7943_v42, %v7136_v35  ;;  %4347 = vmatpush.bf16.msrb.mxu2 %v6883_v25  ;;  %v8534_v35 = vpop.f32.mrf.mxu0 }
 0x330   :  { %v6304_v11 = vld [vmem:[#allocation8 + $0x938] sm:$0xf0] }
 0x331   :  { %v7799_v54 = vld [vmem:[#allocation8 + $0xb1c] sm:$0xf]  ;;  %v6307_v53 = vor.u32 %v7735_v34, %v6304_v11  ;;  %4361 = vmatpush.bf16.msrb.mxu3 %v7139_v16 }
 0x332   :  { %v6560_v47 = vld [vmem:[#allocation8 + $0xb38] sm:$0xf0] }
 0x333   :  { %v7871_v51 = vld [vmem:[#allocation8 + $0xd5c] sm:$0xf]  ;;  %v6563_v30 = vor.u32 %v7799_v54, %v6560_v47  ;;  %4321 = vmatpush.bf16.msrb.mxu0 %v6307_v53  ;;  %v8536_v47 = vpop.f32.mrf.mxu3 }
 0x334   :  { %v6848_v58 = vld [vmem:[#allocation8 + $0xd78] sm:$0xf0]  ;;  %8682 = vst [vmem:[#allocation34_spill] sm:$0xff] %v8536_v47 }
 0x335   :  { %v7935_v63 = vld [vmem:[#allocation8 + $0xf5c] sm:$0xf]  ;;  %v6851_v22 = vor.u32 %v7871_v51, %v6848_v58  ;;  %4335 = vmatpush.bf16.msrb.mxu1 %v6563_v30 }
 0x336   :  { %v7104_v57 = vld [vmem:[#allocation8 + $0xf78] sm:$0xf0] }
 0x337   :  { %v7727_v59 = vld [vmem:[#allocation8 + $0x8dc] sm:$0xf]  ;;  %v7107_v44 = vor.u32 %v7935_v63, %v7104_v57  ;;  %4348 = vmatpush.bf16.msrb.mxu2 %v6851_v22 }
 0x338   :  { %v6272_v62 = vld [vmem:[#allocation8 + $0x8f8] sm:$0xf0] }
 0x339   :  { %v7791_v18 = vld [vmem:[#allocation8 + $0xadc] sm:$0xf]  ;;  %v6275_v32 = vor.u32 %v7727_v59, %v6272_v62  ;;  %4362 = vmatpush.bf16.msrb.mxu3 %v7107_v44 }
 0x33a   :  { %v6528_v5 = vld [vmem:[#allocation8 + $0xaf8] sm:$0xf0] }
 0x33b   :  { %v7863_v15 = vld [vmem:[#allocation8 + $0xd1c] sm:$0xf]  ;;  %v6531_v50 = vor.u32 %v7791_v18, %v6528_v5  ;;  %4322 = vmatpush.bf16.msrb.mxu0 %v6275_v32 }
 0x33c   :  { %v6816_v38 = vld [vmem:[#allocation8 + $0xd38] sm:$0xf0] }
 0x33d   :  { %v7927_v21 = vld [vmem:[#allocation8 + $0xf1c] sm:$0xf]  ;;  %v6819_v11 = vor.u32 %v7863_v15, %v6816_v38  ;;  %4336 = vmatpush.bf16.msrb.mxu1 %v6531_v50  ;;  %v8538_v15 = vpop.f32.mrf.mxu1  ;;  %v8540_v38 = vpop.f32.mrf.mxu2 }
 0x33e   :  { %v7072_v42 = vld [vmem:[#allocation8 + $0xf38] sm:$0xf0]  ;;  %v8542_v50 = vpop.f32.mrf.mxu0 }
 0x33f   :  { %v7719_v56 = vld [vmem:[#allocation8 + $0x89c] sm:$0xf]  ;;  %v7075_v16 = vor.u32 %v7927_v21, %v7072_v42  ;;  %4349 = vmatpush.bf16.msrb.mxu2 %v6819_v11  ;;  %8683 = vst [vmem:[#allocation35_spill] sm:$0xff] %v8542_v50 }
 0x340   :  { %v6240_v34 = vld [vmem:[#allocation8 + $0x8b8] sm:$0xf0] }
 0x341   :  { %v7783_v25 = vld [vmem:[#allocation8 + $0xa9c] sm:$0xf]  ;;  %v6243_v53 = vor.u32 %v7719_v56, %v6240_v34  ;;  %4363 = vmatpush.bf16.msrb.mxu3 %v7075_v16 }
 0x342   :  { %v6496_v54 = vld [vmem:[#allocation8 + $0xab8] sm:$0xf0] }
 0x343   :  { %v7855_v51 = vld [vmem:[#allocation8 + $0xcdc] sm:$0xf]  ;;  %v6499_v59 = vor.u32 %v7783_v25, %v6496_v54  ;;  %4323 = vmatpush.bf16.msrb.mxu0 %v6243_v53 }
 0x344   :  { %v6784_v58 = vld [vmem:[#allocation8 + $0xcf8] sm:$0xf0] }
 0x345   :  { %v7919_v63 = vld [vmem:[#allocation8 + $0xedc] sm:$0xf]  ;;  %v6787_v18 = vor.u32 %v7855_v51, %v6784_v58  ;;  %4337 = vmatpush.bf16.msrb.mxu1 %v6499_v59  ;;  %v7963_v59 = vld [vmem:[#allocation11 + $0x38] sm:$0xff] }
 0x346   :  { %v7040_v57 = vld [vmem:[#allocation8 + $0xef8] sm:$0xf0] }
 0x347   :  { %v7711_v30 = vld [vmem:[#allocation8 + $0x85c] sm:$0xf]  ;;  %v7043_v44 = vor.u32 %v7919_v63, %v7040_v57  ;;  %4350 = vmatpush.bf16.msrb.mxu2 %v6787_v18 }
 0x348   :  { %v6208_v62 = vld [vmem:[#allocation8 + $0x878] sm:$0xf0] }
 0x349   :  { %v7775_v22 = vld [vmem:[#allocation8 + $0xa5c] sm:$0xf]  ;;  %v6211_v32 = vor.u32 %v7711_v30, %v6208_v62  ;;  %4364 = vmatpush.bf16.msrb.mxu3 %v7043_v44  ;;  %v8544_v62 = vpop.f32.mrf.mxu3  ;;  %v8549_v44 = vpop.f32.mrf.mxu1 }
 0x34a   :  { %v6464_v5 = vld [vmem:[#allocation8 + $0xa78] sm:$0xf0] }
 0x34b   :  { %v7847_v21 = vld [vmem:[#allocation8 + $0xc9c] sm:$0xf]  ;;  %v6467_v25 = vor.u32 %v7775_v22, %v6464_v5  ;;  %4324 = vmatpush.bf16.msrb.mxu0 %v6211_v32  ;;  %v8684_v22 = vperm.slane %v8385_v26, 0  ;;  %v7971_v5 = vld [vmem:[#allocation11 + $0x78] sm:$0xff] }
 0x34c   :  { %v6752_v42 = vld [vmem:[#allocation8 + $0xcb8] sm:$0xf0] }
 0x34d   :  { %v7911_v56 = vld [vmem:[#allocation8 + $0xe9c] sm:$0xf]  ;;  %v6755_v51 = vor.u32 %v7847_v21, %v6752_v42  ;;  %4338 = vmatpush.bf16.msrb.mxu1 %v6467_v25  ;;  %v3490_v18 = vadd.f32 %v8394_v45, %v8684_v22  ;;  %v8551_v42 = vpop.f32.mrf.mxu2  ;;  %v7961_v22 = vld [vmem:[#allocation11 + $0x28] sm:$0xff] }
 0x34e   :  { %v7008_v34 = vld [vmem:[#allocation8 + $0xeb8] sm:$0xf0] }
 0x34f   :  { %v7703_v11 = vld [vmem:[#allocation8 + $0x81c] sm:$0xf]  ;;  %v7011_v46 = vor.u32 %v7911_v56, %v7008_v34  ;;  %4351 = vmatpush.bf16.msrb.mxu2 %v6755_v51  ;;  %v3504_v51 = vadd.f32 %v8396_v49, %v3490_v18  ;;  %v8686_v18 = vperm.slane %v8385_v26, 2 }
 0x350   :  { %v6176_v54 = vld [vmem:[#allocation8 + $0x838] sm:$0xf0] }
 0x351   :  { %v7767_v58 = vld [vmem:[#allocation8 + $0xa1c] sm:$0xf]  ;;  %v6179_v57 = vor.u32 %v7703_v11, %v6176_v54  ;;  %4365 = vmatpush.bf16.msrb.mxu3 %v7011_v46  ;;  %v8557_v46 = vpop.f32.mrf.mxu0 }
 0x352   :  { %v6432_v47 = vld [vmem:[#allocation8 + $0xa38] sm:$0xf0] }
 0x353   :  { %v7839_v16 = vld [vmem:[#allocation8 + $0xc5c] sm:$0xf]  ;;  %v6435_v50 = vor.u32 %v7767_v58, %v6432_v47  ;;  %4325 = vmatpush.bf16.msrb.mxu0 %v6179_v57  ;;  %v8685_v47 = vperm.slane %v8385_v26, 1  ;;  %v7979_v57 = vld [vmem:[#allocation11 + $0xb8] sm:$0xff] }
 0x354   :  { %v6720_v63 = vld [vmem:[#allocation8 + $0xc78] sm:$0xf0] }
 0x355   :  { %v7903_v53 = vld [vmem:[#allocation8 + $0xe5c] sm:$0xf]  ;;  %v6723_v21 = vor.u32 %v7839_v16, %v6720_v63  ;;  %v3602_v54 = vadd.f32 %v8422_v27, %v8685_v47  ;;  %4339 = vmatpush.bf16.msrb.mxu1 %v6435_v50  ;;  %v7987_v27 = vld [vmem:[#allocation11 + $0xf8] sm:$0xff]  ;;  %v8577_v26 = vpop.f32.mrf.mxu2 }
 0x356   :  { %v6976_v30 = vld [vmem:[#allocation8 + $0xe78] sm:$0xf0]  ;;  %4326 = vmatmul.bf16.vlgmr.msrb.gmra.mxu0 %v8361_v24  ;;  %v3714_v24 = vadd.f32 %v8454_v14, %v8686_v18  ;;  %v7960_v14 = vld [vmem:[#allocation11 + $0x20] sm:$0xff]  ;;  %v7983_v18 = vld [vmem:[#allocation11 + $0xd8] sm:$0xff] }
 0x357   :  { %v6979_v32 = vor.u32 %v7903_v53, %v6976_v30  ;;  %v7831_v56 = vld [vmem:[#allocation8 + $0xc1c] sm:$0xf]  ;;  %4914 = vmatpush.bf16.msra.mxu0 %v7963_v59  ;;  %4352 = vmatpush.bf16.msrb.mxu2 %v6723_v21  ;;  %v3518_v53 = vadd.f32 %v8398_v48, %v3504_v51  ;;  %v3616_v50 = vadd.f32 %v8425_v40, %v3602_v54  ;;  %v8563_v30 = vld [vmem:[#allocation10] sm:$0xff]  ;;  %v8566_v59 = vpop.f32.mrf.mxu3  ;;  %v7969_v48 = vld [vmem:[#allocation11 + $0x68] sm:$0xff] }
 0x358   :  { %v6688_v34 = vld [vmem:[#allocation8 + $0xc38] sm:$0xf0]  ;;  %4340 = vmatmul.bf16.vlgmr.msrb.gmra.mxu1 %v8363_v33  ;;  %v905_v49 = vperm.slane %v8563_v30, 3  ;;  %v7985_v54 = vld [vmem:[#allocation11 + $0xe8] sm:$0xff] }
 0x359   :  { %v7895_v11 = vld [vmem:[#allocation8 + $0xe1c] sm:$0xf]  ;;  %4928 = vmatpush.bf16.msra.mxu1 %v7971_v5  ;;  %v6691_v16 = vor.u32 %v7831_v56, %v6688_v34  ;;  %4366 = vmatpush.bf16.msrb.mxu3 %v6979_v32  ;;  %v3630_v33 = vadd.f32 %v8430_v31, %v3616_v50  ;;  %v3532_v21 = vadd.f32 %v8400_v55, %v3518_v53  ;;  %v8575_v34 = vpop.f32.mrf.mxu1  ;;  %v8687_v50 = vld [vmem:[#allocation28_spill] sm:$0xff] }
 0x35a   :  { %v6944_v25 = vld [vmem:[#allocation8 + $0xe38] sm:$0xf0]  ;;  %v3826_v5 = vadd.f32 %v8496_v13, %v905_v49  ;;  %v3824_v56 = vadd.f32 %v8486_v8, %v905_v49  ;;  %v3728_v31 = vadd.f32 %v8457_v23, %v3714_v24  ;;  %v7968_v13 = vld [vmem:[#allocation11 + $0x60] sm:$0xff]  ;;  %v7977_v8 = vld [vmem:[#allocation11 + $0xa8] sm:$0xff] }
 0x35b   :  { %v7962_v45 = vld [vmem:[#allocation11 + $0x30] sm:$0xff]  ;;  %v6947_v63 = vor.u32 %v7895_v11, %v6944_v25  ;;  %4353 = vmatpush.bf16.msrb.mxu2 %v6691_v16  ;;  %v3644_v55 = vadd.f32 %v8432_v39, %v3630_v33  ;;  %v8584_v25 = vpop.f32.mrf.mxu0  ;;  %v3546_v47 = vadd.f32 %v8403_v0, %v3532_v21  ;;  %v7959_v39 = vld [vmem:[#allocation11 + $0x18] sm:$0xff]  ;;  %v7976_v0 = vld [vmem:[#allocation11 + $0xa0] sm:$0xff] }
 0x35c   :  { %v7970_v58 = vld [vmem:[#allocation11 + $0x70] sm:$0xff]  ;;  %4915 = vmatpush.bf16.msra.mxu0 %v7962_v45  ;;  %v3840_v11 = vadd.f32 %v8502_v41, %v3826_v5  ;;  %v7967_v41 = vld [vmem:[#allocation11 + $0x58] sm:$0xff]  ;;  %v7957_v5 = vld [vmem:[#allocation11 + $0x8] sm:$0xff] }
 0x35d   :  { %4929 = vmatpush.bf16.msra.mxu1 %v7970_v58  ;;  %4367 = vmatpush.bf16.msrb.mxu3 %v6947_v63  ;;  %v7978_v40 = vld [vmem:[#allocation11 + $0xb0] sm:$0xff]  ;;  %v3658_v23 = vadd.f32 %v8437_v12, %v3644_v55  ;;  %v7984_v12 = vld [vmem:[#allocation11 + $0xe0] sm:$0xff] }
 0x35e   :  { %v7986_v32 = vld [vmem:[#allocation11 + $0xf0] sm:$0xff]  ;;  %4354 = vmatmul.bf16.vlgmr.msrb.gmra.mxu2 %v8367_v60  ;;  %v3742_v60 = vadd.f32 %v8462_v36, %v3728_v31  ;;  %v3854_v45 = vadd.f32 %v8504_v3, %v3840_v11  ;;  %v3560_v36 = vadd.f32 %v8406_v7, %v3546_v47  ;;  %v8693_v55 = vld [vmem:[#allocation26_spill] sm:$0xff] }
 0x35f   :  { %4942 = vmatpush.bf16.msra.mxu2 %v7979_v57  ;;  %v8592_v58 = vpop.f32.mrf.mxu3  ;;  %v8600_v57 = vpop.f32.mrf.mxu2  ;;  %v7966_v7 = vld [vmem:[#allocation11 + $0x50] sm:$0xff]  ;;  %v8694_v47 = vld [vmem:[#allocation30_spill] sm:$0xff] }
 0x360   :  { %4916 = vmatpush.bf16.msra.mxu0 %v7961_v22  ;;  %4368 = vmatmul.bf16.vlgmr.msrb.gmra.mxu3 %v8369_v1  ;;  %v3838_v1 = vadd.f32 %v8490_v6, %v3824_v56  ;;  %v3756_v16 = vadd.f32 %v8464_v43, %v3742_v60  ;;  %v3672_v6 = vadd.f32 %v8440_v19, %v3658_v23  ;;  %v8688_v22 = vld [vmem:[#allocation32_spill] sm:$0xff]  ;;  %v8689_v24 = vld [vmem:[#allocation29_spill] sm:$0xff]  ;;  %v7956_v23 = vld [vmem:[#allocation11] sm:$0xff] }
 0x361   :  { %4956 = vmatpush.bf16.msra.mxu3 %v7987_v27  ;;  %4930 = vmatpush.bf16.msra.mxu1 %v7969_v48  ;;  %v3868_v3 = vadd.f32 %v8508_v20, %v3854_v45  ;;  %v8598_v63 = vpop.f32.mrf.mxu1  ;;  %v3574_v53 = vadd.f32 %v8415_v4, %v3560_v36  ;;  %v7975_v20 = vld [vmem:[#allocation11 + $0x98] sm:$0xff]  ;;  %v7964_v45 = vld [vmem:[#allocation11 + $0x40] sm:$0xff] }
 0x362   :  { %v3852_v51 = vadd.f32 %v8492_v61, %v3838_v1  ;;  %v7958_v61 = vld [vmem:[#allocation11 + $0x10] sm:$0xff]  ;;  %v3770_v27 = vadd.f32 %v8480_v52, %v3756_v16  ;;  %v3686_v43 = vadd.f32 %v8447_v17, %v3672_v6  ;;  %v8692_v17 = vld [vmem:[#allocation23_spill] sm:$0xff] }
 0x363   :  { %4943 = vmatpush.bf16.msra.mxu2 %v7978_v40  ;;  %v3882_v19 = vadd.f32 %v8688_v22, %v3868_v3  ;;  %v4049_v33 = vpop.f32.mrf.mxu0  ;;  %v8690_v4 = vld [vmem:[#allocation21_spill] sm:$0xff]  ;;  %v7973_v6 = vld [vmem:[#allocation11 + $0x88] sm:$0xff] }
 0x364   :  { %4917 = vmatpush.bf16.msra.mxu0 %v7960_v14  ;;  %v3866_v49 = vadd.f32 %v8687_v50, %v3852_v51  ;;  %v3588_v40 = vadd.f32 %v8690_v4, %v3574_v53  ;;  %v8691_v52 = vld [vmem:[#allocation25_spill] sm:$0xff]  ;;  %v3700_v56 = vadd.f32 %v8692_v17, %v3686_v43  ;;  %v8696_v3 = vld [vmem:[#allocation20_spill] sm:$0xff]  ;;  %v8697_v53 = vld [vmem:[#allocation27_spill] sm:$0xff] }
 0x365   :  { %4957 = vmatpush.bf16.msra.mxu3 %v7986_v32  ;;  %4931 = vmatpush.bf16.msra.mxu1 %v7968_v13  ;;  %v3784_v21 = vadd.f32 %v8691_v52, %v3770_v27  ;;  %v7965_v32 = vld [vmem:[#allocation11 + $0x48] sm:$0xff]  ;;  %v3896_v14 = vadd.f32 %v8518_v2, %v3882_v19  ;;  %v7974_v13 = vld [vmem:[#allocation11 + $0x90] sm:$0xff]  ;;  %v907_v27 = vperm.slane %v8563_v30, 5  ;;  %v8698_v43 = vld [vmem:[#allocation22_spill] sm:$0xff] }
 0x366   :  { %v3880_v48 = vadd.f32 %v8689_v24, %v3866_v49  ;;  %v4382_v1 = vmax.f32 %v3588_v40, 0.0  ;;  %v8695_v2 = vld [vmem:[#allocation31_spill] sm:$0xff]  ;;  %v4375_v50 = vmax.f32 %v8698_v43, 0.0  ;;  %v7994_v24 = vld [vmem:[#allocation11 + $0x130] sm:$0xff] }
 0x367   :  { %4944 = vmatpush.bf16.msra.mxu2 %v7977_v8  ;;  %v8612_v31 = vpop.f32.mrf.mxu3  ;;  %v3798_v11 = vadd.f32 %v8693_v55, %v3784_v21  ;;  %v7982_v8 = vld [vmem:[#allocation11 + $0xd0] sm:$0xff]  ;;  %v4077_v16 = vpop.f32.mrf.mxu2  ;;  %v7972_v52 = vld [vmem:[#allocation11 + $0x80] sm:$0xff] }
 0x368   :  { %4918 = vmatpush.bf16.msra.mxu0 %v7959_v39  ;;  %v3894_v60 = vadd.f32 %v8694_v47, %v3880_v48  ;;  %v7995_v39 = vld [vmem:[#allocation11 + $0x138] sm:$0xff]  ;;  %v8002_v40 = vld [vmem:[#allocation11 + $0x170] sm:$0xff]  ;;  %v7980_v21 = vld [vmem:[#allocation11 + $0xc0] sm:$0xff] }
 0x369   :  { %4958 = vmatpush.bf16.msra.mxu3 %v7985_v54  ;;  %4932 = vmatpush.bf16.msra.mxu1 %v7967_v41  ;;  %v3910_v54 = vadd.f32 %v8520_v10, %v3896_v14  ;;  %v4383_v41 = vmax.f32 %v3700_v56, 0.0  ;;  %v4063_v36 = vpop.f32.mrf.mxu1  ;;  %v3812_v10 = vadd.f32 %v8697_v53, %v3798_v11  ;;  %v8699_v14 = vld [vmem:[#allocation24_spill] sm:$0xff]  ;;  %v7991_v53 = vld [vmem:[#allocation11 + $0x118] sm:$0xff] }
 0x36a   :  { %v3908_v51 = vadd.f32 %v8695_v2, %v3894_v60  ;;  %v8001_v60 = vld [vmem:[#allocation11 + $0x168] sm:$0xff] }
 0x36b   :  { %4945 = vmatpush.bf16.msra.mxu2 %v7976_v0  ;;  %v906_v0 = vperm.slane %v8563_v30, 4  ;;  %v3924_v49 = vadd.f32 %v8526_v28, %v3910_v54  ;;  %v8625_v19 = vpop.f32.mrf.mxu0  ;;  %v4391_v48 = vpack.c.bf16 %v4383_v41, %v4375_v50  ;;  %v4384_v28 = vmax.f32 %v3812_v10, 0.0  ;;  %v8702_v10 = vld [vmem:[#allocation35_spill] sm:$0xff] }
 0x36c   :  { %4919 = vmatpush.bf16.msra.mxu0 %v7958_v61  ;;  %v4374_v61 = vmax.f32 %v8696_v3, 0.0  ;;  %v8009_v3 = vld [vmem:[#allocation11 + $0x1a8] sm:$0xff] }
 0x36d   :  { %4959 = vmatpush.bf16.msra.mxu3 %v7984_v12  ;;  %4933 = vmatpush.bf16.msra.mxu1 %v7966_v7  ;;  %v8003_v12 = vld [vmem:[#allocation11 + $0x178] sm:$0xff]  ;;  %v7981_v7 = vld [vmem:[#allocation11 + $0xc8] sm:$0xff]  ;;  %v3938_v22 = vadd.f32 %v8534_v35, %v906_v0  ;;  %v3936_v4 = vadd.f32 %v8523_v9, %v906_v0  ;;  %v4048_v35 = vadd.f32 %v8584_v25, %v907_v27  ;;  %v8010_v0 = vld [vmem:[#allocation11 + $0x1b0] sm:$0xff] }
 0x36e   :  { %v7993_v9 = vld [vmem:[#allocation11 + $0x128] sm:$0xff] }
 0x36f   :  { %4946 = vmatpush.bf16.msra.mxu2 %v7975_v20  ;;  %v4390_v20 = vpack.c.bf16 %v4382_v1, %v4374_v61  ;;  %v3952_v17 = vadd.f32 %v8538_v15, %v3938_v22  ;;  %v4091_v56 = vpop.f32.mrf.mxu3  ;;  %v3950_v11 = vadd.f32 %v8529_v29, %v3936_v4  ;;  %v4131_v47 = vpop.f32.mrf.mxu2  ;;  %v4062_v15 = vadd.f32 %v8598_v63, %v4048_v35  ;;  %v7992_v29 = vld [vmem:[#allocation11 + $0x120] sm:$0xff]  ;;  %v7990_v22 = vld [vmem:[#allocation11 + $0x110] sm:$0xff]  ;;  %v8007_v35 = vld [vmem:[#allocation11 + $0x198] sm:$0xff] }
 0x370   :  { %4920 = vmatpush.bf16.msra.mxu0 %v7957_v5  ;;  %v3922_v5 = vadd.f32 %v8516_v37, %v3908_v51  ;;  %v4376_v37 = vmax.f32 %v8699_v14, 0.0  ;;  %v8000_v51 = vld [vmem:[#allocation11 + $0x160] sm:$0xff] }
 0x371   :  { %4960 = vmatpush.bf16.msra.mxu3 %v7983_v18  ;;  %4934 = vmatpush.bf16.msra.mxu1 %v7965_v32  ;;  %v4050_v18 = vadd.f32 %v4049_v33, %v907_v27  ;;  %v8011_v32 = vld [vmem:[#allocation11 + $0x1b8] sm:$0xff]  ;;  %v4385_v33 = vmax.f32 %v3924_v49, 0.0  ;;  %v4117_v25 = vpop.f32.mrf.mxu1  ;;  %v4076_v41 = vadd.f32 %v8600_v57, %v4062_v15 }
 0x372   :  { %v4377_v55 = vmax.f32 %v3922_v5, 0.0  ;;  %v4392_v54 = vpack.c.bf16 %v4384_v28, %v4376_v37  ;;  %v8701_v63 = vld [vmem:[#allocation34_spill] sm:$0xff]  ;;  %v7997_v28 = vld [vmem:[#allocation11 + $0x148] sm:$0xff] }
 0x373   :  { %4947 = vmatpush.bf16.msra.mxu2 %v7974_v13  ;;  %v4064_v13 = vadd.f32 %v4063_v36, %v4050_v18  ;;  %v4105_v2 = vpop.f32.mrf.mxu0  ;;  %v4090_v57 = vadd.f32 %v8612_v31, %v4076_v41  ;;  %v7999_v27 = vld [vmem:[#allocation11 + $0x158] sm:$0xff]  ;;  %v7998_v18 = vld [vmem:[#allocation11 + $0x150] sm:$0xff] }
 0x374   :  { %4921 = vmatpush.bf16.msra.mxu0 %v7956_v23  ;;  %v4393_v1 = vpack.c.bf16 %v4385_v33, %v4377_v55  ;;  %v7988_v33 = vld [vmem:[#allocation11 + $0x100] sm:$0xff] }
 0x375   :  { %4961 = vmatpush.bf16.msra.mxu3 %v7982_v8  ;;  %4935 = vmatpush.bf16.msra.mxu1 %v7964_v45  ;;  %v3966_v8 = vadd.f32 %v8540_v38, %v3952_v17  ;;  %v4078_v23 = vadd.f32 %v4077_v16, %v4064_v13  ;;  %v8700_v45 = vld [vmem:[#allocation33_spill] sm:$0xff] }
 0x377   :  { %4948 = vmatpush.bf16.msra.mxu2 %v7973_v6  ;;  %4922 = vmatmul.bf16.vlgmr.msra.gmra.mxu0 %v4390_v20  ;;  %v3980_v38 = vadd.f32 %v8544_v62, %v3966_v8  ;;  %v4092_v36 = vadd.f32 %v4091_v56, %v4078_v23  ;;  %v4145_v6 = vpop.f32.mrf.mxu3  ;;  %v4133_v49 = vpop.f32.mrf.mxu2  ;;  %v8006_v56 = vld [vmem:[#allocation11 + $0x190] sm:$0xff] }
 0x378   :  { %4970 = vmatpush.bf16.msrb.mxu0 %v7995_v39  ;;  %4936 = vmatmul.bf16.vlgmr.msra.gmra.mxu1 %v4391_v48  ;;  %v3964_v39 = vadd.f32 %v8700_v45, %v3950_v11 }
 0x379   :  { %4984 = vmatpush.bf16.msrb.mxu1 %v8003_v12  ;;  %4962 = vmatpush.bf16.msra.mxu3 %v7981_v7  ;;  %v3994_v12 = vadd.f32 %v8557_v46, %v3980_v38  ;;  %v4106_v61 = vadd.f32 %v4105_v2, %v4092_v36  ;;  %v4104_v7 = vadd.f32 %v8625_v19, %v4090_v57  ;;  %v4119_v50 = vpop.f32.mrf.mxu1 }
 0x37a   :  { %v3978_v16 = vadd.f32 %v8701_v63, %v3964_v39 }
 0x37b   :  { %4949 = vmatpush.bf16.msra.mxu2 %v7972_v52  ;;  %v4008_v43 = vadd.f32 %v8575_v34, %v3994_v12  ;;  %v4120_v46 = vadd.f32 %v4119_v50, %v4106_v61  ;;  %v4118_v48 = vadd.f32 %v4117_v25, %v4104_v7  ;;  %v7989_v34 = vld [vmem:[#allocation11 + $0x108] sm:$0xff] }
 0x37c   :  { %4971 = vmatpush.bf16.msrb.mxu0 %v7994_v24  ;;  %v3992_v62 = vadd.f32 %v8702_v10, %v3978_v16  ;;  %v8008_v24 = vld [vmem:[#allocation11 + $0x1a0] sm:$0xff] }
 0x37d   :  { %4985 = vmatpush.bf16.msrb.mxu1 %v8002_v40  ;;  %4963 = vmatpush.bf16.msra.mxu3 %v7980_v21  ;;  %v4022_v31 = vadd.f32 %v8577_v26, %v4008_v43  ;;  %v4134_v5 = vadd.f32 %v4133_v49, %v4120_v46  ;;  %v4132_v19 = vadd.f32 %v4131_v47, %v4118_v48  ;;  %v908_v47 = vperm.slane %v8563_v30, 6  ;;  %v8015_v48 = vld [vmem:[#allocation11 + $0x1d8] sm:$0xff] }
 0x37e   :  { %4950 = vmatmul.bf16.vlgmr.msra.gmra.mxu2 %v4392_v54  ;;  %v4006_v20 = vadd.f32 %v8549_v44, %v3992_v62 }
 0x37f   :  { %4998 = vmatpush.bf16.msrb.mxu2 %v8011_v32  ;;  %v4036_v40 = vadd.f32 %v8592_v58, %v4022_v31  ;;  %v4147_v52 = vpop.f32.mrf.mxu3  ;;  %v4146_v21 = vadd.f32 %v4145_v6, %v4132_v19  ;;  %v4159_v32 = vpop.f32.mrf.mxu0  ;;  %v8018_v31 = vld [vmem:[#allocation11 + $0x1f0] sm:$0xff]  ;;  %v8013_v19 = vld [vmem:[#allocation11 + $0x1c8] sm:$0xff] }
 0x380   :  { %4972 = vmatpush.bf16.msrb.mxu0 %v7993_v9  ;;  %4964 = vmatmul.bf16.vlgmr.msra.gmra.mxu3 %v4393_v1  ;;  %v4020_v4 = vadd.f32 %v8551_v42, %v4006_v20  ;;  %v4148_v44 = vadd.f32 %v4147_v52, %v4134_v5  ;;  %v7996_v42 = vld [vmem:[#allocation11 + $0x140] sm:$0xff]  ;;  %v8005_v9 = vld [vmem:[#allocation11 + $0x188] sm:$0xff]  ;;  %v4187_v25 = vpop.f32.mrf.mxu2  ;;  %v4160_v54 = vadd.f32 %v4159_v32, %v908_v47 }
 0x381   :  { %4986 = vmatpush.bf16.msrb.mxu1 %v8001_v60  ;;  %v4386_v17 = vmax.f32 %v4036_v40, 0.0  ;;  %v4379_v58 = vmax.f32 %v4146_v21, 0.0  ;;  %v4173_v11 = vpop.f32.mrf.mxu1  ;;  %v8012_v40 = vld [vmem:[#allocation11 + $0x1c0] sm:$0xff] }
 0x382   :  { %v4034_v26 = vadd.f32 %v8566_v59, %v4020_v4  ;;  %v4387_v14 = vmax.f32 %v4148_v44, 0.0  ;;  %v8004_v59 = vld [vmem:[#allocation11 + $0x180] sm:$0xff]  ;;  %v4174_v1 = vadd.f32 %v4173_v11, %v4160_v54  ;;  %v8014_v4 = vld [vmem:[#allocation11 + $0x1d0] sm:$0xff] }
 0x383   :  { %4999 = vmatpush.bf16.msrb.mxu2 %v8010_v0 }
 0x384   :  { %4973 = vmatpush.bf16.msrb.mxu0 %v7992_v29  ;;  %v4378_v37 = vmax.f32 %v4034_v26, 0.0  ;;  %v4395_v55 = vpack.c.bf16 %v4387_v14, %v4379_v58  ;;  %v4188_v41 = vadd.f32 %v4187_v25, %v4174_v1 }
 0x385   :  { %4987 = vmatpush.bf16.msrb.mxu1 %v8000_v51 }
 0x386   :  { %v4394_v13 = vpack.c.bf16 %v4386_v17, %v4378_v37 }
 0x387   :  { %5000 = vmatpush.bf16.msrb.mxu2 %v8009_v3  ;;  %v4161_v8 = vpop.f32.mrf.mxu0  ;;  %v4201_v60 = vpop.f32.mrf.mxu3 }
 0x388   :  { %4974 = vmatpush.bf16.msrb.mxu0 %v7991_v53  ;;  %v4162_v45 = vadd.f32 %v4161_v8, %v908_v47  ;;  %v4189_v39 = vpop.f32.mrf.mxu2  ;;  %v4202_v51 = vadd.f32 %v4201_v60, %v4188_v41 }
 0x389   :  { %4988 = vmatpush.bf16.msrb.mxu1 %v7999_v27  ;;  %v4175_v15 = vpop.f32.mrf.mxu1  ;;  %v8019_v27 = vld [vmem:[#allocation11 + $0x1f8] sm:$0xff] }
 0x38a   :  { %v4176_v38 = vadd.f32 %v4175_v15, %v4162_v45  ;;  %5012 = vmatpush.bf16.msrb.mxu3 %v8019_v27 }
 0x38b   :  { %5001 = vmatpush.bf16.msrb.mxu2 %v8008_v24  ;;  %v8016_v24 = vld [vmem:[#allocation11 + $0x1e0] sm:$0xff] }
 0x38c   :  { %4975 = vmatpush.bf16.msrb.mxu0 %v7990_v22  ;;  %v4190_v0 = vadd.f32 %v4189_v39, %v4176_v38 }
 0x38d   :  { %4989 = vmatpush.bf16.msrb.mxu1 %v7998_v18  ;;  %v8017_v18 = vld [vmem:[#allocation11 + $0x1e8] sm:$0xff] }
 0x38e   :  { %5013 = vmatpush.bf16.msrb.mxu3 %v8018_v31 }
 0x38f   :  { %5002 = vmatpush.bf16.msrb.mxu2 %v8007_v35  ;;  %v4215_v23 = vpop.f32.mrf.mxu0  ;;  %v4203_v29 = vpop.f32.mrf.mxu3  ;;  %v909_v35 = vperm.slane %v8563_v30, 7 }
 0x390   :  { %4976 = vmatpush.bf16.msrb.mxu0 %v7989_v34  ;;  %v4216_v36 = vadd.f32 %v4215_v23, %v4202_v51  ;;  %v4243_v16 = vpop.f32.mrf.mxu2  ;;  %v4204_v12 = vadd.f32 %v4203_v29, %v4190_v0 }
 0x391   :  { %4990 = vmatpush.bf16.msrb.mxu1 %v7997_v28  ;;  %v4229_v2 = vpop.f32.mrf.mxu1 }
 0x392   :  { %v4230_v3 = vadd.f32 %v4229_v2, %v4216_v36  ;;  %5014 = vmatpush.bf16.msrb.mxu3 %v8017_v18 }
 0x393   :  { %5003 = vmatpush.bf16.msrb.mxu2 %v8006_v56 }
 0x394   :  { %4977 = vmatpush.bf16.msrb.mxu0 %v7988_v33  ;;  %v4244_v61 = vadd.f32 %v4243_v16, %v4230_v3 }
 0x395   :  { %4991 = vmatpush.bf16.msrb.mxu1 %v7996_v42 }
 0x396   :  { %5015 = vmatpush.bf16.msrb.mxu3 %v8016_v24 }
 0x397   :  { %4978 = vmatmul.bf16.vlgmr.msrb.gmra.mxu0 %v4394_v13  ;;  %5004 = vmatpush.bf16.msrb.mxu2 %v8005_v9  ;;  %v4217_v63 = vpop.f32.mrf.mxu0  ;;  %v4257_v6 = vpop.f32.mrf.mxu3 }
 0x398   :  { %4992 = vmatmul.bf16.vlgmr.msrb.gmra.mxu1 %v4395_v55  ;;  %v4218_v57 = vadd.f32 %v4217_v63, %v4204_v12  ;;  %v4245_v62 = vpop.f32.mrf.mxu2  ;;  %v4258_v7 = vadd.f32 %v4257_v6, %v4244_v61  ;;  %v8039_v12 = vld [vmem:[#allocation13] ss:$0 sm:$0xff] }
 0x399   :  { %v4231_v53 = vpop.f32.mrf.mxu1 }
 0x39a   :  { %v4232_v10 = vadd.f32 %v4231_v53, %v4218_v57  ;;  %v4380_v46 = vmax.f32 %v4258_v7, 0.0  ;;  %5016 = vmatpush.bf16.msrb.mxu3 %v8015_v48 }
 0x39b   :  { %5005 = vmatpush.bf16.msrb.mxu2 %v8004_v59 }
 0x39c   :  { %v4246_v43 = vadd.f32 %v4245_v62, %v4232_v10 }
 0x39e   :  { %5017 = vmatpush.bf16.msrb.mxu3 %v8014_v4 }
 0x39f   :  { %v4259_v50 = vpop.f32.mrf.mxu3  ;;  %v4271_v5 = vpop.f32.mrf.mxu0 }
 0x3a0   :  { %v4260_v49 = vadd.f32 %v4259_v50, %v4246_v43  ;;  %v4272_v26 = vadd.f32 %v4271_v5, %v909_v35 }
 0x3a1   :  { %v4285_v34 = vpop.f32.mrf.mxu1 }
 0x3a2   :  { %v4388_v22 = vmax.f32 %v4260_v49, 0.0  ;;  %5018 = vmatpush.bf16.msrb.mxu3 %v8013_v19  ;;  %v4286_v33 = vadd.f32 %v4285_v34, %v4272_v26 }
 0x3a4   :  { %v4396_v20 = vpack.c.bf16 %v4388_v22, %v4380_v46 }
 0x3a6   :  { %5006 = vmatmul.bf16.vlgmr.msrb.gmra.mxu2 %v4396_v20  ;;  %5019 = vmatpush.bf16.msrb.mxu3 %v8012_v40 }
 0x3a7   :  { %v4273_v52 = vpop.f32.mrf.mxu0 }
 0x3a8   :  { %v4274_v17 = vadd.f32 %v4273_v52, %v909_v35 }
 0x3a9   :  { %v4299_v28 = vpop.f32.mrf.mxu2  ;;  %v4287_v21 = vpop.f32.mrf.mxu1 }
 0x3aa   :  { %v4300_v56 = vadd.f32 %v4299_v28, %v4286_v33  ;;  %v4288_v37 = vadd.f32 %v4287_v21, %v4274_v17 }
 0x3ab   :  { %v4313_v44 = vpop.f32.mrf.mxu3 }
 0x3ac   :  { %v4314_v13 = vadd.f32 %v4313_v44, %v4300_v56 }
 0x3b1   :  { %v4301_v42 = vpop.f32.mrf.mxu2 }
 0x3b2   :  { %v4302_v9 = vadd.f32 %v4301_v42, %v4288_v37 }
 0x3b3   :  { %v4315_v14 = vpop.f32.mrf.mxu3 }
 0x3b4   :  { %v4316_v8 = vadd.f32 %v4315_v14, %v4302_v9 }
 0x3d3   :  { %v4327_v32 = vpop.f32.mrf.mxu0 }
 0x3d4   :  { %v4328_v55 = vadd.f32 %v4327_v32, %v4314_v13 }
 0x3d5   :  { %v4341_v58 = vpop.f32.mrf.mxu1 }
 0x3d6   :  { %v4342_v30 = vadd.f32 %v4341_v58, %v4328_v55 }
 0x3db   :  { %v4329_v11 = vpop.f32.mrf.mxu0 }
 0x3dc   :  { %v4330_v47 = vadd.f32 %v4329_v11, %v4316_v8 }
 0x3dd   :  { %v4343_v54 = vpop.f32.mrf.mxu1 }
 0x3de   :  { %v4344_v15 = vadd.f32 %v4343_v54, %v4330_v47 }
 0x3e1   :  { %v4355_v59 = vpop.f32.mrf.mxu2 }
 0x3e2   :  { %v4356_v60 = vadd.f32 %v4355_v59, %v4342_v30 }
 0x3e3   :  { %v4369_v25 = vpop.f32.mrf.mxu3 }
 0x3e4   :  { %v4370_v1 = vadd.f32 %v4369_v25, %v4356_v60 }
 0x3e6   :  { %v4381_v29 = vmax.f32 %v4370_v1, 0.0 }
 0x3e9   :  { %v4357_v23 = vpop.f32.mrf.mxu2 }
 0x3ea   :  { %v4358_v45 = vadd.f32 %v4357_v23, %v4344_v15 }
 0x3eb   :  { %v4371_v39 = vpop.f32.mrf.mxu3 }
 0x3ec   :  { %v4372_v41 = vadd.f32 %v4371_v39, %v4358_v45 }
 0x3ee   :  { %v4389_v38 = vmax.f32 %v4372_v41, 0.0 }
 0x3f0   :  { %v4397_v2 = vpack.c.bf16 %v4389_v38, %v4381_v29 }
 0x3f2   :  { %5020 = vmatmul.bf16.vlgmr.msrb.gmra.mxu3 %v4397_v2 }
 0x3f4   :  { %v4923_v51 = vpop.f32.mrf.mxu0 }
 0x3f5   :  { %v4937_v0 = vpop.f32.mrf.mxu1  ;;  %v4924_v61 = vadd.f32 %v8039_v12, %v4923_v51 }
 0x3f7   :  { %v4938_v62 = vadd.f32 %v4937_v0, %v4924_v61 }
 0x3fc   :  { %v4925_v63 = vpop.f32.mrf.mxu0 }
 0x3fd   :  { %v4939_v6 = vpop.f32.mrf.mxu1  ;;  %v4926_v53 = vadd.f32 %v8039_v12, %v4925_v63 }
 0x3ff   :  { %v4940_v27 = vadd.f32 %v4939_v6, %v4926_v53 }
 0x401   :  { %v4951_v36 = vpop.f32.mrf.mxu2 }
 0x402   :  { %v4952_v50 = vadd.f32 %v4951_v36, %v4938_v62 }
 0x403   :  { %v4965_v16 = vpop.f32.mrf.mxu3 }
 0x404   :  { %v4966_v22 = vadd.f32 %v4965_v16, %v4952_v50 }
 0x409   :  { %v4953_v3 = vpop.f32.mrf.mxu2 }
 0x40a   :  { %v4954_v49 = vadd.f32 %v4953_v3, %v4940_v27 }
 0x40b   :  { %v4967_v10 = vpop.f32.mrf.mxu3 }
 0x40c   :  { %v4968_v20 = vadd.f32 %v4967_v10, %v4954_v49 }
 0x414   :  { %v4979_v57 = vpop.f32.mrf.mxu0 }
 0x415   :  { %v4993_v7 = vpop.f32.mrf.mxu1  ;;  %v4980_v18 = vadd.f32 %v4979_v57, %v4966_v22 }
 0x417   :  { %v4994_v4 = vadd.f32 %v4993_v7, %v4980_v18 }
 0x41c   :  { %v4981_v46 = vpop.f32.mrf.mxu0 }
 0x41d   :  { %v4982_v24 = vadd.f32 %v4981_v46, %v4968_v20  ;;  %v4995_v48 = vpop.f32.mrf.mxu1 }
 0x41f   :  { %v4996_v19 = vadd.f32 %v4995_v48, %v4982_v24 }
 0x429   :  { %v5007_v43 = vpop.f32.mrf.mxu2 }
 0x42a   :  { %v5008_v34 = vadd.f32 %v5007_v43, %v4994_v4 }
 0x431   :  { %v5009_v5 = vpop.f32.mrf.mxu2 }
 0x432   :  { %v5010_v40 = vadd.f32 %v5009_v5, %v4996_v19 }
 0x475   :  { %v5021_v31 = vpop.f32.mrf.mxu3 }
 0x476   :  { %v5022_v28 = vadd.f32 %v5021_v31, %v5008_v34 }
 0x47d   :  { %v5023_v52 = vpop.f32.mrf.mxu3 }
 0x47e   :  { %v5024_v35 = vadd.f32 %v5023_v52, %v5010_v40 }
 0x480   :  { %v8023_v44 = vpack.c.bf16 %v5024_v35, %v5022_v28 }
 0x482   :  { %8024 = vst [vmem:[#allocation14] sm:$0xff] %v8023_v44  }
 0x483   :  { %5042 = dma.vmem_to_hbm [thread:$0]  %s5035_s6, 128, %s5037_s1, [#allocation4], %s8248_s19, %s8248_s19, %s8249_s20  }
 0x484   :  { %8241 = dma.done.wait [#allocation4], 128  }
 0x485   :  { %8242 = vsyncadd [#allocation4], 4294967168 }
 0x486   :  { %5047 = vsyncpa [#allocation3], 1 }
 0x487   :  { %5048 = vsyncpa [#allocation6], 1 }
 0x488   :  { %5049 = vsyncpa [#allocation9], 1 }
 0x489   :  { %5050 = vsyncpa [#allocation12], 1 }
 0x48a   :  { %5051 = vsyncpa [#allocation4], 1 }

</bundles_post_ra>
